<compile_context>
chip_gen: v7x
topology: tpu7x:2x2x1
jax: 0.10.0
libtpu: 0.0.40
codegen_flags: <defaults>
</compile_context>

<pallas_src>
import numpy as np
import jax
import jax.numpy as jnp
from jax import lax
from jax.experimental import pallas as pl
from jax.experimental.pallas import tpu as pltpu

H = 32                    # per-LSTM hidden size
NLSTM = 6                 # number of real LSTMs
NL_PAD = 8                # padded LSTM slots (lane alignment)
HP = NL_PAD * H           # fused hidden width  = 256
GP = 4 * HP               # fused gate width    = 1024  [i|f|g|o]
F_PAD = 8                 # padded input-feature width (real = 6)
FC1 = 64                  # fc1 / fc3 width
FCP = 128                 # lane-padded head width
FC2_OUT = 2               # outputs


# ----------------------------------------------------------------------------
# Fused kernel: LSTM recurrence over a time chunk + MLP epilogue on last chunk
# ----------------------------------------------------------------------------
def sernn_kernel(x_ref, wih_ref, whh_ref, b_ref,
                 w1_ref, b1_ref, w3_ref, b3_ref, w2_ref, b2_ref,
                 o_ref, h_ref, c_ref):
    # x_ref  : (Tc, Bt, F_PAD)  time-major input chunk
    # wih_ref: (F_PAD, GP)      fused input->gate weights (block structured)
    # whh_ref: (HP, GP)         fused hidden->gate weights (block diagonal)
    # b_ref  : (1, GP)          fused b_ih + b_hh
    # w1/w3/w2, b1/b3/b2        lane-padded head weights
    # o_ref  : (Bt, 2)          final logits
    # h_ref/c_ref: (Bt, HP)     VMEM scratch carrying the recurrent state
    ti = pl.program_id(1)

    @pl.when(ti == 0)
    def _():
        h_ref[...] = jnp.zeros_like(h_ref)
        c_ref[...] = jnp.zeros_like(c_ref)

    tc = x_ref.shape[0]

    def step(t, carry):
        h, c = carry
        x_t = x_ref[t]                                            # (Bt, F_PAD)
        gates = (jnp.dot(x_t, wih_ref[...],
                         preferred_element_type=jnp.float32)
                 + jnp.dot(h, whh_ref[...],
                           preferred_element_type=jnp.float32)
                 + b_ref[...])                                    # (Bt, GP)
        i = jax.nn.sigmoid(gates[:, 0 * HP:1 * HP])
        f = jax.nn.sigmoid(gates[:, 1 * HP:2 * HP])
        g = jnp.tanh(gates[:, 2 * HP:3 * HP])
        o = jax.nn.sigmoid(gates[:, 3 * HP:4 * HP])
        c_new = f * c + i * g
        h_new = o * jnp.tanh(c_new)
        return h_new, c_new

    h0 = h_ref[...]
    c0 = c_ref[...]
    unroll = True if tc <= 16 else 4
    h_fin, c_fin = lax.fori_loop(0, tc, step, (h0, c0), unroll=unroll)
    h_ref[...] = h_fin
    c_ref[...] = c_fin

    @pl.when(ti == pl.num_programs(1) - 1)
    def _():
        h = h_ref[...]                                            # (Bt, HP)
        y = jnp.dot(h, w1_ref[...],
                    preferred_element_type=jnp.float32) + b1_ref[...]
        y = jnp.maximum(y, 0.0)                                   # relu(fc1)
        y = jnp.dot(y, w3_ref[...],
                    preferred_element_type=jnp.float32) + b3_ref[...]
        y = jnp.dot(y, w2_ref[...],
                    preferred_element_type=jnp.float32) + b2_ref[...]
        o_ref[...] = y[:, :FC2_OUT]                               # masked store once


def _batch_tiling(B):
    if B <= 128:
        return B, B                      # Bt == full batch (one tile)
    Bt = 128
    Bp = (B + Bt - 1) // Bt * Bt
    return Bt, Bp


def _time_chunk(T):
    if T <= 512:
        return T
    for cand in (512, 256, 128, 64, 32, 16, 8):
        if T % cand == 0:
            return cand
    return T


def run_fused(x_tbf, fp, Bt, Tc):
    Tp, Bp, _ = x_tbf.shape
    grid = (Bp // Bt, Tp // Tc)
    return pl.pallas_call(
        sernn_kernel,
        out_shape=jax.ShapeDtypeStruct((Bp, FC2_OUT), jnp.float32),
        grid_spec=pltpu.PrefetchScalarGridSpec(
            num_scalar_prefetch=0,
            grid=grid,
            in_specs=[
                pl.BlockSpec((Tc, Bt, F_PAD), lambda bi, ti: (ti, bi, 0)),
                pl.BlockSpec((F_PAD, GP), lambda bi, ti: (0, 0)),
                pl.BlockSpec((HP, GP), lambda bi, ti: (0, 0)),
                pl.BlockSpec((1, GP), lambda bi, ti: (0, 0)),
                pl.BlockSpec((HP, FCP), lambda bi, ti: (0, 0)),
                pl.BlockSpec((1, FCP), lambda bi, ti: (0, 0)),
                pl.BlockSpec((FCP, FCP), lambda bi, ti: (0, 0)),
                pl.BlockSpec((1, FCP), lambda bi, ti: (0, 0)),
                pl.BlockSpec((FCP, FCP), lambda bi, ti: (0, 0)),
                pl.BlockSpec((1, FCP), lambda bi, ti: (0, 0)),
            ],
            out_specs=pl.BlockSpec((Bt, FC2_OUT), lambda bi, ti: (bi, 0)),
            scratch_shapes=[pltpu.VMEM((Bt, HP), jnp.float32),
                            pltpu.VMEM((Bt, HP), jnp.float32)],
        ),
        compiler_params=pltpu.CompilerParams(
            dimension_semantics=("parallel", "arbitrary")),
    )(x_tbf, fp["wih"], fp["whh"], fp["b"],
      fp["w1"], fp["b1"], fp["w3"], fp["b3"], fp["w2"], fp["b2"])


def sernn_fwxx_forward(x, fused_params):
    # x: (batch, seq, 6) float32  (batch_first, one scalar feature per LSTM)
    B, T, F = x.shape
    Bt, Bp = _batch_tiling(B)
    Tc = _time_chunk(T)
    x_tbf = jnp.transpose(x, (1, 0, 2)).astype(jnp.float32)      # (T, B, F)
    x_tbf = jnp.pad(x_tbf, ((0, 0), (0, Bp - B), (0, F_PAD - F)))
    out = run_fused(x_tbf, fused_params, Bt, Tc)
    return out[:B]


# ----------------------------------------------------------------------------
# Parameter fusion: torch-layout per-LSTM / Linear weights -> padded kernel arrays
# ----------------------------------------------------------------------------
def fuse_params(p):
    wih = np.asarray(p["wih"], np.float32)                        # (6, 4H)
    whh = np.asarray(p["whh"], np.float32)                        # (6, 4H, H)
    b = np.asarray(p["b_ih"], np.float32) + np.asarray(p["b_hh"], np.float32)

    wih_p = np.zeros((F_PAD, GP), np.float32)
    whh_p = np.zeros((HP, GP), np.float32)
    b_p = np.zeros((1, GP), np.float32)
    for l in range(NLSTM):
        for g in range(4):                                        # i, f, g, o
            cols = slice(g * HP + l * H, g * HP + (l + 1) * H)
            wih_p[l, cols] = wih[l, g * H:(g + 1) * H]
            whh_p[l * H:(l + 1) * H, cols] = whh[l, g * H:(g + 1) * H, :].T
            b_p[0, cols] = b[l, g * H:(g + 1) * H]

    w1_p = np.zeros((HP, FCP), np.float32)
    w1_p[:NLSTM * H, :FC1] = np.asarray(p["w1"], np.float32).T
    b1_p = np.zeros((1, FCP), np.float32)
    b1_p[0, :FC1] = np.asarray(p["b1"], np.float32)

    w3_p = np.zeros((FCP, FCP), np.float32)
    w3_p[:FC1, :FC1] = np.asarray(p["w3"], np.float32).T
    b3_p = np.zeros((1, FCP), np.float32)
    b3_p[0, :FC1] = np.asarray(p["b3"], np.float32)

    w2_p = np.zeros((FCP, FCP), np.float32)
    w2_p[:FC1, :FC2_OUT] = np.asarray(p["w2"], np.float32).T
    b2_p = np.zeros((1, FCP), np.float32)
    b2_p[0, :FC2_OUT] = np.asarray(p["b2"], np.float32)

    arrays = dict(wih=wih_p, whh=whh_p, b=b_p, w1=w1_p, b1=b1_p,
                  w3=w3_p, b3=b3_p, w2=w2_p, b2=b2_p)
    return {k: jnp.asarray(v) for k, v in arrays.items()}


# ----------------------------------------------------------------------------
# Pure-JAX reference (torch-layout weights) for a numerical sanity check
# ----------------------------------------------------------------------------
def lstm_ref(x_bt, wih, whh, b):
    B, _ = x_bt.shape
    whh_t = whh.T

    def step(carry, xt):
        h, c = carry
        gates = xt[:, None] * wih[None, :] + h @ whh_t + b[None, :]
        i = jax.nn.sigmoid(gates[:, 0:H])
        f = jax.nn.sigmoid(gates[:, H:2 * H])
        g = jnp.tanh(gates[:, 2 * H:3 * H])
        o = jax.nn.sigmoid(gates[:, 3 * H:4 * H])
        c = f * c + i * g
        h = o * jnp.tanh(c)
        return (h, c), None

    (h, _), _ = lax.scan(step, (jnp.zeros((B, H)), jnp.zeros((B, H))),
                         jnp.transpose(x_bt))
    return h


def forward_ref(x, p):
    hs = [lstm_ref(x[:, :, l], p["wih"][l], p["whh"][l],
                   p["b_ih"][l] + p["b_hh"][l]) for l in range(NLSTM)]
    x_cat = jnp.concatenate(hs, axis=1)
    y = jnp.maximum(x_cat @ p["w1"].T + p["b1"], 0.0)
    y = y @ p["w3"].T + p["b3"]
    return y @ p["w2"].T + p["b2"]


# ----------------------------------------------------------------------------
# Deterministic PyTorch-style init (uniform(-1/sqrt(fan), 1/sqrt(fan)))
# ----------------------------------------------------------------------------
def init_params(key):
    k = 1.0 / np.sqrt(H)
    keys = jax.random.split(key, 10)
    wih = jax.random.uniform(keys[0], (NLSTM, 4 * H), jnp.float32, -k, k)
    whh = jax.random.uniform(keys[1], (NLSTM, 4 * H, H), jnp.float32, -k, k)
    b_ih = jax.random.uniform(keys[2], (NLSTM, 4 * H), jnp.float32, -k, k)
    b_hh = jax.random.uniform(keys[3], (NLSTM, 4 * H), jnp.float32, -k, k)

    kf1 = 1.0 / np.sqrt(NLSTM * H)
    w1 = jax.random.uniform(keys[4], (FC1, NLSTM * H), jnp.float32, -kf1, kf1)
    b1 = jax.random.uniform(keys[5], (FC1,), jnp.float32, -kf1, kf1)
    kf3 = 1.0 / np.sqrt(FC1)
    w3 = jax.random.uniform(keys[6], (FC1, FC1), jnp.float32, -kf3, kf3)
    b3 = jax.random.uniform(keys[7], (FC1,), jnp.float32, -kf3, kf3)
    w2 = jax.random.uniform(keys[8], (FC2_OUT, FC1), jnp.float32, -kf3, kf3)
    b2 = jax.random.uniform(keys[9], (FC2_OUT,), jnp.float32, -kf3, kf3)

    return {"wih": wih, "whh": whh, "b_ih": b_ih, "b_hh": b_hh,
            "w1": w1, "b1": b1, "w3": w3, "b3": b3, "w2": w2, "b2": b2}


if __name__ == "__main__":
    key = jax.random.PRNGKey(0)
    pkey, xkey = jax.random.split(key)
    params = init_params(pkey)
    fused = fuse_params(params)

    batch, seq = 2, 8
    x = jax.random.normal(xkey, (batch, seq, NLSTM), jnp.float32)

    out = jax.block_until_ready(sernn_fwxx_forward(x, fused))
    ref = jax.block_until_ready(forward_ref(x, params))
    np.testing.assert_allclose(np.asarray(out), np.asarray(ref),
                               rtol=1e-3, atol=1e-3)
    assert out.shape == (batch, FC2_OUT)
    print("KERNEL_OK")
</pallas_src>

<mosaic_0001>
module attributes {stable_mosaic.version = 11 : i64} {
  func.func @sernn_kernel(%arg0: i32, %arg1: i32, %arg2: memref<8x2x8xf32, #tpu.memory_space<vmem>>, %arg3: memref<8x1024xf32, #tpu.memory_space<vmem>>, %arg4: memref<256x1024xf32, #tpu.memory_space<vmem>>, %arg5: memref<1x1024xf32, #tpu.memory_space<vmem>>, %arg6: memref<256x128xf32, #tpu.memory_space<vmem>>, %arg7: memref<1x128xf32, #tpu.memory_space<vmem>>, %arg8: memref<128x128xf32, #tpu.memory_space<vmem>>, %arg9: memref<1x128xf32, #tpu.memory_space<vmem>>, %arg10: memref<128x128xf32, #tpu.memory_space<vmem>>, %arg11: memref<1x128xf32, #tpu.memory_space<vmem>>, %arg12: memref<2x2xf32, #tpu.memory_space<vmem>>, %arg13: memref<2x256xf32, #tpu.memory_space<vmem>>, %arg14: memref<2x256xf32, #tpu.memory_space<vmem>>) attributes {dimension_semantics = [#tpu.dimension_semantics<parallel>, #tpu.dimension_semantics<arbitrary>], iteration_bounds = array<i64: 1, 1>, scalar_prefetch = 0 : i64, scratch_operands = 2 : i64, tpu.core_type = #tpu.core_type<tc>, window_params = [{transform_indices = @transform_0, window_bounds = array<i64: 8, 2, 8>}, {pipeline_mode = #tpu.pipeline_mode<synchronous>, transform_indices = @transform_1, window_bounds = array<i64: 8, 1024>}, {pipeline_mode = #tpu.pipeline_mode<synchronous>, transform_indices = @transform_2, window_bounds = array<i64: 256, 1024>}, {pipeline_mode = #tpu.pipeline_mode<synchronous>, transform_indices = @transform_3, window_bounds = array<i64: 1, 1024>}, {pipeline_mode = #tpu.pipeline_mode<synchronous>, transform_indices = @transform_4, window_bounds = array<i64: 256, 128>}, {pipeline_mode = #tpu.pipeline_mode<synchronous>, transform_indices = @transform_5, window_bounds = array<i64: 1, 128>}, {pipeline_mode = #tpu.pipeline_mode<synchronous>, transform_indices = @transform_6, window_bounds = array<i64: 128, 128>}, {pipeline_mode = #tpu.pipeline_mode<synchronous>, transform_indices = @transform_7, window_bounds = array<i64: 1, 128>}, {pipeline_mode = #tpu.pipeline_mode<synchronous>, transform_indices = @transform_8, window_bounds = array<i64: 128, 128>}, {pipeline_mode = #tpu.pipeline_mode<synchronous>, transform_indices = @transform_9, window_bounds = array<i64: 1, 128>}, {transform_indices = @transform_10, window_bounds = array<i64: 2, 2>}]} {
    %c0_i32 = arith.constant 0 : i32
    %0 = arith.cmpi eq, %arg1, %c0_i32 : i32
    %1 = arith.extui %0 : i1 to i32
    %c0_i32_0 = arith.constant 0 : i32
    %2 = arith.cmpi ne, %1, %c0_i32_0 : i32
    scf.if %2 {
      %cst_114 = arith.constant 0.000000e+00 : f32
      %298 = vector.broadcast %cst_114 : f32 to vector<2x256xf32>
      %c0_115 = arith.constant 0 : index
      %c0_116 = arith.constant 0 : index
      %299 = vector.load %arg13[%c0_115, %c0_116] : memref<2x256xf32, #tpu.memory_space<vmem>>, vector<2x256xf32>
      tpu.vector_store %arg13[%c0_115, %c0_116], %298 {strides = array<i32>} : memref<2x256xf32, #tpu.memory_space<vmem>>, vector<2x256xf32>,
      %cst_117 = arith.constant 0.000000e+00 : f32
      %300 = vector.broadcast %cst_117 : f32 to vector<2x256xf32>
      %c0_118 = arith.constant 0 : index
      %c0_119 = arith.constant 0 : index
      %301 = vector.load %arg14[%c0_118, %c0_119] : memref<2x256xf32, #tpu.memory_space<vmem>>, vector<2x256xf32>
      tpu.vector_store %arg14[%c0_118, %c0_119], %300 {strides = array<i32>} : memref<2x256xf32, #tpu.memory_space<vmem>>, vector<2x256xf32>,
    } else {
    }
    %c0 = arith.constant 0 : index
    %c0_1 = arith.constant 0 : index
    %3 = vector.load %arg13[%c0, %c0_1] : memref<2x256xf32, #tpu.memory_space<vmem>>, vector<2x256xf32>
    %c0_2 = arith.constant 0 : index
    %c0_3 = arith.constant 0 : index
    %4 = vector.load %arg14[%c0_2, %c0_3] : memref<2x256xf32, #tpu.memory_space<vmem>>, vector<2x256xf32>
    %c0_i32_4 = arith.constant 0 : i32
    %5 = arith.index_cast %c0_i32_4 : i32 to index
    %c0_5 = arith.constant 0 : index
    %c0_6 = arith.constant 0 : index
    %6 = vector.load %arg2[%5, %c0_5, %c0_6] : memref<8x2x8xf32, #tpu.memory_space<vmem>>, vector<1x2x8xf32>
    %7 = vector.shape_cast %6 : vector<1x2x8xf32> to vector<2x8xf32>
    %c0_7 = arith.constant 0 : index
    %c0_8 = arith.constant 0 : index
    %8 = vector.load %arg3[%c0_7, %c0_8] : memref<8x1024xf32, #tpu.memory_space<vmem>>, vector<8x1024xf32>
    %cst = arith.constant dense<0.000000e+00> : vector<2x1024xf32>
    %9 = tpu.matmul %7, %8, %cst {dimension_numbers = #tpu.dot_dimension_numbers<[1], [0], [0], [1], [0, 0, 1, 1], [], []>} : vector<2x8xf32>, vector<8x1024xf32>, vector<2x1024xf32> -> vector<2x1024xf32>
    %c0_9 = arith.constant 0 : index
    %c0_10 = arith.constant 0 : index
    %10 = vector.load %arg4[%c0_9, %c0_10] : memref<256x1024xf32, #tpu.memory_space<vmem>>, vector<256x1024xf32>
    %cst_11 = arith.constant dense<0.000000e+00> : vector<2x1024xf32>
    %11 = tpu.matmul %3, %10, %cst_11 {dimension_numbers = #tpu.dot_dimension_numbers<[1], [0], [0], [1], [0, 0, 1, 1], [], []>} : vector<2x256xf32>, vector<256x1024xf32>, vector<2x1024xf32> -> vector<2x1024xf32>
    %12 = arith.addf %9, %11 : vector<2x1024xf32>
    %c0_12 = arith.constant 0 : index
    %c0_13 = arith.constant 0 : index
    %13 = vector.load %arg5[%c0_12, %c0_13] : memref<1x1024xf32, #tpu.memory_space<vmem>>, vector<1x1024xf32>
    %14 = vector.broadcast %13 : vector<1x1024xf32> to vector<2x1024xf32>
    %15 = arith.addf %12, %14 : vector<2x1024xf32>
    %16 = vector.extract_strided_slice %15 {offsets = [0, 0], sizes = [2, 256], strides = [1, 1]} : vector<2x1024xf32> to vector<2x256xf32>
    %17 = arith.negf %16 : vector<2x256xf32>
    %18 = math.exp %17 : vector<2x256xf32>
    %cst_14 = arith.constant 1.000000e+00 : f32
    %19 = vector.broadcast %cst_14 : f32 to vector<2x256xf32>
    %20 = arith.addf %19, %18 : vector<2x256xf32>
    %21 = arith.divf %19, %20 : vector<2x256xf32>
    %22 = vector.extract_strided_slice %15 {offsets = [0, 256], sizes = [2, 256], strides = [1, 1]} : vector<2x1024xf32> to vector<2x256xf32>
    %23 = arith.negf %22 : vector<2x256xf32>
    %24 = math.exp %23 : vector<2x256xf32>
    %cst_15 = arith.constant 1.000000e+00 : f32
    %25 = vector.broadcast %cst_15 : f32 to vector<2x256xf32>
    %26 = arith.addf %25, %24 : vector<2x256xf32>
    %27 = arith.divf %25, %26 : vector<2x256xf32>
    %28 = vector.extract_strided_slice %15 {offsets = [0, 512], sizes = [2, 256], strides = [1, 1]} : vector<2x1024xf32> to vector<2x256xf32>
    %29 = math.tanh %28 : vector<2x256xf32>
    %30 = vector.extract_strided_slice %15 {offsets = [0, 768], sizes = [2, 256], strides = [1, 1]} : vector<2x1024xf32> to vector<2x256xf32>
    %31 = arith.negf %30 : vector<2x256xf32>
    %32 = math.exp %31 : vector<2x256xf32>
    %cst_16 = arith.constant 1.000000e+00 : f32
    %33 = vector.broadcast %cst_16 : f32 to vector<2x256xf32>
    %34 = arith.addf %33, %32 : vector<2x256xf32>
    %35 = arith.divf %33, %34 : vector<2x256xf32>
    %36 = arith.mulf %27, %4 : vector<2x256xf32>
    %37 = arith.mulf %21, %29 : vector<2x256xf32>
    %38 = arith.addf %36, %37 : vector<2x256xf32>
    %39 = math.tanh %38 : vector<2x256xf32>
    %40 = arith.mulf %35, %39 : vector<2x256xf32>
    %c1_i32 = arith.constant 1 : i32
    %41 = arith.index_cast %c1_i32 : i32 to index
    %c0_17 = arith.constant 0 : index
    %c0_18 = arith.constant 0 : index
    %42 = vector.load %arg2[%41, %c0_17, %c0_18] : memref<8x2x8xf32, #tpu.memory_space<vmem>>, vector<1x2x8xf32>
    %43 = vector.shape_cast %42 : vector<1x2x8xf32> to vector<2x8xf32>
    %c0_19 = arith.constant 0 : index
    %c0_20 = arith.constant 0 : index
    %44 = vector.load %arg3[%c0_19, %c0_20] : memref<8x1024xf32, #tpu.memory_space<vmem>>, vector<8x1024xf32>
    %cst_21 = arith.constant dense<0.000000e+00> : vector<2x1024xf32>
    %45 = tpu.matmul %43, %44, %cst_21 {dimension_numbers = #tpu.dot_dimension_numbers<[1], [0], [0], [1], [0, 0, 1, 1], [], []>} : vector<2x8xf32>, vector<8x1024xf32>, vector<2x1024xf32> -> vector<2x1024xf32>
    %c0_22 = arith.constant 0 : index
    %c0_23 = arith.constant 0 : index
    %46 = vector.load %arg4[%c0_22, %c0_23] : memref<256x1024xf32, #tpu.memory_space<vmem>>, vector<256x1024xf32>
    %cst_24 = arith.constant dense<0.000000e+00> : vector<2x1024xf32>
    %47 = tpu.matmul %40, %46, %cst_24 {dimension_numbers = #tpu.dot_dimension_numbers<[1], [0], [0], [1], [0, 0, 1, 1], [], []>} : vector<2x256xf32>, vector<256x1024xf32>, vector<2x1024xf32> -> vector<2x1024xf32>
    %48 = arith.addf %45, %47 : vector<2x1024xf32>
    %c0_25 = arith.constant 0 : index
    %c0_26 = arith.constant 0 : index
    %49 = vector.load %arg5[%c0_25, %c0_26] : memref<1x1024xf32, #tpu.memory_space<vmem>>, vector<1x1024xf32>
    %50 = vector.broadcast %49 : vector<1x1024xf32> to vector<2x1024xf32>
    %51 = arith.addf %48, %50 : vector<2x1024xf32>
    %52 = vector.extract_strided_slice %51 {offsets = [0, 0], sizes = [2, 256], strides = [1, 1]} : vector<2x1024xf32> to vector<2x256xf32>
    %53 = arith.negf %52 : vector<2x256xf32>
    %54 = math.exp %53 : vector<2x256xf32>
    %cst_27 = arith.constant 1.000000e+00 : f32
    %55 = vector.broadcast %cst_27 : f32 to vector<2x256xf32>
    %56 = arith.addf %55, %54 : vector<2x256xf32>
    %57 = arith.divf %55, %56 : vector<2x256xf32>
    %58 = vector.extract_strided_slice %51 {offsets = [0, 256], sizes = [2, 256], strides = [1, 1]} : vector<2x1024xf32> to vector<2x256xf32>
    %59 = arith.negf %58 : vector<2x256xf32>
    %60 = math.exp %59 : vector<2x256xf32>
    %cst_28 = arith.constant 1.000000e+00 : f32
    %61 = vector.broadcast %cst_28 : f32 to vector<2x256xf32>
    %62 = arith.addf %61, %60 : vector<2x256xf32>
    %63 = arith.divf %61, %62 : vector<2x256xf32>
    %64 = vector.extract_strided_slice %51 {offsets = [0, 512], sizes = [2, 256], strides = [1, 1]} : vector<2x1024xf32> to vector<2x256xf32>
    %65 = math.tanh %64 : vector<2x256xf32>
    %66 = vector.extract_strided_slice %51 {offsets = [0, 768], sizes = [2, 256], strides = [1, 1]} : vector<2x1024xf32> to vector<2x256xf32>
    %67 = arith.negf %66 : vector<2x256xf32>
    %68 = math.exp %67 : vector<2x256xf32>
    %cst_29 = arith.constant 1.000000e+00 : f32
    %69 = vector.broadcast %cst_29 : f32 to vector<2x256xf32>
    %70 = arith.addf %69, %68 : vector<2x256xf32>
    %71 = arith.divf %69, %70 : vector<2x256xf32>
    %72 = arith.mulf %63, %38 : vector<2x256xf32>
    %73 = arith.mulf %57, %65 : vector<2x256xf32>
    %74 = arith.addf %72, %73 : vector<2x256xf32>
    %75 = math.tanh %74 : vector<2x256xf32>
    %76 = arith.mulf %71, %75 : vector<2x256xf32>
    %c2_i32 = arith.constant 2 : i32
    %77 = arith.index_cast %c2_i32 : i32 to index
    %c0_30 = arith.constant 0 : index
    %c0_31 = arith.constant 0 : index
    %78 = vector.load %arg2[%77, %c0_30, %c0_31] : memref<8x2x8xf32, #tpu.memory_space<vmem>>, vector<1x2x8xf32>
    %79 = vector.shape_cast %78 : vector<1x2x8xf32> to vector<2x8xf32>
    %c0_32 = arith.constant 0 : index
    %c0_33 = arith.constant 0 : index
    %80 = vector.load %arg3[%c0_32, %c0_33] : memref<8x1024xf32, #tpu.memory_space<vmem>>, vector<8x1024xf32>
    %cst_34 = arith.constant dense<0.000000e+00> : vector<2x1024xf32>
    %81 = tpu.matmul %79, %80, %cst_34 {dimension_numbers = #tpu.dot_dimension_numbers<[1], [0], [0], [1], [0, 0, 1, 1], [], []>} : vector<2x8xf32>, vector<8x1024xf32>, vector<2x1024xf32> -> vector<2x1024xf32>
    %c0_35 = arith.constant 0 : index
    %c0_36 = arith.constant 0 : index
    %82 = vector.load %arg4[%c0_35, %c0_36] : memref<256x1024xf32, #tpu.memory_space<vmem>>, vector<256x1024xf32>
    %cst_37 = arith.constant dense<0.000000e+00> : vector<2x1024xf32>
    %83 = tpu.matmul %76, %82, %cst_37 {dimension_numbers = #tpu.dot_dimension_numbers<[1], [0], [0], [1], [0, 0, 1, 1], [], []>} : vector<2x256xf32>, vector<256x1024xf32>, vector<2x1024xf32> -> vector<2x1024xf32>
    %84 = arith.addf %81, %83 : vector<2x1024xf32>
    %c0_38 = arith.constant 0 : index
    %c0_39 = arith.constant 0 : index
    %85 = vector.load %arg5[%c0_38, %c0_39] : memref<1x1024xf32, #tpu.memory_space<vmem>>, vector<1x1024xf32>
    %86 = vector.broadcast %85 : vector<1x1024xf32> to vector<2x1024xf32>
    %87 = arith.addf %84, %86 : vector<2x1024xf32>
    %88 = vector.extract_strided_slice %87 {offsets = [0, 0], sizes = [2, 256], strides = [1, 1]} : vector<2x1024xf32> to vector<2x256xf32>
    %89 = arith.negf %88 : vector<2x256xf32>
    %90 = math.exp %89 : vector<2x256xf32>
    %cst_40 = arith.constant 1.000000e+00 : f32
    %91 = vector.broadcast %cst_40 : f32 to vector<2x256xf32>
    %92 = arith.addf %91, %90 : vector<2x256xf32>
    %93 = arith.divf %91, %92 : vector<2x256xf32>
    %94 = vector.extract_strided_slice %87 {offsets = [0, 256], sizes = [2, 256], strides = [1, 1]} : vector<2x1024xf32> to vector<2x256xf32>
    %95 = arith.negf %94 : vector<2x256xf32>
    %96 = math.exp %95 : vector<2x256xf32>
    %cst_41 = arith.constant 1.000000e+00 : f32
    %97 = vector.broadcast %cst_41 : f32 to vector<2x256xf32>
    %98 = arith.addf %97, %96 : vector<2x256xf32>
    %99 = arith.divf %97, %98 : vector<2x256xf32>
    %100 = vector.extract_strided_slice %87 {offsets = [0, 512], sizes = [2, 256], strides = [1, 1]} : vector<2x1024xf32> to vector<2x256xf32>
    %101 = math.tanh %100 : vector<2x256xf32>
    %102 = vector.extract_strided_slice %87 {offsets = [0, 768], sizes = [2, 256], strides = [1, 1]} : vector<2x1024xf32> to vector<2x256xf32>
    %103 = arith.negf %102 : vector<2x256xf32>
    %104 = math.exp %103 : vector<2x256xf32>
    %cst_42 = arith.constant 1.000000e+00 : f32
    %105 = vector.broadcast %cst_42 : f32 to vector<2x256xf32>
    %106 = arith.addf %105, %104 : vector<2x256xf32>
    %107 = arith.divf %105, %106 : vector<2x256xf32>
    %108 = arith.mulf %99, %74 : vector<2x256xf32>
    %109 = arith.mulf %93, %101 : vector<2x256xf32>
    %110 = arith.addf %108, %109 : vector<2x256xf32>
    %111 = math.tanh %110 : vector<2x256xf32>
    %112 = arith.mulf %107, %111 : vector<2x256xf32>
    %c3_i32 = arith.constant 3 : i32
    %113 = arith.index_cast %c3_i32 : i32 to index
    %c0_43 = arith.constant 0 : index
    %c0_44 = arith.constant 0 : index
    %114 = vector.load %arg2[%113, %c0_43, %c0_44] : memref<8x2x8xf32, #tpu.memory_space<vmem>>, vector<1x2x8xf32>
    %115 = vector.shape_cast %114 : vector<1x2x8xf32> to vector<2x8xf32>
    %c0_45 = arith.constant 0 : index
    %c0_46 = arith.constant 0 : index
    %116 = vector.load %arg3[%c0_45, %c0_46] : memref<8x1024xf32, #tpu.memory_space<vmem>>, vector<8x1024xf32>
    %cst_47 = arith.constant dense<0.000000e+00> : vector<2x1024xf32>
    %117 = tpu.matmul %115, %116, %cst_47 {dimension_numbers = #tpu.dot_dimension_numbers<[1], [0], [0], [1], [0, 0, 1, 1], [], []>} : vector<2x8xf32>, vector<8x1024xf32>, vector<2x1024xf32> -> vector<2x1024xf32>
    %c0_48 = arith.constant 0 : index
    %c0_49 = arith.constant 0 : index
    %118 = vector.load %arg4[%c0_48, %c0_49] : memref<256x1024xf32, #tpu.memory_space<vmem>>, vector<256x1024xf32>
    %cst_50 = arith.constant dense<0.000000e+00> : vector<2x1024xf32>
    %119 = tpu.matmul %112, %118, %cst_50 {dimension_numbers = #tpu.dot_dimension_numbers<[1], [0], [0], [1], [0, 0, 1, 1], [], []>} : vector<2x256xf32>, vector<256x1024xf32>, vector<2x1024xf32> -> vector<2x1024xf32>
    %120 = arith.addf %117, %119 : vector<2x1024xf32>
    %c0_51 = arith.constant 0 : index
    %c0_52 = arith.constant 0 : index
    %121 = vector.load %arg5[%c0_51, %c0_52] : memref<1x1024xf32, #tpu.memory_space<vmem>>, vector<1x1024xf32>
    %122 = vector.broadcast %121 : vector<1x1024xf32> to vector<2x1024xf32>
    %123 = arith.addf %120, %122 : vector<2x1024xf32>
    %124 = vector.extract_strided_slice %123 {offsets = [0, 0], sizes = [2, 256], strides = [1, 1]} : vector<2x1024xf32> to vector<2x256xf32>
    %125 = arith.negf %124 : vector<2x256xf32>
    %126 = math.exp %125 : vector<2x256xf32>
    %cst_53 = arith.constant 1.000000e+00 : f32
    %127 = vector.broadcast %cst_53 : f32 to vector<2x256xf32>
    %128 = arith.addf %127, %126 : vector<2x256xf32>
    %129 = arith.divf %127, %128 : vector<2x256xf32>
    %130 = vector.extract_strided_slice %123 {offsets = [0, 256], sizes = [2, 256], strides = [1, 1]} : vector<2x1024xf32> to vector<2x256xf32>
    %131 = arith.negf %130 : vector<2x256xf32>
    %132 = math.exp %131 : vector<2x256xf32>
    %cst_54 = arith.constant 1.000000e+00 : f32
    %133 = vector.broadcast %cst_54 : f32 to vector<2x256xf32>
    %134 = arith.addf %133, %132 : vector<2x256xf32>
    %135 = arith.divf %133, %134 : vector<2x256xf32>
    %136 = vector.extract_strided_slice %123 {offsets = [0, 512], sizes = [2, 256], strides = [1, 1]} : vector<2x1024xf32> to vector<2x256xf32>
    %137 = math.tanh %136 : vector<2x256xf32>
    %138 = vector.extract_strided_slice %123 {offsets = [0, 768], sizes = [2, 256], strides = [1, 1]} : vector<2x1024xf32> to vector<2x256xf32>
    %139 = arith.negf %138 : vector<2x256xf32>
    %140 = math.exp %139 : vector<2x256xf32>
    %cst_55 = arith.constant 1.000000e+00 : f32
    %141 = vector.broadcast %cst_55 : f32 to vector<2x256xf32>
    %142 = arith.addf %141, %140 : vector<2x256xf32>
    %143 = arith.divf %141, %142 : vector<2x256xf32>
    %144 = arith.mulf %135, %110 : vector<2x256xf32>
    %145 = arith.mulf %129, %137 : vector<2x256xf32>
    %146 = arith.addf %144, %145 : vector<2x256xf32>
    %147 = math.tanh %146 : vector<2x256xf32>
    %148 = arith.mulf %143, %147 : vector<2x256xf32>
    %c4_i32 = arith.constant 4 : i32
    %149 = arith.index_cast %c4_i32 : i32 to index
    %c0_56 = arith.constant 0 : index
    %c0_57 = arith.constant 0 : index
    %150 = vector.load %arg2[%149, %c0_56, %c0_57] : memref<8x2x8xf32, #tpu.memory_space<vmem>>, vector<1x2x8xf32>
    %151 = vector.shape_cast %150 : vector<1x2x8xf32> to vector<2x8xf32>
    %c0_58 = arith.constant 0 : index
    %c0_59 = arith.constant 0 : index
    %152 = vector.load %arg3[%c0_58, %c0_59] : memref<8x1024xf32, #tpu.memory_space<vmem>>, vector<8x1024xf32>
    %cst_60 = arith.constant dense<0.000000e+00> : vector<2x1024xf32>
    %153 = tpu.matmul %151, %152, %cst_60 {dimension_numbers = #tpu.dot_dimension_numbers<[1], [0], [0], [1], [0, 0, 1, 1], [], []>} : vector<2x8xf32>, vector<8x1024xf32>, vector<2x1024xf32> -> vector<2x1024xf32>
    %c0_61 = arith.constant 0 : index
    %c0_62 = arith.constant 0 : index
    %154 = vector.load %arg4[%c0_61, %c0_62] : memref<256x1024xf32, #tpu.memory_space<vmem>>, vector<256x1024xf32>
    %cst_63 = arith.constant dense<0.000000e+00> : vector<2x1024xf32>
    %155 = tpu.matmul %148, %154, %cst_63 {dimension_numbers = #tpu.dot_dimension_numbers<[1], [0], [0], [1], [0, 0, 1, 1], [], []>} : vector<2x256xf32>, vector<256x1024xf32>, vector<2x1024xf32> -> vector<2x1024xf32>
    %156 = arith.addf %153, %155 : vector<2x1024xf32>
    %c0_64 = arith.constant 0 : index
    %c0_65 = arith.constant 0 : index
    %157 = vector.load %arg5[%c0_64, %c0_65] : memref<1x1024xf32, #tpu.memory_space<vmem>>, vector<1x1024xf32>
    %158 = vector.broadcast %157 : vector<1x1024xf32> to vector<2x1024xf32>
    %159 = arith.addf %156, %158 : vector<2x1024xf32>
    %160 = vector.extract_strided_slice %159 {offsets = [0, 0], sizes = [2, 256], strides = [1, 1]} : vector<2x1024xf32> to vector<2x256xf32>
    %161 = arith.negf %160 : vector<2x256xf32>
    %162 = math.exp %161 : vector<2x256xf32>
    %cst_66 = arith.constant 1.000000e+00 : f32
    %163 = vector.broadcast %cst_66 : f32 to vector<2x256xf32>
    %164 = arith.addf %163, %162 : vector<2x256xf32>
    %165 = arith.divf %163, %164 : vector<2x256xf32>
    %166 = vector.extract_strided_slice %159 {offsets = [0, 256], sizes = [2, 256], strides = [1, 1]} : vector<2x1024xf32> to vector<2x256xf32>
    %167 = arith.negf %166 : vector<2x256xf32>
    %168 = math.exp %167 : vector<2x256xf32>
    %cst_67 = arith.constant 1.000000e+00 : f32
    %169 = vector.broadcast %cst_67 : f32 to vector<2x256xf32>
    %170 = arith.addf %169, %168 : vector<2x256xf32>
    %171 = arith.divf %169, %170 : vector<2x256xf32>
    %172 = vector.extract_strided_slice %159 {offsets = [0, 512], sizes = [2, 256], strides = [1, 1]} : vector<2x1024xf32> to vector<2x256xf32>
    %173 = math.tanh %172 : vector<2x256xf32>
    %174 = vector.extract_strided_slice %159 {offsets = [0, 768], sizes = [2, 256], strides = [1, 1]} : vector<2x1024xf32> to vector<2x256xf32>
    %175 = arith.negf %174 : vector<2x256xf32>
    %176 = math.exp %175 : vector<2x256xf32>
    %cst_68 = arith.constant 1.000000e+00 : f32
    %177 = vector.broadcast %cst_68 : f32 to vector<2x256xf32>
    %178 = arith.addf %177, %176 : vector<2x256xf32>
    %179 = arith.divf %177, %178 : vector<2x256xf32>
    %180 = arith.mulf %171, %146 : vector<2x256xf32>
    %181 = arith.mulf %165, %173 : vector<2x256xf32>
    %182 = arith.addf %180, %181 : vector<2x256xf32>
    %183 = math.tanh %182 : vector<2x256xf32>
    %184 = arith.mulf %179, %183 : vector<2x256xf32>
    %c5_i32 = arith.constant 5 : i32
    %185 = arith.index_cast %c5_i32 : i32 to index
    %c0_69 = arith.constant 0 : index
    %c0_70 = arith.constant 0 : index
    %186 = vector.load %arg2[%185, %c0_69, %c0_70] : memref<8x2x8xf32, #tpu.memory_space<vmem>>, vector<1x2x8xf32>
    %187 = vector.shape_cast %186 : vector<1x2x8xf32> to vector<2x8xf32>
    %c0_71 = arith.constant 0 : index
    %c0_72 = arith.constant 0 : index
    %188 = vector.load %arg3[%c0_71, %c0_72] : memref<8x1024xf32, #tpu.memory_space<vmem>>, vector<8x1024xf32>
    %cst_73 = arith.constant dense<0.000000e+00> : vector<2x1024xf32>
    %189 = tpu.matmul %187, %188, %cst_73 {dimension_numbers = #tpu.dot_dimension_numbers<[1], [0], [0], [1], [0, 0, 1, 1], [], []>} : vector<2x8xf32>, vector<8x1024xf32>, vector<2x1024xf32> -> vector<2x1024xf32>
    %c0_74 = arith.constant 0 : index
    %c0_75 = arith.constant 0 : index
    %190 = vector.load %arg4[%c0_74, %c0_75] : memref<256x1024xf32, #tpu.memory_space<vmem>>, vector<256x1024xf32>
    %cst_76 = arith.constant dense<0.000000e+00> : vector<2x1024xf32>
    %191 = tpu.matmul %184, %190, %cst_76 {dimension_numbers = #tpu.dot_dimension_numbers<[1], [0], [0], [1], [0, 0, 1, 1], [], []>} : vector<2x256xf32>, vector<256x1024xf32>, vector<2x1024xf32> -> vector<2x1024xf32>
    %192 = arith.addf %189, %191 : vector<2x1024xf32>
    %c0_77 = arith.constant 0 : index
    %c0_78 = arith.constant 0 : index
    %193 = vector.load %arg5[%c0_77, %c0_78] : memref<1x1024xf32, #tpu.memory_space<vmem>>, vector<1x1024xf32>
    %194 = vector.broadcast %193 : vector<1x1024xf32> to vector<2x1024xf32>
    %195 = arith.addf %192, %194 : vector<2x1024xf32>
    %196 = vector.extract_strided_slice %195 {offsets = [0, 0], sizes = [2, 256], strides = [1, 1]} : vector<2x1024xf32> to vector<2x256xf32>
    %197 = arith.negf %196 : vector<2x256xf32>
    %198 = math.exp %197 : vector<2x256xf32>
    %cst_79 = arith.constant 1.000000e+00 : f32
    %199 = vector.broadcast %cst_79 : f32 to vector<2x256xf32>
    %200 = arith.addf %199, %198 : vector<2x256xf32>
    %201 = arith.divf %199, %200 : vector<2x256xf32>
    %202 = vector.extract_strided_slice %195 {offsets = [0, 256], sizes = [2, 256], strides = [1, 1]} : vector<2x1024xf32> to vector<2x256xf32>
    %203 = arith.negf %202 : vector<2x256xf32>
    %204 = math.exp %203 : vector<2x256xf32>
    %cst_80 = arith.constant 1.000000e+00 : f32
    %205 = vector.broadcast %cst_80 : f32 to vector<2x256xf32>
    %206 = arith.addf %205, %204 : vector<2x256xf32>
    %207 = arith.divf %205, %206 : vector<2x256xf32>
    %208 = vector.extract_strided_slice %195 {offsets = [0, 512], sizes = [2, 256], strides = [1, 1]} : vector<2x1024xf32> to vector<2x256xf32>
    %209 = math.tanh %208 : vector<2x256xf32>
    %210 = vector.extract_strided_slice %195 {offsets = [0, 768], sizes = [2, 256], strides = [1, 1]} : vector<2x1024xf32> to vector<2x256xf32>
    %211 = arith.negf %210 : vector<2x256xf32>
    %212 = math.exp %211 : vector<2x256xf32>
    %cst_81 = arith.constant 1.000000e+00 : f32
    %213 = vector.broadcast %cst_81 : f32 to vector<2x256xf32>
    %214 = arith.addf %213, %212 : vector<2x256xf32>
    %215 = arith.divf %213, %214 : vector<2x256xf32>
    %216 = arith.mulf %207, %182 : vector<2x256xf32>
    %217 = arith.mulf %201, %209 : vector<2x256xf32>
    %218 = arith.addf %216, %217 : vector<2x256xf32>
    %219 = math.tanh %218 : vector<2x256xf32>
    %220 = arith.mulf %215, %219 : vector<2x256xf32>
    %c6_i32 = arith.constant 6 : i32
    %221 = arith.index_cast %c6_i32 : i32 to index
    %c0_82 = arith.constant 0 : index
    %c0_83 = arith.constant 0 : index
    %222 = vector.load %arg2[%221, %c0_82, %c0_83] : memref<8x2x8xf32, #tpu.memory_space<vmem>>, vector<1x2x8xf32>
    %223 = vector.shape_cast %222 : vector<1x2x8xf32> to vector<2x8xf32>
    %c0_84 = arith.constant 0 : index
    %c0_85 = arith.constant 0 : index
    %224 = vector.load %arg3[%c0_84, %c0_85] : memref<8x1024xf32, #tpu.memory_space<vmem>>, vector<8x1024xf32>
    %cst_86 = arith.constant dense<0.000000e+00> : vector<2x1024xf32>
    %225 = tpu.matmul %223, %224, %cst_86 {dimension_numbers = #tpu.dot_dimension_numbers<[1], [0], [0], [1], [0, 0, 1, 1], [], []>} : vector<2x8xf32>, vector<8x1024xf32>, vector<2x1024xf32> -> vector<2x1024xf32>
    %c0_87 = arith.constant 0 : index
    %c0_88 = arith.constant 0 : index
    %226 = vector.load %arg4[%c0_87, %c0_88] : memref<256x1024xf32, #tpu.memory_space<vmem>>, vector<256x1024xf32>
    %cst_89 = arith.constant dense<0.000000e+00> : vector<2x1024xf32>
    %227 = tpu.matmul %220, %226, %cst_89 {dimension_numbers = #tpu.dot_dimension_numbers<[1], [0], [0], [1], [0, 0, 1, 1], [], []>} : vector<2x256xf32>, vector<256x1024xf32>, vector<2x1024xf32> -> vector<2x1024xf32>
    %228 = arith.addf %225, %227 : vector<2x1024xf32>
    %c0_90 = arith.constant 0 : index
    %c0_91 = arith.constant 0 : index
    %229 = vector.load %arg5[%c0_90, %c0_91] : memref<1x1024xf32, #tpu.memory_space<vmem>>, vector<1x1024xf32>
    %230 = vector.broadcast %229 : vector<1x1024xf32> to vector<2x1024xf32>
    %231 = arith.addf %228, %230 : vector<2x1024xf32>
    %232 = vector.extract_strided_slice %231 {offsets = [0, 0], sizes = [2, 256], strides = [1, 1]} : vector<2x1024xf32> to vector<2x256xf32>
    %233 = arith.negf %232 : vector<2x256xf32>
    %234 = math.exp %233 : vector<2x256xf32>
    %cst_92 = arith.constant 1.000000e+00 : f32
    %235 = vector.broadcast %cst_92 : f32 to vector<2x256xf32>
    %236 = arith.addf %235, %234 : vector<2x256xf32>
    %237 = arith.divf %235, %236 : vector<2x256xf32>
    %238 = vector.extract_strided_slice %231 {offsets = [0, 256], sizes = [2, 256], strides = [1, 1]} : vector<2x1024xf32> to vector<2x256xf32>
    %239 = arith.negf %238 : vector<2x256xf32>
    %240 = math.exp %239 : vector<2x256xf32>
    %cst_93 = arith.constant 1.000000e+00 : f32
    %241 = vector.broadcast %cst_93 : f32 to vector<2x256xf32>
    %242 = arith.addf %241, %240 : vector<2x256xf32>
    %243 = arith.divf %241, %242 : vector<2x256xf32>
    %244 = vector.extract_strided_slice %231 {offsets = [0, 512], sizes = [2, 256], strides = [1, 1]} : vector<2x1024xf32> to vector<2x256xf32>
    %245 = math.tanh %244 : vector<2x256xf32>
    %246 = vector.extract_strided_slice %231 {offsets = [0, 768], sizes = [2, 256], strides = [1, 1]} : vector<2x1024xf32> to vector<2x256xf32>
    %247 = arith.negf %246 : vector<2x256xf32>
    %248 = math.exp %247 : vector<2x256xf32>
    %cst_94 = arith.constant 1.000000e+00 : f32
    %249 = vector.broadcast %cst_94 : f32 to vector<2x256xf32>
    %250 = arith.addf %249, %248 : vector<2x256xf32>
    %251 = arith.divf %249, %250 : vector<2x256xf32>
    %252 = arith.mulf %243, %218 : vector<2x256xf32>
    %253 = arith.mulf %237, %245 : vector<2x256xf32>
    %254 = arith.addf %252, %253 : vector<2x256xf32>
    %255 = math.tanh %254 : vector<2x256xf32>
    %256 = arith.mulf %251, %255 : vector<2x256xf32>
    %c7_i32 = arith.constant 7 : i32
    %257 = arith.index_cast %c7_i32 : i32 to index
    %c0_95 = arith.constant 0 : index
    %c0_96 = arith.constant 0 : index
    %258 = vector.load %arg2[%257, %c0_95, %c0_96] : memref<8x2x8xf32, #tpu.memory_space<vmem>>, vector<1x2x8xf32>
    %259 = vector.shape_cast %258 : vector<1x2x8xf32> to vector<2x8xf32>
    %c0_97 = arith.constant 0 : index
    %c0_98 = arith.constant 0 : index
    %260 = vector.load %arg3[%c0_97, %c0_98] : memref<8x1024xf32, #tpu.memory_space<vmem>>, vector<8x1024xf32>
    %cst_99 = arith.constant dense<0.000000e+00> : vector<2x1024xf32>
    %261 = tpu.matmul %259, %260, %cst_99 {dimension_numbers = #tpu.dot_dimension_numbers<[1], [0], [0], [1], [0, 0, 1, 1], [], []>} : vector<2x8xf32>, vector<8x1024xf32>, vector<2x1024xf32> -> vector<2x1024xf32>
    %c0_100 = arith.constant 0 : index
    %c0_101 = arith.constant 0 : index
    %262 = vector.load %arg4[%c0_100, %c0_101] : memref<256x1024xf32, #tpu.memory_space<vmem>>, vector<256x1024xf32>
    %cst_102 = arith.constant dense<0.000000e+00> : vector<2x1024xf32>
    %263 = tpu.matmul %256, %262, %cst_102 {dimension_numbers = #tpu.dot_dimension_numbers<[1], [0], [0], [1], [0, 0, 1, 1], [], []>} : vector<2x256xf32>, vector<256x1024xf32>, vector<2x1024xf32> -> vector<2x1024xf32>
    %264 = arith.addf %261, %263 : vector<2x1024xf32>
    %c0_103 = arith.constant 0 : index
    %c0_104 = arith.constant 0 : index
    %265 = vector.load %arg5[%c0_103, %c0_104] : memref<1x1024xf32, #tpu.memory_space<vmem>>, vector<1x1024xf32>
    %266 = vector.broadcast %265 : vector<1x1024xf32> to vector<2x1024xf32>
    %267 = arith.addf %264, %266 : vector<2x1024xf32>
    %268 = vector.extract_strided_slice %267 {offsets = [0, 0], sizes = [2, 256], strides = [1, 1]} : vector<2x1024xf32> to vector<2x256xf32>
    %269 = arith.negf %268 : vector<2x256xf32>
    %270 = math.exp %269 : vector<2x256xf32>
    %cst_105 = arith.constant 1.000000e+00 : f32
    %271 = vector.broadcast %cst_105 : f32 to vector<2x256xf32>
    %272 = arith.addf %271, %270 : vector<2x256xf32>
    %273 = arith.divf %271, %272 : vector<2x256xf32>
    %274 = vector.extract_strided_slice %267 {offsets = [0, 256], sizes = [2, 256], strides = [1, 1]} : vector<2x1024xf32> to vector<2x256xf32>
    %275 = arith.negf %274 : vector<2x256xf32>
    %276 = math.exp %275 : vector<2x256xf32>
    %cst_106 = arith.constant 1.000000e+00 : f32
    %277 = vector.broadcast %cst_106 : f32 to vector<2x256xf32>
    %278 = arith.addf %277, %276 : vector<2x256xf32>
    %279 = arith.divf %277, %278 : vector<2x256xf32>
    %280 = vector.extract_strided_slice %267 {offsets = [0, 512], sizes = [2, 256], strides = [1, 1]} : vector<2x1024xf32> to vector<2x256xf32>
    %281 = math.tanh %280 : vector<2x256xf32>
    %282 = vector.extract_strided_slice %267 {offsets = [0, 768], sizes = [2, 256], strides = [1, 1]} : vector<2x1024xf32> to vector<2x256xf32>
    %283 = arith.negf %282 : vector<2x256xf32>
    %284 = math.exp %283 : vector<2x256xf32>
    %cst_107 = arith.constant 1.000000e+00 : f32
    %285 = vector.broadcast %cst_107 : f32 to vector<2x256xf32>
    %286 = arith.addf %285, %284 : vector<2x256xf32>
    %287 = arith.divf %285, %286 : vector<2x256xf32>
    %288 = arith.mulf %279, %254 : vector<2x256xf32>
    %289 = arith.mulf %273, %281 : vector<2x256xf32>
    %290 = arith.addf %288, %289 : vector<2x256xf32>
    %291 = math.tanh %290 : vector<2x256xf32>
    %292 = arith.mulf %287, %291 : vector<2x256xf32>
    %c8_i32 = arith.constant 8 : i32
    %c0_108 = arith.constant 0 : index
    %c0_109 = arith.constant 0 : index
    %293 = vector.load %arg13[%c0_108, %c0_109] : memref<2x256xf32, #tpu.memory_space<vmem>>, vector<2x256xf32>
    tpu.vector_store %arg13[%c0_108, %c0_109], %292 {strides = array<i32>} : memref<2x256xf32, #tpu.memory_space<vmem>>, vector<2x256xf32>,
    %c0_110 = arith.constant 0 : index
    %c0_111 = arith.constant 0 : index
    %294 = vector.load %arg14[%c0_110, %c0_111] : memref<2x256xf32, #tpu.memory_space<vmem>>, vector<2x256xf32>
    tpu.vector_store %arg14[%c0_110, %c0_111], %290 {strides = array<i32>} : memref<2x256xf32, #tpu.memory_space<vmem>>, vector<2x256xf32>,
    %c0_i32_112 = arith.constant 0 : i32
    %295 = arith.cmpi eq, %arg1, %c0_i32_112 : i32
    %296 = arith.extui %295 : i1 to i32
    %c0_i32_113 = arith.constant 0 : i32
    %297 = arith.cmpi ne, %296, %c0_i32_113 : i32
    scf.if %297 {
      %c0_114 = arith.constant 0 : index
      %c0_115 = arith.constant 0 : index
      %298 = vector.load %arg13[%c0_114, %c0_115] : memref<2x256xf32, #tpu.memory_space<vmem>>, vector<2x256xf32>
      %c0_116 = arith.constant 0 : index
      %c0_117 = arith.constant 0 : index
      %299 = vector.load %arg6[%c0_116, %c0_117] : memref<256x128xf32, #tpu.memory_space<vmem>>, vector<256x128xf32>
      %cst_118 = arith.constant dense<0.000000e+00> : vector<2x128xf32>
      %300 = tpu.matmul %298, %299, %cst_118 {dimension_numbers = #tpu.dot_dimension_numbers<[1], [0], [0], [1], [0, 0, 1, 1], [], []>} : vector<2x256xf32>, vector<256x128xf32>, vector<2x128xf32> -> vector<2x128xf32>
      %c0_119 = arith.constant 0 : index
      %c0_120 = arith.constant 0 : index
      %301 = vector.load %arg7[%c0_119, %c0_120] : memref<1x128xf32, #tpu.memory_space<vmem>>, vector<1x128xf32>
      %302 = vector.broadcast %301 : vector<1x128xf32> to vector<2x128xf32>
      %303 = arith.addf %300, %302 : vector<2x128xf32>
      %cst_121 = arith.constant 0.000000e+00 : f32
      %304 = vector.broadcast %cst_121 : f32 to vector<2x128xf32>
      %305 = arith.maximumf %303, %304 : vector<2x128xf32>
      %c0_122 = arith.constant 0 : index
      %c0_123 = arith.constant 0 : index
      %306 = vector.load %arg8[%c0_122, %c0_123] : memref<128x128xf32, #tpu.memory_space<vmem>>, vector<128x128xf32>
      %cst_124 = arith.constant dense<0.000000e+00> : vector<2x128xf32>
      %307 = tpu.matmul %305, %306, %cst_124 {dimension_numbers = #tpu.dot_dimension_numbers<[1], [0], [0], [1], [0, 0, 1, 1], [], []>} : vector<2x128xf32>, vector<128x128xf32>, vector<2x128xf32> -> vector<2x128xf32>
      %c0_125 = arith.constant 0 : index
      %c0_126 = arith.constant 0 : index
      %308 = vector.load %arg9[%c0_125, %c0_126] : memref<1x128xf32, #tpu.memory_space<vmem>>, vector<1x128xf32>
      %309 = vector.broadcast %308 : vector<1x128xf32> to vector<2x128xf32>
      %310 = arith.addf %307, %309 : vector<2x128xf32>
      %c0_127 = arith.constant 0 : index
      %c0_128 = arith.constant 0 : index
      %311 = vector.load %arg10[%c0_127, %c0_128] : memref<128x128xf32, #tpu.memory_space<vmem>>, vector<128x128xf32>
      %cst_129 = arith.constant dense<0.000000e+00> : vector<2x128xf32>
      %312 = tpu.matmul %310, %311, %cst_129 {dimension_numbers = #tpu.dot_dimension_numbers<[1], [0], [0], [1], [0, 0, 1, 1], [], []>} : vector<2x128xf32>, vector<128x128xf32>, vector<2x128xf32> -> vector<2x128xf32>
      %c0_130 = arith.constant 0 : index
      %c0_131 = arith.constant 0 : index
      %313 = vector.load %arg11[%c0_130, %c0_131] : memref<1x128xf32, #tpu.memory_space<vmem>>, vector<1x128xf32>
      %314 = vector.broadcast %313 : vector<1x128xf32> to vector<2x128xf32>
      %315 = arith.addf %312, %314 : vector<2x128xf32>
      %316 = vector.extract_strided_slice %315 {offsets = [0, 0], sizes = [2, 2], strides = [1, 1]} : vector<2x128xf32> to vector<2x2xf32>
      %c0_132 = arith.constant 0 : index
      %c0_133 = arith.constant 0 : index
      %317 = vector.load %arg12[%c0_132, %c0_133] : memref<2x2xf32, #tpu.memory_space<vmem>>, vector<2x2xf32>
      tpu.vector_store %arg12[%c0_132, %c0_133], %316 {strides = array<i32>} : memref<2x2xf32, #tpu.memory_space<vmem>>, vector<2x2xf32>,
    } else {
    }
    return
  }
  func.func @transform_0(%arg0: i32, %arg1: i32) -> (i32, i32, i32) {
    %c0_i32 = arith.constant 0 : i32
    %c0_i32_0 = arith.constant 0 : i32
    return %arg1, %arg0, %c0_i32 : i32, i32, i32
  }
  func.func @transform_1(%arg0: i32, %arg1: i32) -> (i32, i32) {
    %c0_i32 = arith.constant 0 : i32
    %c0_i32_0 = arith.constant 0 : i32
    %c0_i32_1 = arith.constant 0 : i32
    return %c0_i32, %c0_i32_0 : i32, i32
  }
  func.func @transform_2(%arg0: i32, %arg1: i32) -> (i32, i32) {
    %c0_i32 = arith.constant 0 : i32
    %c0_i32_0 = arith.constant 0 : i32
    %c0_i32_1 = arith.constant 0 : i32
    return %c0_i32, %c0_i32_0 : i32, i32
  }
  func.func @transform_3(%arg0: i32, %arg1: i32) -> (i32, i32) {
    %c0_i32 = arith.constant 0 : i32
    %c0_i32_0 = arith.constant 0 : i32
    %c0_i32_1 = arith.constant 0 : i32
    return %c0_i32, %c0_i32_0 : i32, i32
  }
  func.func @transform_4(%arg0: i32, %arg1: i32) -> (i32, i32) {
    %c0_i32 = arith.constant 0 : i32
    %c0_i32_0 = arith.constant 0 : i32
    %c0_i32_1 = arith.constant 0 : i32
    return %c0_i32, %c0_i32_0 : i32, i32
  }
  func.func @transform_5(%arg0: i32, %arg1: i32) -> (i32, i32) {
    %c0_i32 = arith.constant 0 : i32
    %c0_i32_0 = arith.constant 0 : i32
    %c0_i32_1 = arith.constant 0 : i32
    return %c0_i32, %c0_i32_0 : i32, i32
  }
  func.func @transform_6(%arg0: i32, %arg1: i32) -> (i32, i32) {
    %c0_i32 = arith.constant 0 : i32
    %c0_i32_0 = arith.constant 0 : i32
    %c0_i32_1 = arith.constant 0 : i32
    return %c0_i32, %c0_i32_0 : i32, i32
  }
  func.func @transform_7(%arg0: i32, %arg1: i32) -> (i32, i32) {
    %c0_i32 = arith.constant 0 : i32
    %c0_i32_0 = arith.constant 0 : i32
    %c0_i32_1 = arith.constant 0 : i32
    return %c0_i32, %c0_i32_0 : i32, i32
  }
  func.func @transform_8(%arg0: i32, %arg1: i32) -> (i32, i32) {
    %c0_i32 = arith.constant 0 : i32
    %c0_i32_0 = arith.constant 0 : i32
    %c0_i32_1 = arith.constant 0 : i32
    return %c0_i32, %c0_i32_0 : i32, i32
  }
  func.func @transform_9(%arg0: i32, %arg1: i32) -> (i32, i32) {
    %c0_i32 = arith.constant 0 : i32
    %c0_i32_0 = arith.constant 0 : i32
    %c0_i32_1 = arith.constant 0 : i32
    return %c0_i32, %c0_i32_0 : i32, i32
  }
  func.func @transform_10(%arg0: i32, %arg1: i32) -> (i32, i32) {
    %c0_i32 = arith.constant 0 : i32
    %c0_i32_0 = arith.constant 0 : i32
    return %arg0, %c0_i32 : i32, i32
  }
}

</mosaic_0001>

<bundles_post_ra>
// kernel: tpu_custom_call.1
= control target key start
LH: loop header
LB: loop body
LE: loop exit
PB: predicated region body
PF: predicated region fallthrough
CT: control target
= control target key end

     0   :  { %15 = vsyncpa [#allocation5], 0  ;;  %s10568_s0 = inlined_call_operand.hbm [shape: f32[8,2,8], index: 0, kind: input, shape index: {}]   ;;  %s10569_s1 = inlined_call_operand.hbm [shape: f32[8,1024], index: 1, kind: input, shape index: {}]   ;;  %s10570_s2 = inlined_call_operand.hbm [shape: f32[256,1024], index: 2, kind: input, shape index: {}]   ;;  %s10571_s3 = inlined_call_operand.vmem [shape: f32[1,1024], index: 3, kind: input, shape index: {}]   ;;  %s10572_s4 = inlined_call_operand.hbm [shape: f32[256,128], index: 4, kind: input, shape index: {}]   ;;  %s10573_s5 = inlined_call_operand.vmem [shape: f32[1,128], index: 5, kind: input, shape index: {}]   ;;  %s10574_s6 = inlined_call_operand.hbm [shape: f32[128,128], index: 6, kind: input, shape index: {}]   ;;  %s10575_s7 = inlined_call_operand.vmem [shape: f32[1,128], index: 7, kind: input, shape index: {}]   ;;  %s10576_s8 = inlined_call_operand.hbm [shape: f32[128,128], index: 8, kind: input, shape index: {}]   ;;  %s10577_s9 = inlined_call_operand.vmem [shape: f32[1,128], index: 9, kind: input, shape index: {}]   ;;  %s10578_s10 = inlined_call_operand.hbm [shape: f32[2,2], index: 10, kind: output, shape index: {}]  }
   0x1   :  { %16 = vsyncpa [#allocation8], 0 }
   0x2   :  { %17 = vsyncpa [#allocation11], 0 }
   0x3   :  { %18 = vsyncpa [#allocation14], 0 }
   0x4   :  { %19 = vsyncpa [#allocation6], 0  ;;  %s8710_s13 = smov [#allocation7]   ;;  %s8711_s15 = smov [#allocation10]  }
   0x5   :  { %s38_s14 = sshll.u32 %s8710_s13, 4  ;;  %s61_s16 = sshll.u32 %s8711_s15, 4  ;;  %s39_s14 = int_to_ptr.vmem [resolvable:$true] %s38_s14  ;;  %s8781_s16 = int_to_ptr.vmem [resolvable:$true] %s61_s16 }
   0x6   :  { %s8546_s19 = scalar_lea.hbm %s10569_s1, 1024 }
   0x7   :  { %p8547_p0 = scmp.ne.s32.totalorder %s10569_s1, %s8546_s19  ;;  %p8550_p1 = scmp.lt.u32.totalorder %s8546_s19, %s10569_s1 }
   0x9   :  { %p8552_p2 = pnand %p8550_p1, %p8547_p0 }
   0xb   :  { %8555 = shalt.err (!%p8552_p2)
}
   0xc   :  { %s8556_s24 = scalar_lea.vmem %s39_s14, 1024  ;;  %p8561_p4 = scmp.lt.s32.totalorder %s39_s14, %s39_s14 }
   0xd   :  { %p8557_p3 = scmp.ne.s32.totalorder %s39_s14, %s8556_s24  ;;  %p8562_p5 = scmp.lt.s32.totalorder %s8556_s24, %s8556_s24 }
   0xf   :  { %p8563_p6 = por %p8562_p5, %p8561_p4 }
  0x11   :  { %p8564_p7 = pnand %p8563_p6, %p8557_p3 }
  0x13   :  { %8567 = shalt.err (!%p8564_p7)
}
  0x14   :  { %41 = dma.hbm_to_vmem [thread:$0]  %s10569_s1, 1024, %s39_s14, [#allocation8]  }
  0x15   :  { %s8568_s29 = scalar_lea.hbm %s10572_s4, 4096 }
  0x16   :  { %p8569_p8 = scmp.ne.s32.totalorder %s10572_s4, %s8568_s29  ;;  %p8572_p9 = scmp.lt.u32.totalorder %s8568_s29, %s10572_s4 }
  0x18   :  { %p8574_p10 = pnand %p8572_p9, %p8569_p8 }
  0x1a   :  { %8577 = shalt.err (!%p8574_p10)
}
  0x1b   :  { %s8578_s15 = scalar_lea.vmem %s8781_s16, 4096  ;;  %p8583_p12 = scmp.lt.s32.totalorder %s8781_s16, %s8781_s16 }
  0x1c   :  { %p8579_p11 = scmp.ne.s32.totalorder %s8781_s16, %s8578_s15  ;;  %p8584_p13 = scmp.lt.s32.totalorder %s8578_s15, %s8578_s15 }
  0x1e   :  { %p8585_p0 = por %p8584_p13, %p8583_p12 }
  0x20   :  { %p8586_p1 = pnand %p8585_p0, %p8579_p11 }
  0x22   :  { %8589 = shalt.err (!%p8586_p1)
}
  0x23   :  { %s8712_s1 = smov 128   ;;  %s8713_s14 = smov 8  }
  0x24   :  { %67 = dma.hbm_to_vmem [thread:$0]  %s10572_s4, 4096, %s8781_s16, [#allocation11], %s8712_s1, %s8712_s1, %s8713_s14  }
  0x25   :  { %s8714_s19 = smov [#allocation4]   ;;  %s8590_s23 = scalar_lea.hbm %s10568_s0, 256 }
  0x26   :  { %s25_s20 = sshll.u32 %s8714_s19, 4  ;;  %p8591_p2 = scmp.ne.s32.totalorder %s10568_s0, %s8590_s23  ;;  %s26_s20 = int_to_ptr.vmem [resolvable:$true] %s25_s20 }
  0x27   :  { %p8594_p3 = scmp.lt.u32.totalorder %s8590_s23, %s10568_s0 }
  0x29   :  { %p8596_p4 = pnand %p8594_p3, %p8591_p2 }
  0x2b   :  { %8599 = shalt.err (!%p8596_p4)
}
  0x2c   :  { %s8600_s28 = scalar_lea.vmem %s26_s20, 256  ;;  %p8605_p6 = scmp.lt.s32.totalorder %s26_s20, %s26_s20 }
  0x2d   :  { %p8601_p5 = scmp.ne.s32.totalorder %s26_s20, %s8600_s28  ;;  %p8606_p7 = scmp.lt.s32.totalorder %s8600_s28, %s8600_s28 }
  0x2f   :  { %p8607_p8 = por %p8606_p7, %p8605_p6 }
  0x31   :  { %p8608_p9 = pnand %p8607_p8, %p8601_p5 }
  0x33   :  { %8611 = shalt.err (!%p8608_p9)
}
  0x34   :  { %s8715_s4 = smov 32   ;;  %s8716_s16 = smov 2  }
  0x35   :  { %31 = dma.hbm_to_vmem [thread:$0]  %s10568_s0, 256, %s26_s20, [#allocation5], %s8715_s4, %s8715_s4, %s8716_s16  }
  0x36   :  { %s8717_s11 = smov [#allocation9]   ;;  %s8612_s17 = scalar_lea.hbm %s10570_s2, 32768 }
  0x37   :  { %s47_s12 = sshll.u32 %s8717_s11, 4  ;;  %p8613_p10 = scmp.ne.s32.totalorder %s10570_s2, %s8612_s17  ;;  %s48_s12 = int_to_ptr.vmem [resolvable:$true] %s47_s12 }
  0x38   :  { %p8616_p11 = scmp.lt.u32.totalorder %s8612_s17, %s10570_s2 }
  0x3a   :  { %p8618_p12 = pnand %p8616_p11, %p8613_p10 }
  0x3c   :  { %8621 = shalt.err (!%p8618_p12)
}
  0x3d   :  { %s8622_s23 = scalar_lea.vmem %s48_s12, 32768  ;;  %p8627_p0 = scmp.lt.s32.totalorder %s48_s12, %s48_s12 }
  0x3e   :  { %p8623_p13 = scmp.ne.s32.totalorder %s48_s12, %s8622_s23  ;;  %p8628_p1 = scmp.lt.s32.totalorder %s8622_s23, %s8622_s23 }
  0x40   :  { %p8629_p2 = por %p8628_p1, %p8627_p0 }
  0x42   :  { %p8630_p3 = pnand %p8629_p2, %p8623_p13 }
  0x44   :  { %8633 = shalt.err (!%p8630_p3)
}
  0x45   :  { %s8718_s0 = smov 1024   ;;  %s8719_s20 = smov 64  }
  0x46   :  { %53 = dma.hbm_to_vmem [thread:$0]  %s10570_s2, 32768, %s48_s12, [#allocation8], %s8718_s0, %s8718_s0, %s8719_s20  }
  0x47   :  { %s8720_s26 = smov [#allocation12]   ;;  %s8721_s28 = smov [#allocation13]  }
  0x48   :  { %s75_s27 = sshll.u32 %s8720_s26, 4  ;;  %s89_s4 = sshll.u32 %s8721_s28, 4  ;;  %s76_s27 = int_to_ptr.vmem [resolvable:$true] %s75_s27  ;;  %s8839_s4 = int_to_ptr.vmem [resolvable:$true] %s89_s4 }
  0x49   :  { %s8634_s30 = scalar_lea.hbm %s10574_s6, 2048 }
  0x4a   :  { %p8635_p4 = scmp.ne.s32.totalorder %s10574_s6, %s8634_s30  ;;  %p8638_p5 = scmp.lt.u32.totalorder %s8634_s30, %s10574_s6 }
  0x4c   :  { %p8640_p6 = pnand %p8638_p5, %p8635_p4 }
  0x4e   :  { %8643 = shalt.err (!%p8640_p6)
}
  0x4f   :  { %s8644_s2 = scalar_lea.vmem %s76_s27, 2048  ;;  %p8649_p8 = scmp.lt.s32.totalorder %s76_s27, %s76_s27 }
  0x50   :  { %p8645_p7 = scmp.ne.s32.totalorder %s76_s27, %s8644_s2  ;;  %p8650_p9 = scmp.lt.s32.totalorder %s8644_s2, %s8644_s2 }
  0x52   :  { %p8651_p10 = por %p8650_p9, %p8649_p8 }
  0x54   :  { %p8652_p11 = pnand %p8651_p10, %p8645_p7 }
  0x56   :  { %8655 = shalt.err (!%p8652_p11)
}
  0x57   :  { %81 = dma.hbm_to_vmem [thread:$0]  %s10574_s6, 2048, %s76_s27, [#allocation11], %s8712_s1, %s8712_s1, %s8713_s14  }
  0x58   :  { %s8656_s22 = scalar_lea.hbm %s10576_s8, 2048 }
  0x59   :  { %p8657_p12 = scmp.ne.s32.totalorder %s10576_s8, %s8656_s22  ;;  %p8660_p13 = scmp.lt.u32.totalorder %s8656_s22, %s10576_s8 }
  0x5b   :  { %p8662_p0 = pnand %p8660_p13, %p8657_p12 }
  0x5d   :  { %8665 = shalt.err (!%p8662_p0)
}
  0x5e   :  { %s8666_s25 = scalar_lea.vmem %s8839_s4, 2048  ;;  %p8671_p2 = scmp.lt.s32.totalorder %s8839_s4, %s8839_s4 }
  0x5f   :  { %p8667_p1 = scmp.ne.s32.totalorder %s8839_s4, %s8666_s25  ;;  %p8672_p3 = scmp.lt.s32.totalorder %s8666_s25, %s8666_s25 }
  0x61   :  { %p8673_p4 = por %p8672_p3, %p8671_p2 }
  0x63   :  { %p8674_p5 = pnand %p8673_p4, %p8667_p1 }
  0x65   :  { %8677 = shalt.err (!%p8674_p5)
}
  0x66   :  { %95 = dma.hbm_to_vmem [thread:$0]  %s10576_s8, 2048, %s8839_s4, [#allocation14], %s8712_s1, %s8712_s1, %s8713_s14  }
  0x67   :  { %8700 = dma.done.wait [#allocation5], 256  }
  0x68   :  { %8701 = vsyncadd [#allocation5], 4294967040 }
  0x69   :  { %8702 = dma.done.wait [#allocation8], 33792  }
  0x6a   :  { %8703 = vsyncadd [#allocation8], 4294933504 }
  0x6b   :  { %8704 = dma.done.wait [#allocation11], 6144  }
  0x6c   :  { %8705 = vsyncadd [#allocation11], 4294961152 }
  0x6d   :  { %8706 = dma.done.wait [#allocation14], 2048  }
  0x6e   :  { %8707 = vsyncadd [#allocation14], 4294965248  ;;  %v10579_v0 = vmov 0.0   ;;  %v136_v1 = vld [vmem:[#allocation9 + $0x18] sm:$0xff]  ;;  %v135_v3 = vld [vmem:[#allocation9 + $0x10] sm:$0xff]  ;;  %vm684_vm0 = vcmask 64512  }
  0x6f   :  { %120 = vst [vmem:[#allocation2] sm:$0xf] %v10579_v0  ;;  %121 = vst [vmem:[#allocation3] sm:$0xf] %v10579_v0  ;;  %v144_v2 = vld [vmem:[#allocation9 + $0x58] sm:$0xff]  ;;  %v143_v5 = vld [vmem:[#allocation9 + $0x50] sm:$0xff] }
  0x70   :  { %v8878_v4 = vpack.c.bf16 %v144_v2, %v136_v1  ;;  %v152_v6 = vld [vmem:[#allocation9 + $0x98] sm:$0xff]  ;;  %v8880_v8 = vpack.c.bf16 %v143_v5, %v135_v3  ;;  %v151_v10 = vld [vmem:[#allocation9 + $0x90] sm:$0xff]  ;;  %v134_v20 = vld [vmem:[#allocation9 + $0x8] sm:$0xff]  ;;  %vm8724_vm1 = vmmov 0   ;;  %vm5819_vm2 = vcmask 9216  }
  0x71   :  { %v160_v7 = vld [vmem:[#allocation9 + $0xd8] sm:$0xff]  ;;  %v159_v11 = vld [vmem:[#allocation9 + $0xd0] sm:$0xff]  ;;  %v142_v21 = vld [vmem:[#allocation9 + $0x48] sm:$0xff] }
  0x72   :  { %10892 = vst [vmem:[#allocation21_spill] sm:$0xff] %v8878_v4  ;;  %10893 = vst [vmem:[#allocation22_spill] sm:$0xff] %v8880_v8  ;;  %v8882_v9 = vpack.c.bf16 %v160_v7, %v152_v6  ;;  %v168_v12 = vld [vmem:[#allocation9 + $0x118] sm:$0xff]  ;;  %6131 = vmatprep.subr.bf16.mxu1 %v8878_v4  ;;  %v8886_v14 = vpack.c.bf16 %v159_v11, %v151_v10  ;;  %v167_v16 = vld [vmem:[#allocation9 + $0x110] sm:$0xff]  ;;  %v8894_v27 = vpack.c.bf16 %v142_v21, %v134_v20 }
  0x73   :  { %v176_v13 = vld [vmem:[#allocation9 + $0x158] sm:$0xff]  ;;  %6133 = vmatpush1.bf16.msra.mxu1 %v8880_v8  ;;  %v175_v17 = vld [vmem:[#allocation9 + $0x150] sm:$0xff]  ;;  %v133_v22 = vld [vmem:[#allocation9] sm:$0xff] }
  0x74   :  { %10894 = vst [vmem:[#allocation23_spill] sm:$0xff] %v8882_v9  ;;  %10895 = vst [vmem:[#allocation24_spill] sm:$0xff] %v8886_v14  ;;  %6135 = vmatprep.subr.bf16.mxu1 %v8882_v9  ;;  %v8889_v15 = vpack.c.bf16 %v176_v13, %v168_v12  ;;  %v184_v18 = vld [vmem:[#allocation9 + $0x198] sm:$0xff]  ;;  %v141_v23 = vld [vmem:[#allocation9 + $0x40] sm:$0xff]  ;;  %v8892_v24 = vpack.c.bf16 %v175_v17, %v167_v16  ;;  %6067 = vmatprep.subr.bf16.mxu0 %v8894_v27 }
  0x75   :  { %v192_v19 = vld [vmem:[#allocation9 + $0x1d8] sm:$0xff]  ;;  %v183_v25 = vld [vmem:[#allocation9 + $0x190] sm:$0xff]  ;;  %10898 = vst [vmem:[#allocation27_spill] sm:$0xff] %v8894_v27  ;;  %v8896_v28 = vpack.c.bf16 %v141_v23, %v133_v22  ;;  %v150_v31 = vld [vmem:[#allocation9 + $0x88] sm:$0xff] }
  0x76   :  { %10896 = vst [vmem:[#allocation25_spill] sm:$0xff] %v8889_v15  ;;  %10897 = vst [vmem:[#allocation26_spill] sm:$0xff] %v8892_v24  ;;  %v191_v26 = vld [vmem:[#allocation9 + $0x1d0] sm:$0xff]  ;;  %v8899_v29 = vpack.c.bf16 %v192_v19, %v184_v18  ;;  %v200_v30 = vld [vmem:[#allocation9 + $0x218] sm:$0xff] }
  0x77   :  { %6137 = vmatpush1.bf16.msra.mxu1 %v8886_v14  ;;  %10899 = vst [vmem:[#allocation28_spill] sm:$0xff] %v8896_v28  ;;  %v158_v32 = vld [vmem:[#allocation9 + $0xc8] sm:$0xff]  ;;  %v208_v33 = vld [vmem:[#allocation9 + $0x258] sm:$0xff]  ;;  %v149_v35 = vld [vmem:[#allocation9 + $0x80] sm:$0xff]  ;;  %6069 = vmatpush1.bf16.msra.mxu0 %v8896_v28  ;;  %v8908_v38 = vpack.c.bf16 %v191_v26, %v183_v25 }
  0x78   :  { %6139 = vmatprep.subr.bf16.mxu1 %v8889_v15  ;;  %10900 = vst [vmem:[#allocation29_spill] sm:$0xff] %v8899_v29  ;;  %v8902_v34 = vpack.c.bf16 %v158_v32, %v150_v31  ;;  %v157_v36 = vld [vmem:[#allocation9 + $0xc0] sm:$0xff]  ;;  %v166_v39 = vld [vmem:[#allocation9 + $0x108] sm:$0xff]  ;;  %v8912_v42 = vpack.c.bf16 %v208_v33, %v200_v30  ;;  %v199_v43 = vld [vmem:[#allocation9 + $0x210] sm:$0xff] }
  0x79   :  { %v8905_v37 = vpack.c.bf16 %v157_v36, %v149_v35  ;;  %10903 = vst [vmem:[#allocation32_spill] sm:$0xff] %v8908_v38  ;;  %v174_v40 = vld [vmem:[#allocation9 + $0x148] sm:$0xff]  ;;  %v165_v41 = vld [vmem:[#allocation9 + $0x100] sm:$0xff]  ;;  %v207_v44 = vld [vmem:[#allocation9 + $0x250] sm:$0xff] }
  0x7a   :  { %10901 = vst [vmem:[#allocation30_spill] sm:$0xff] %v8902_v34  ;;  %6071 = vmatprep.subr.bf16.mxu0 %v8902_v34  ;;  %10904 = vst [vmem:[#allocation33_spill] sm:$0xff] %v8912_v42  ;;  %v8914_v45 = vpack.c.bf16 %v174_v40, %v166_v39  ;;  %v173_v46 = vld [vmem:[#allocation9 + $0x140] sm:$0xff]  ;;  %v216_v47 = vld [vmem:[#allocation9 + $0x298] sm:$0xff]  ;;  %v8920_v52 = vpack.c.bf16 %v207_v44, %v199_v43 }
  0x7b   :  { %10902 = vst [vmem:[#allocation31_spill] sm:$0xff] %v8905_v37  ;;  %6141 = vmatpush1.bf16.msra.mxu1 %v8892_v24  ;;  %v224_v48 = vld [vmem:[#allocation9 + $0x2d8] sm:$0xff]  ;;  %v182_v49 = vld [vmem:[#allocation9 + $0x188] sm:$0xff]  ;;  %6073 = vmatpush1.bf16.msra.mxu0 %v8905_v37  ;;  %v8917_v50 = vpack.c.bf16 %v173_v46, %v165_v41  ;;  %v215_v53 = vld [vmem:[#allocation9 + $0x290] sm:$0xff] }
  0x7c   :  { %6143 = vmatprep.subr.bf16.mxu1 %v8899_v29  ;;  %10905 = vst [vmem:[#allocation34_spill] sm:$0xff] %v8914_v45  ;;  %v190_v51 = vld [vmem:[#allocation9 + $0x1c8] sm:$0xff]  ;;  %10907 = vst [vmem:[#allocation36_spill] sm:$0xff] %v8920_v52  ;;  %6075 = vmatprep.subr.bf16.mxu0 %v8914_v45  ;;  %v181_v55 = vld [vmem:[#allocation9 + $0x180] sm:$0xff]  ;;  %v8926_v57 = vpack.c.bf16 %v224_v48, %v216_v47 }
  0x7d   :  { %10906 = vst [vmem:[#allocation35_spill] sm:$0xff] %v8917_v50  ;;  %v8923_v54 = vpack.c.bf16 %v190_v51, %v182_v49  ;;  %v189_v56 = vld [vmem:[#allocation9 + $0x1c0] sm:$0xff]  ;;  %v223_v58 = vld [vmem:[#allocation9 + $0x2d0] sm:$0xff]  ;;  %v198_v59 = vld [vmem:[#allocation9 + $0x208] sm:$0xff] }
  0x7e   :  { %10909 = vst [vmem:[#allocation38_spill] sm:$0xff] %v8926_v57  ;;  %v206_v60 = vld [vmem:[#allocation9 + $0x248] sm:$0xff]  ;;  %v232_v61 = vld [vmem:[#allocation9 + $0x318] sm:$0xff]  ;;  %v8929_v63 = vpack.c.bf16 %v189_v56, %v181_v55  ;;  %v8932_v1 = vpack.c.bf16 %v223_v58, %v215_v53  ;;  %v231_v2 = vld [vmem:[#allocation9 + $0x310] sm:$0xff] }
  0x7f   :  { %6145 = vmatpush1.bf16.msra.mxu1 %v8908_v38  ;;  %10908 = vst [vmem:[#allocation37_spill] sm:$0xff] %v8923_v54  ;;  %v240_v62 = vld [vmem:[#allocation9 + $0x358] sm:$0xff]  ;;  %6077 = vmatpush1.bf16.msra.mxu0 %v8917_v50  ;;  %v8935_v3 = vpack.c.bf16 %v206_v60, %v198_v59  ;;  %v197_v5 = vld [vmem:[#allocation9 + $0x200] sm:$0xff]  ;;  %v239_v10 = vld [vmem:[#allocation9 + $0x350] sm:$0xff] }
  0x80   :  { %6147 = vmatprep.subr.bf16.mxu1 %v8912_v42  ;;  %10910 = vst [vmem:[#allocation39_spill] sm:$0xff] %v8929_v63  ;;  %10911 = vst [vmem:[#allocation40_spill] sm:$0xff] %v8932_v1  ;;  %6079 = vmatprep.subr.bf16.mxu0 %v8923_v54  ;;  %v205_v6 = vld [vmem:[#allocation9 + $0x240] sm:$0xff]  ;;  %v8938_v7 = vpack.c.bf16 %v240_v62, %v232_v61  ;;  %v214_v11 = vld [vmem:[#allocation9 + $0x288] sm:$0xff]  ;;  %v8944_v18 = vpack.c.bf16 %v239_v10, %v231_v2 }
  0x81   :  { %10912 = vst [vmem:[#allocation41_spill] sm:$0xff] %v8935_v3  ;;  %v222_v12 = vld [vmem:[#allocation9 + $0x2c8] sm:$0xff]  ;;  %v248_v13 = vld [vmem:[#allocation9 + $0x398] sm:$0xff]  ;;  %v8941_v17 = vpack.c.bf16 %v205_v6, %v197_v5  ;;  %v247_v19 = vld [vmem:[#allocation9 + $0x390] sm:$0xff] }
  0x82   :  { %10913 = vst [vmem:[#allocation42_spill] sm:$0xff] %v8938_v7  ;;  %v256_v16 = vld [vmem:[#allocation9 + $0x3d8] sm:$0xff]  ;;  %10915 = vst [vmem:[#allocation44_spill] sm:$0xff] %v8944_v18  ;;  %v8947_v20 = vpack.c.bf16 %v222_v12, %v214_v11  ;;  %v213_v21 = vld [vmem:[#allocation9 + $0x280] sm:$0xff] }
  0x83   :  { %6149 = vmatpush1.bf16.msra.mxu1 %v8920_v52  ;;  %6081 = vmatpush1.bf16.msra.mxu0 %v8929_v63  ;;  %10914 = vst [vmem:[#allocation43_spill] sm:$0xff] %v8941_v17  ;;  %v221_v22 = vld [vmem:[#allocation9 + $0x2c0] sm:$0xff]  ;;  %v8950_v23 = vpack.c.bf16 %v256_v16, %v248_v13  ;;  %v255_v25 = vld [vmem:[#allocation9 + $0x3d0] sm:$0xff]  ;;  %v230_v26 = vld [vmem:[#allocation9 + $0x308] sm:$0xff] }
  0x84   :  { %6151 = vmatprep.subr.bf16.mxu1 %v8926_v57  ;;  %6083 = vmatprep.subr.bf16.mxu0 %v8935_v3  ;;  %10916 = vst [vmem:[#allocation45_spill] sm:$0xff] %v8947_v20  ;;  %v238_v30 = vld [vmem:[#allocation9 + $0x348] sm:$0xff]  ;;  %v264_v31 = vld [vmem:[#allocation9 + $0x418] sm:$0xff]  ;;  %v8953_v33 = vpack.c.bf16 %v221_v22, %v213_v21  ;;  %v8956_v35 = vpack.c.bf16 %v255_v25, %v247_v19  ;;  %v263_v36 = vld [vmem:[#allocation9 + $0x410] sm:$0xff] }
  0x85   :  { %10917 = vst [vmem:[#allocation46_spill] sm:$0xff] %v8950_v23  ;;  %v272_v32 = vld [vmem:[#allocation9 + $0x458] sm:$0xff]  ;;  %v8959_v39 = vpack.c.bf16 %v238_v30, %v230_v26  ;;  %v229_v40 = vld [vmem:[#allocation9 + $0x300] sm:$0xff]  ;;  %v271_v44 = vld [vmem:[#allocation9 + $0x450] sm:$0xff] }
  0x86   :  { %10918 = vst [vmem:[#allocation47_spill] sm:$0xff] %v8953_v33  ;;  %10919 = vst [vmem:[#allocation48_spill] sm:$0xff] %v8956_v35  ;;  %v237_v41 = vld [vmem:[#allocation9 + $0x340] sm:$0xff]  ;;  %v8962_v43 = vpack.c.bf16 %v272_v32, %v264_v31  ;;  %v246_v46 = vld [vmem:[#allocation9 + $0x388] sm:$0xff]  ;;  %v8968_v53 = vpack.c.bf16 %v271_v44, %v263_v36 }
  0x87   :  { %6153 = vmatpush1.bf16.msra.mxu1 %v8932_v1  ;;  %6085 = vmatpush1.bf16.msra.mxu0 %v8941_v17  ;;  %10920 = vst [vmem:[#allocation49_spill] sm:$0xff] %v8959_v39  ;;  %v254_v47 = vld [vmem:[#allocation9 + $0x3c8] sm:$0xff]  ;;  %v280_v48 = vld [vmem:[#allocation9 + $0x498] sm:$0xff]  ;;  %v8965_v51 = vpack.c.bf16 %v237_v41, %v229_v40  ;;  %v279_v55 = vld [vmem:[#allocation9 + $0x490] sm:$0xff] }
  0x88   :  { %6155 = vmatprep.subr.bf16.mxu1 %v8938_v7  ;;  %6087 = vmatprep.subr.bf16.mxu0 %v8947_v20  ;;  %10921 = vst [vmem:[#allocation50_spill] sm:$0xff] %v8962_v43  ;;  %v288_v49 = vld [vmem:[#allocation9 + $0x4d8] sm:$0xff]  ;;  %10923 = vst [vmem:[#allocation52_spill] sm:$0xff] %v8968_v53  ;;  %v8971_v56 = vpack.c.bf16 %v254_v47, %v246_v46  ;;  %v245_v58 = vld [vmem:[#allocation9 + $0x380] sm:$0xff] }
  0x89   :  { %10922 = vst [vmem:[#allocation51_spill] sm:$0xff] %v8965_v51  ;;  %v253_v59 = vld [vmem:[#allocation9 + $0x3c0] sm:$0xff]  ;;  %v8974_v60 = vpack.c.bf16 %v288_v49, %v280_v48  ;;  %v287_v61 = vld [vmem:[#allocation9 + $0x4d0] sm:$0xff]  ;;  %v262_v62 = vld [vmem:[#allocation9 + $0x408] sm:$0xff] }
  0x8a   :  { %10924 = vst [vmem:[#allocation53_spill] sm:$0xff] %v8971_v56  ;;  %v270_v2 = vld [vmem:[#allocation9 + $0x448] sm:$0xff]  ;;  %v296_v5 = vld [vmem:[#allocation9 + $0x518] sm:$0xff]  ;;  %v295_v10 = vld [vmem:[#allocation9 + $0x510] sm:$0xff]  ;;  %v8977_v11 = vpack.c.bf16 %v253_v59, %v245_v58  ;;  %v8980_v12 = vpack.c.bf16 %v287_v61, %v279_v55 }
  0x8b   :  { %6157 = vmatpush1.bf16.msra.mxu1 %v8944_v18  ;;  %6089 = vmatpush1.bf16.msra.mxu0 %v8953_v33  ;;  %10925 = vst [vmem:[#allocation54_spill] sm:$0xff] %v8974_v60  ;;  %v304_v6 = vld [vmem:[#allocation9 + $0x558] sm:$0xff]  ;;  %v303_v13 = vld [vmem:[#allocation9 + $0x550] sm:$0xff]  ;;  %v8983_v16 = vpack.c.bf16 %v270_v2, %v262_v62  ;;  %v261_v19 = vld [vmem:[#allocation9 + $0x400] sm:$0xff] }
  0x8c   :  { %6159 = vmatprep.subr.bf16.mxu1 %v8950_v23  ;;  %6091 = vmatprep.subr.bf16.mxu0 %v8959_v39  ;;  %10926 = vst [vmem:[#allocation55_spill] sm:$0xff] %v8977_v11  ;;  %10927 = vst [vmem:[#allocation56_spill] sm:$0xff] %v8980_v12  ;;  %v269_v21 = vld [vmem:[#allocation9 + $0x440] sm:$0xff]  ;;  %v8986_v22 = vpack.c.bf16 %v304_v6, %v296_v5  ;;  %v278_v25 = vld [vmem:[#allocation9 + $0x488] sm:$0xff]  ;;  %v8998_v41 = vpack.c.bf16 %v303_v13, %v295_v10 }
  0x8d   :  { %10928 = vst [vmem:[#allocation57_spill] sm:$0xff] %v8983_v16  ;;  %v286_v26 = vld [vmem:[#allocation9 + $0x4c8] sm:$0xff]  ;;  %v312_v31 = vld [vmem:[#allocation9 + $0x598] sm:$0xff]  ;;  %v8995_v40 = vpack.c.bf16 %v269_v21, %v261_v19  ;;  %v311_v44 = vld [vmem:[#allocation9 + $0x590] sm:$0xff] }
  0x8e   :  { %10929 = vst [vmem:[#allocation58_spill] sm:$0xff] %v8986_v22  ;;  %v8988_v30 = vld.sshfl [vmem:[#allocation2] sm:$0x33 pattern:$0x76325410]  ;;  %v320_v32 = vld [vmem:[#allocation9 + $0x5d8] sm:$0xff]  ;;  %v9001_v46 = vpack.c.bf16 %v286_v26, %v278_v25 }
  0x8f   :  { %6161 = vmatpush1.bf16.msra.mxu1 %v8956_v35  ;;  %6093 = vmatpush1.bf16.msra.mxu0 %v8965_v51  ;;  %v8992_v36 = vcombine.high %v8988_v30, %v8988_v30  ;;  %10930 = vst [vmem:[#allocation59_spill] sm:$0xff] %v8995_v40  ;;  %10931 = vst [vmem:[#allocation60_spill] sm:$0xff] %v8998_v41  ;;  %v277_v47 = vld [vmem:[#allocation9 + $0x480] sm:$0xff]  ;;  %v9004_v49 = vpack.c.bf16 %v320_v32, %v312_v31  ;;  %v319_v55 = vld [vmem:[#allocation9 + $0x5d0] sm:$0xff] }
  0x90   :  { %6163 = vmatprep.subr.bf16.mxu1 %v8962_v43  ;;  %6095 = vmatprep.subr.bf16.mxu0 %v8971_v56  ;;  %10932 = vst [vmem:[#allocation61_spill] sm:$0xff] %v9001_v46  ;;  %v285_v48 = vld [vmem:[#allocation9 + $0x4c0] sm:$0xff]  ;;  %v294_v58 = vld [vmem:[#allocation9 + $0x508] sm:$0xff]  ;;  %v328_v61 = vld [vmem:[#allocation9 + $0x618] sm:$0xff]  ;;  %v9012_v5 = vpack.c.bf16 %v319_v55, %v311_v44 }
  0x91   :  { %10933 = vst [vmem:[#allocation62_spill] sm:$0xff] %v9004_v49  ;;  %v302_v59 = vld [vmem:[#allocation9 + $0x548] sm:$0xff]  ;;  %535 = vmatprep.mubr.f32.mxu1 %v8992_v36  ;;  %v336_v62 = vld [vmem:[#allocation9 + $0x658] sm:$0xff]  ;;  %464 = vmatprep.mubr.f32.mxu0 %v8992_v36  ;;  %v9009_v2 = vpack.c.bf16 %v285_v48, %v277_v47  ;;  %v327_v6 = vld [vmem:[#allocation9 + $0x610] sm:$0xff] }
  0x92   :  { %10935 = vst [vmem:[#allocation64_spill] sm:$0xff] %v9012_v5  ;;  %v9015_v10 = vpack.c.bf16 %v302_v59, %v294_v58  ;;  %v293_v13 = vld [vmem:[#allocation9 + $0x500] sm:$0xff]  ;;  %v9018_v21 = vpack.c.bf16 %v336_v62, %v328_v61  ;;  %v335_v25 = vld [vmem:[#allocation9 + $0x650] sm:$0xff]  ;;  %v310_v26 = vld [vmem:[#allocation9 + $0x588] sm:$0xff] }
  0x93   :  { %6165 = vmatpush1.bf16.msra.mxu1 %v8968_v53  ;;  %6097 = vmatpush1.bf16.msra.mxu0 %v8977_v11  ;;  %10934 = vst [vmem:[#allocation63_spill] sm:$0xff] %v9009_v2  ;;  %v301_v19 = vld [vmem:[#allocation9 + $0x540] sm:$0xff]  ;;  %v318_v31 = vld [vmem:[#allocation9 + $0x5c8] sm:$0xff]  ;;  %v344_v32 = vld [vmem:[#allocation9 + $0x698] sm:$0xff]  ;;  %v9024_v48 = vpack.c.bf16 %v335_v25, %v327_v6 }
  0x94   :  { %6167 = vmatprep.subr.bf16.mxu1 %v8974_v60  ;;  %6099 = vmatprep.subr.bf16.mxu0 %v8983_v16  ;;  %10936 = vst [vmem:[#allocation65_spill] sm:$0xff] %v9015_v10  ;;  %10937 = vst [vmem:[#allocation66_spill] sm:$0xff] %v9018_v21  ;;  %v352_v47 = vld [vmem:[#allocation9 + $0x6d8] sm:$0xff]  ;;  %v9021_v44 = vpack.c.bf16 %v301_v19, %v293_v13  ;;  %v343_v55 = vld [vmem:[#allocation9 + $0x690] sm:$0xff]  ;;  %v9027_v58 = vpack.c.bf16 %v318_v31, %v310_v26 }
  0x95   :  { %10939 = vst [vmem:[#allocation68_spill] sm:$0xff] %v9024_v48  ;;  %v309_v59 = vld [vmem:[#allocation9 + $0x580] sm:$0xff]  ;;  %v9030_v62 = vpack.c.bf16 %v352_v47, %v344_v32  ;;  %v351_v0 = vld [vmem:[#allocation9 + $0x6d0] sm:$0xff]  ;;  %v360_v13 = vld [vmem:[#allocation9 + $0x718] sm:$0xff] }
  0x96   :  { %10938 = vst [vmem:[#allocation67_spill] sm:$0xff] %v9021_v44  ;;  %10940 = vst [vmem:[#allocation69_spill] sm:$0xff] %v9027_v58  ;;  %v317_v61 = vld [vmem:[#allocation9 + $0x5c0] sm:$0xff]  ;;  %v368_v19 = vld [vmem:[#allocation9 + $0x758] sm:$0xff]  ;;  %v9036_v25 = vpack.c.bf16 %v351_v0, %v343_v55 }
  0x97   :  { %6169 = vmatpush1.bf16.msra.mxu1 %v8980_v12  ;;  %6101 = vmatpush1.bf16.msra.mxu0 %v8995_v40  ;;  %10941 = vst [vmem:[#allocation70_spill] sm:$0xff] %v9030_v62  ;;  %v9033_v6 = vpack.c.bf16 %v317_v61, %v309_v59  ;;  %v359_v26 = vld [vmem:[#allocation9 + $0x710] sm:$0xff]  ;;  %v325_v32 = vld [vmem:[#allocation9 + $0x600] sm:$0xff]  ;;  %v350_v12 = vld [vmem:[#allocation9 + $0x6c8] sm:$0xff] }
  0x98   :  { %6171 = vmatprep.subr.bf16.mxu1 %v8986_v22  ;;  %6103 = vmatprep.subr.bf16.mxu0 %v9001_v46  ;;  %10943 = vst [vmem:[#allocation72_spill] sm:$0xff] %v9036_v25  ;;  %v333_v47 = vld [vmem:[#allocation9 + $0x640] sm:$0xff]  ;;  %v342_v22 = vld [vmem:[#allocation9 + $0x688] sm:$0xff]  ;;  %v376_v59 = vld [vmem:[#allocation9 + $0x798] sm:$0xff] }
  0x99   :  { %10942 = vst [vmem:[#allocation71_spill] sm:$0xff] %v9033_v6  ;;  %v384_v61 = vld [vmem:[#allocation9 + $0x7d8] sm:$0xff]  ;;  %v9045_v0 = vpack.c.bf16 %v333_v47, %v325_v32  ;;  %v358_v60 = vld [vmem:[#allocation9 + $0x708] sm:$0xff] }
  0x9a   :  { %v140_v32 = vld [vmem:[#allocation9 + $0x38] sm:$0xff] }
  0x9b   :  { %6173 = vmatpush1.bf16.msra.mxu1 %v8998_v41  ;;  %6105 = vmatpush1.bf16.msra.mxu0 %v9009_v2  ;;  %v334_v41 = vld [vmem:[#allocation9 + $0x648] sm:$0xff]  ;;  %10946 = vst [vmem:[#allocation75_spill] sm:$0xff] %v9045_v0  ;;  %v148_v47 = vld [vmem:[#allocation9 + $0x78] sm:$0xff] }
  0x9c   :  { %6175 = vmatprep.subr.bf16.mxu1 %v9004_v49  ;;  %6107 = vmatprep.subr.bf16.mxu0 %v9015_v10  ;;  %v326_v49 = vld [vmem:[#allocation9 + $0x608] sm:$0xff] }
  0x9d   :  { %v9039_v31 = vpack.c.bf16 %v334_v41, %v326_v49  ;;  %v375_v41 = vld [vmem:[#allocation9 + $0x790] sm:$0xff]  ;;  %v9051_v49 = vpack.c.bf16 %v350_v12, %v342_v22 }
  0x9e   :  { %v139_v12 = vld [vmem:[#allocation9 + $0x30] sm:$0xff] }
  0x9f   :  { %6177 = vmatpush1.bf16.msra.mxu1 %v9012_v5  ;;  %6109 = vmatpush1.bf16.msra.mxu0 %v9021_v44  ;;  %10944 = vst [vmem:[#allocation73_spill] sm:$0xff] %v9039_v31  ;;  %v367_v5 = vld [vmem:[#allocation9 + $0x750] sm:$0xff]  ;;  %10948 = vst [vmem:[#allocation77_spill] sm:$0xff] %v9051_v49 }
  0xa0   :  { %6179 = vmatprep.subr.bf16.mxu1 %v9018_v21  ;;  %6111 = vmatprep.subr.bf16.mxu0 %v9027_v58  ;;  %v9042_v21 = vpack.c.bf16 %v368_v19, %v360_v13  ;;  %v9048_v55 = vpack.c.bf16 %v367_v5, %v359_v26  ;;  %v341_v13 = vld [vmem:[#allocation9 + $0x680] sm:$0xff] }
  0xa1   :  { %v349_v19 = vld [vmem:[#allocation9 + $0x6c0] sm:$0xff] }
  0xa2   :  { %10945 = vst [vmem:[#allocation74_spill] sm:$0xff] %v9042_v21  ;;  %10947 = vst [vmem:[#allocation76_spill] sm:$0xff] %v9048_v55  ;;  %v9057_v5 = vpack.c.bf16 %v349_v19, %v341_v13  ;;  %v156_v13 = vld [vmem:[#allocation9 + $0xb8] sm:$0xff] }
  0xa3   :  { %6181 = vmatpush1.bf16.msra.mxu1 %v9024_v48  ;;  %6113 = vmatpush1.bf16.msra.mxu0 %v9033_v6  ;;  %v383_v48 = vld [vmem:[#allocation9 + $0x7d0] sm:$0xff]  ;;  %v366_v6 = vld [vmem:[#allocation9 + $0x748] sm:$0xff]  ;;  %v164_v19 = vld [vmem:[#allocation9 + $0xf8] sm:$0xff] }
  0xa4   :  { %6183 = vmatprep.subr.bf16.mxu1 %v9030_v62  ;;  %6115 = vmatprep.subr.bf16.mxu0 %v9039_v31  ;;  %v9054_v62 = vpack.c.bf16 %v384_v61, %v376_v59  ;;  %10950 = vst [vmem:[#allocation79_spill] sm:$0xff] %v9057_v5  ;;  %v9060_v26 = vpack.c.bf16 %v383_v48, %v375_v41  ;;  %v357_v59 = vld [vmem:[#allocation9 + $0x700] sm:$0xff]  ;;  %v374_v31 = vld [vmem:[#allocation9 + $0x788] sm:$0xff] }
  0xa5   :  { %v9063_v22 = vpack.c.bf16 %v366_v6, %v358_v60  ;;  %v365_v61 = vld [vmem:[#allocation9 + $0x740] sm:$0xff]  ;;  %v155_v60 = vld [vmem:[#allocation9 + $0xb0] sm:$0xff] }
  0xa6   :  { %10949 = vst [vmem:[#allocation78_spill] sm:$0xff] %v9054_v62  ;;  %10951 = vst [vmem:[#allocation80_spill] sm:$0xff] %v9060_v26  ;;  %v9069_v48 = vpack.c.bf16 %v365_v61, %v357_v59  ;;  %v172_v59 = vld [vmem:[#allocation9 + $0x138] sm:$0xff] }
  0xa7   :  { %6185 = vmatpush1.bf16.msra.mxu1 %v9036_v25  ;;  %6117 = vmatpush1.bf16.msra.mxu0 %v9045_v0  ;;  %10952 = vst [vmem:[#allocation81_spill] sm:$0xff] %v9063_v22  ;;  %v147_v25 = vld [vmem:[#allocation9 + $0x70] sm:$0xff]  ;;  %v382_v0 = vld [vmem:[#allocation9 + $0x7c8] sm:$0xff]  ;;  %v180_v61 = vld [vmem:[#allocation9 + $0x178] sm:$0xff] }
  0xa8   :  { %6187 = vmatprep.subr.bf16.mxu1 %v9042_v21  ;;  %6119 = vmatprep.subr.bf16.mxu0 %v9051_v49  ;;  %v9066_v21 = vpack.c.bf16 %v148_v47, %v140_v32  ;;  %10954 = vst [vmem:[#allocation83_spill] sm:$0xff] %v9069_v48  ;;  %v9072_v41 = vpack.c.bf16 %v147_v25, %v139_v12  ;;  %v373_v32 = vld [vmem:[#allocation9 + $0x780] sm:$0xff]  ;;  %v138_v49 = vld [vmem:[#allocation9 + $0x28] sm:$0xff] }
  0xa9   :  { %v9075_v6 = vpack.c.bf16 %v382_v0, %v374_v31  ;;  %v381_v47 = vld [vmem:[#allocation9 + $0x7c0] sm:$0xff]  ;;  %v171_v0 = vld [vmem:[#allocation9 + $0x130] sm:$0xff] }
  0xaa   :  { %10953 = vst [vmem:[#allocation82_spill] sm:$0xff] %v9066_v21  ;;  %10955 = vst [vmem:[#allocation84_spill] sm:$0xff] %v9072_v41  ;;  %v9082_v25 = vpack.c.bf16 %v381_v47, %v373_v32  ;;  %v188_v32 = vld [vmem:[#allocation9 + $0x1b8] sm:$0xff] }
  0xab   :  { %6189 = vmatpush1.bf16.msra.mxu1 %v9048_v55  ;;  %6121 = vmatpush1.bf16.msra.mxu0 %v9057_v5  ;;  %10956 = vst [vmem:[#allocation85_spill] sm:$0xff] %v9075_v6  ;;  %v163_v55 = vld [vmem:[#allocation9 + $0xf0] sm:$0xff]  ;;  %v146_v5 = vld [vmem:[#allocation9 + $0x68] sm:$0xff]  ;;  %v196_v47 = vld [vmem:[#allocation9 + $0x1f8] sm:$0xff] }
  0xac   :  { %6191 = vmatprep.subr.bf16.mxu1 %v9054_v62  ;;  %6123 = vmatprep.subr.bf16.mxu0 %v9063_v22  ;;  %v9078_v62 = vpack.c.bf16 %v164_v19, %v156_v13  ;;  %10958 = vst [vmem:[#allocation87_spill] sm:$0xff] %v9082_v25  ;;  %v9085_v31 = vpack.c.bf16 %v163_v55, %v155_v60  ;;  %v137_v13 = vld [vmem:[#allocation9 + $0x20] sm:$0xff]  ;;  %v154_v22 = vld [vmem:[#allocation9 + $0xa8] sm:$0xff] }
  0xad   :  { %v9088_v12 = vpack.c.bf16 %v146_v5, %v138_v49  ;;  %v145_v19 = vld [vmem:[#allocation9 + $0x60] sm:$0xff]  ;;  %v187_v5 = vld [vmem:[#allocation9 + $0x1b0] sm:$0xff] }
  0xae   :  { %10957 = vst [vmem:[#allocation86_spill] sm:$0xff] %v9078_v62  ;;  %10959 = vst [vmem:[#allocation88_spill] sm:$0xff] %v9085_v31  ;;  %v9095_v55 = vpack.c.bf16 %v145_v19, %v137_v13  ;;  %v204_v13 = vld [vmem:[#allocation9 + $0x238] sm:$0xff] }
  0xaf   :  { %6193 = vmatpush1.bf16.msra.mxu1 %v9060_v26  ;;  %6125 = vmatpush1.bf16.msra.mxu0 %v9069_v48  ;;  %10960 = vst [vmem:[#allocation89_spill] sm:$0xff] %v9088_v12  ;;  %v179_v26 = vld [vmem:[#allocation9 + $0x170] sm:$0xff]  ;;  %v162_v48 = vld [vmem:[#allocation9 + $0xe8] sm:$0xff]  ;;  %v212_v19 = vld [vmem:[#allocation9 + $0x278] sm:$0xff] }
  0xb0   :  { %6259 = vmatprep.subr.bf16.mxu1 %v9066_v21  ;;  %6127 = vmatprep.subr.bf16.mxu0 %v9075_v6  ;;  %v9091_v21 = vpack.c.bf16 %v180_v61, %v172_v59  ;;  %10962 = vst [vmem:[#allocation91_spill] sm:$0xff] %v9095_v55  ;;  %v9098_v49 = vpack.c.bf16 %v179_v26, %v171_v0  ;;  %v153_v59 = vld [vmem:[#allocation9 + $0xa0] sm:$0xff]  ;;  %v170_v6 = vld [vmem:[#allocation9 + $0x128] sm:$0xff] }
  0xb1   :  { %v9101_v60 = vpack.c.bf16 %v162_v48, %v154_v22  ;;  %v161_v61 = vld [vmem:[#allocation9 + $0xe0] sm:$0xff]  ;;  %v203_v48 = vld [vmem:[#allocation9 + $0x230] sm:$0xff] }
  0xb2   :  { %536 = vmatmul.mubr.f32.vlgmr.msra.gmra.mrb[0].mxu1 %v8988_v30  ;;  %10961 = vst [vmem:[#allocation90_spill] sm:$0xff] %v9091_v21  ;;  %10963 = vst [vmem:[#allocation92_spill] sm:$0xff] %v9098_v49  ;;  %v9108_v26 = vpack.c.bf16 %v161_v61, %v153_v59  ;;  %v186_v59 = vld [vmem:[#allocation9 + $0x1a8] sm:$0xff] }
  0xb3   :  { %6261 = vmatpush1.bf16.msra.mxu1 %v9072_v41  ;;  %677 = vmatprep.mubr.f32.mxu1 %v8992_v36  ;;  %10964 = vst [vmem:[#allocation93_spill] sm:$0xff] %v9101_v60  ;;  %v195_v41 = vld [vmem:[#allocation9 + $0x1f0] sm:$0xff]  ;;  %v194_v61 = vld [vmem:[#allocation9 + $0x1e8] sm:$0xff] }
  0xb4   :  { %6263 = vmatprep.subr.bf16.mxu1 %v9078_v62  ;;  %6129 = vmatpush1.bf16.msra.mxu0 %v9082_v25  ;;  %v9104_v62 = vpack.c.bf16 %v196_v47, %v188_v32  ;;  %v178_v25 = vld [vmem:[#allocation9 + $0x168] sm:$0xff]  ;;  %10966 = vst [vmem:[#allocation95_spill] sm:$0xff] %v9108_v26  ;;  %v9112_v22 = vpack.c.bf16 %v195_v41, %v187_v5  ;;  %v169_v32 = vld [vmem:[#allocation9 + $0x120] sm:$0xff] }
  0xb5   :  { %6195 = vmatprep.subr.bf16.mxu0 %v9088_v12  ;;  %v9115_v0 = vpack.c.bf16 %v178_v25, %v170_v6  ;;  %v177_v47 = vld [vmem:[#allocation9 + $0x160] sm:$0xff]  ;;  %v219_v6 = vld [vmem:[#allocation9 + $0x2b0] sm:$0xff]  ;;  %v9127_v25 = vpack.c.bf16 %v194_v61, %v186_v59 }
  0xb6   :  { %10965 = vst [vmem:[#allocation94_spill] sm:$0xff] %v9104_v62  ;;  %10967 = vst [vmem:[#allocation96_spill] sm:$0xff] %v9112_v22  ;;  %v9121_v41 = vpack.c.bf16 %v177_v47, %v169_v32  ;;  %v236_v32 = vld [vmem:[#allocation9 + $0x338] sm:$0xff]  ;;  %v235_v59 = vld [vmem:[#allocation9 + $0x330] sm:$0xff] }
  0xb7   :  { %6265 = vmatpush1.bf16.msra.mxu1 %v9085_v31  ;;  %465 = vmatmul.mubr.f32.vlgmr.msra.gmra.mrb[0].mxu0 %v8988_v30  ;;  %10968 = vst [vmem:[#allocation97_spill] sm:$0xff] %v9115_v0  ;;  %v211_v31 = vld [vmem:[#allocation9 + $0x270] sm:$0xff]  ;;  %10972 = vst [vmem:[#allocation101_spill] sm:$0xff] %v9127_v25  ;;  %v244_v47 = vld [vmem:[#allocation9 + $0x378] sm:$0xff] }
  0xb8   :  { %6267 = vmatprep.subr.bf16.mxu1 %v9091_v21  ;;  %6197 = vmatpush1.bf16.msra.mxu0 %v9095_v55  ;;  %v9118_v21 = vpack.c.bf16 %v212_v19, %v204_v13  ;;  %v220_v55 = vld [vmem:[#allocation9 + $0x2b8] sm:$0xff]  ;;  %10970 = vst [vmem:[#allocation99_spill] sm:$0xff] %v9121_v41  ;;  %v9124_v5 = vpack.c.bf16 %v211_v31, %v203_v48  ;;  %v185_v13 = vld [vmem:[#allocation9 + $0x1a0] sm:$0xff] }
  0xb9   :  { %606 = vmatprep.mubr.f32.mxu0 %v8992_v36  ;;  %6199 = vmatprep.subr.bf16.mxu0 %v9101_v60  ;;  %v228_v36 = vld [vmem:[#allocation9 + $0x2f8] sm:$0xff]  ;;  %v193_v19 = vld [vmem:[#allocation9 + $0x1e0] sm:$0xff]  ;;  %v202_v60 = vld [vmem:[#allocation9 + $0x228] sm:$0xff] }
  0xba   :  { %10969 = vst [vmem:[#allocation98_spill] sm:$0xff] %v9118_v21  ;;  %10971 = vst [vmem:[#allocation100_spill] sm:$0xff] %v9124_v5  ;;  %v9133_v31 = vpack.c.bf16 %v193_v19, %v185_v13  ;;  %v252_v13 = vld [vmem:[#allocation9 + $0x3b8] sm:$0xff] }
  0xbb   :  { %6269 = vmatpush1.bf16.msra.mxu1 %v9098_v49  ;;  %v227_v49 = vld [vmem:[#allocation9 + $0x2f0] sm:$0xff]  ;;  %v260_v19 = vld [vmem:[#allocation9 + $0x3f8] sm:$0xff] }
  0xbc   :  { %6271 = vmatprep.subr.bf16.mxu1 %v9104_v62  ;;  %6201 = vmatpush1.bf16.msra.mxu0 %v9108_v26  ;;  %v9130_v62 = vpack.c.bf16 %v228_v36, %v220_v55  ;;  %v210_v26 = vld [vmem:[#allocation9 + $0x268] sm:$0xff]  ;;  %10974 = vst [vmem:[#allocation103_spill] sm:$0xff] %v9133_v31  ;;  %v9136_v48 = vpack.c.bf16 %v227_v49, %v219_v6  ;;  %v201_v55 = vld [vmem:[#allocation9 + $0x220] sm:$0xff] }
  0xbd   :  { %6203 = vmatprep.subr.bf16.mxu0 %v9115_v0  ;;  %v9139_v61 = vpack.c.bf16 %v210_v26, %v202_v60  ;;  %v209_v36 = vld [vmem:[#allocation9 + $0x260] sm:$0xff]  ;;  %v218_v0 = vld [vmem:[#allocation9 + $0x2a8] sm:$0xff]  ;;  %v251_v60 = vld [vmem:[#allocation9 + $0x3b0] sm:$0xff] }
  0xbe   :  { %10973 = vst [vmem:[#allocation102_spill] sm:$0xff] %v9130_v62  ;;  %10975 = vst [vmem:[#allocation104_spill] sm:$0xff] %v9136_v48  ;;  %v9145_v49 = vpack.c.bf16 %v209_v36, %v201_v55  ;;  %v268_v55 = vld [vmem:[#allocation9 + $0x438] sm:$0xff] }
  0xbf   :  { %6273 = vmatpush1.bf16.msra.mxu1 %v9112_v22  ;;  %10976 = vst [vmem:[#allocation105_spill] sm:$0xff] %v9139_v61  ;;  %v243_v22 = vld [vmem:[#allocation9 + $0x370] sm:$0xff]  ;;  %v276_v36 = vld [vmem:[#allocation9 + $0x478] sm:$0xff] }
  0xc0   :  { %6275 = vmatprep.subr.bf16.mxu1 %v9118_v21  ;;  %6205 = vmatpush1.bf16.msra.mxu0 %v9121_v41  ;;  %v9142_v21 = vpack.c.bf16 %v244_v47, %v236_v32  ;;  %v226_v41 = vld [vmem:[#allocation9 + $0x2e8] sm:$0xff]  ;;  %10978 = vst [vmem:[#allocation107_spill] sm:$0xff] %v9145_v49  ;;  %v9148_v6 = vpack.c.bf16 %v243_v22, %v235_v59  ;;  %v217_v32 = vld [vmem:[#allocation9 + $0x2a0] sm:$0xff] }
  0xc1   :  { %6207 = vmatprep.subr.bf16.mxu0 %v9127_v25  ;;  %v9151_v26 = vpack.c.bf16 %v226_v41, %v218_v0  ;;  %v225_v47 = vld [vmem:[#allocation9 + $0x2e0] sm:$0xff]  ;;  %v234_v25 = vld [vmem:[#allocation9 + $0x328] sm:$0xff]  ;;  %v267_v0 = vld [vmem:[#allocation9 + $0x430] sm:$0xff] }
  0xc2   :  { %10977 = vst [vmem:[#allocation106_spill] sm:$0xff] %v9142_v21  ;;  %10979 = vst [vmem:[#allocation108_spill] sm:$0xff] %v9148_v6  ;;  %v9157_v22 = vpack.c.bf16 %v225_v47, %v217_v32  ;;  %v284_v32 = vld [vmem:[#allocation9 + $0x4b8] sm:$0xff] }
  0xc3   :  { %6277 = vmatpush1.bf16.msra.mxu1 %v9124_v5  ;;  %10980 = vst [vmem:[#allocation109_spill] sm:$0xff] %v9151_v26  ;;  %v259_v5 = vld [vmem:[#allocation9 + $0x3f0] sm:$0xff]  ;;  %v292_v47 = vld [vmem:[#allocation9 + $0x4f8] sm:$0xff] }
  0xc4   :  { %6279 = vmatprep.subr.bf16.mxu1 %v9130_v62  ;;  %6209 = vmatpush1.bf16.msra.mxu0 %v9133_v31  ;;  %v9154_v62 = vpack.c.bf16 %v260_v19, %v252_v13  ;;  %v242_v31 = vld [vmem:[#allocation9 + $0x368] sm:$0xff]  ;;  %10982 = vst [vmem:[#allocation111_spill] sm:$0xff] %v9157_v22  ;;  %v9160_v59 = vpack.c.bf16 %v259_v5, %v251_v60  ;;  %v233_v13 = vld [vmem:[#allocation9 + $0x320] sm:$0xff] }
  0xc5   :  { %6211 = vmatprep.subr.bf16.mxu0 %v9139_v61  ;;  %v9163_v41 = vpack.c.bf16 %v242_v31, %v234_v25  ;;  %v241_v19 = vld [vmem:[#allocation9 + $0x360] sm:$0xff]  ;;  %v250_v61 = vld [vmem:[#allocation9 + $0x3a8] sm:$0xff]  ;;  %v283_v25 = vld [vmem:[#allocation9 + $0x4b0] sm:$0xff] }
  0xc6   :  { %10981 = vst [vmem:[#allocation110_spill] sm:$0xff] %v9154_v62  ;;  %10983 = vst [vmem:[#allocation112_spill] sm:$0xff] %v9160_v59  ;;  %v9169_v5 = vpack.c.bf16 %v241_v19, %v233_v13  ;;  %v300_v13 = vld [vmem:[#allocation9 + $0x538] sm:$0xff] }
  0xc7   :  { %6281 = vmatpush1.bf16.msra.mxu1 %v9136_v48  ;;  %10984 = vst [vmem:[#allocation113_spill] sm:$0xff] %v9163_v41  ;;  %v275_v48 = vld [vmem:[#allocation9 + $0x470] sm:$0xff]  ;;  %v308_v19 = vld [vmem:[#allocation9 + $0x578] sm:$0xff] }
  0xc8   :  { %6283 = vmatprep.subr.bf16.mxu1 %v9142_v21  ;;  %6213 = vmatpush1.bf16.msra.mxu0 %v9145_v49  ;;  %v9166_v21 = vpack.c.bf16 %v276_v36, %v268_v55  ;;  %v258_v49 = vld [vmem:[#allocation9 + $0x3e8] sm:$0xff]  ;;  %10986 = vst [vmem:[#allocation115_spill] sm:$0xff] %v9169_v5  ;;  %v9172_v60 = vpack.c.bf16 %v275_v48, %v267_v0  ;;  %v249_v55 = vld [vmem:[#allocation9 + $0x3a0] sm:$0xff] }
  0xc9   :  { %6215 = vmatprep.subr.bf16.mxu0 %v9151_v26  ;;  %v9175_v31 = vpack.c.bf16 %v258_v49, %v250_v61  ;;  %v257_v36 = vld [vmem:[#allocation9 + $0x3e0] sm:$0xff]  ;;  %v266_v26 = vld [vmem:[#allocation9 + $0x428] sm:$0xff]  ;;  %v299_v61 = vld [vmem:[#allocation9 + $0x530] sm:$0xff] }
  0xca   :  { %10985 = vst [vmem:[#allocation114_spill] sm:$0xff] %v9166_v21  ;;  %10987 = vst [vmem:[#allocation116_spill] sm:$0xff] %v9172_v60  ;;  %v9181_v48 = vpack.c.bf16 %v257_v36, %v249_v55  ;;  %v316_v55 = vld [vmem:[#allocation9 + $0x5b8] sm:$0xff] }
  0xcb   :  { %6285 = vmatpush1.bf16.msra.mxu1 %v9148_v6  ;;  %10988 = vst [vmem:[#allocation117_spill] sm:$0xff] %v9175_v31  ;;  %v291_v6 = vld [vmem:[#allocation9 + $0x4f0] sm:$0xff]  ;;  %v324_v36 = vld [vmem:[#allocation9 + $0x5f8] sm:$0xff] }
  0xcc   :  { %6287 = vmatprep.subr.bf16.mxu1 %v9154_v62  ;;  %6217 = vmatpush1.bf16.msra.mxu0 %v9157_v22  ;;  %v9178_v62 = vpack.c.bf16 %v292_v47, %v284_v32  ;;  %v274_v22 = vld [vmem:[#allocation9 + $0x468] sm:$0xff]  ;;  %10990 = vst [vmem:[#allocation119_spill] sm:$0xff] %v9181_v48  ;;  %v9184_v0 = vpack.c.bf16 %v291_v6, %v283_v25  ;;  %v265_v32 = vld [vmem:[#allocation9 + $0x420] sm:$0xff] }
  0xcd   :  { %6219 = vmatprep.subr.bf16.mxu0 %v9163_v41  ;;  %v9187_v49 = vpack.c.bf16 %v274_v22, %v266_v26  ;;  %v273_v47 = vld [vmem:[#allocation9 + $0x460] sm:$0xff]  ;;  %v282_v41 = vld [vmem:[#allocation9 + $0x4a8] sm:$0xff]  ;;  %v315_v26 = vld [vmem:[#allocation9 + $0x5b0] sm:$0xff] }
  0xce   :  { %10989 = vst [vmem:[#allocation118_spill] sm:$0xff] %v9178_v62  ;;  %10991 = vst [vmem:[#allocation120_spill] sm:$0xff] %v9184_v0  ;;  %v9193_v6 = vpack.c.bf16 %v273_v47, %v265_v32  ;;  %v332_v32 = vld [vmem:[#allocation9 + $0x638] sm:$0xff] }
  0xcf   :  { %6289 = vmatpush1.bf16.msra.mxu1 %v9160_v59  ;;  %10992 = vst [vmem:[#allocation121_spill] sm:$0xff] %v9187_v49  ;;  %v307_v59 = vld [vmem:[#allocation9 + $0x570] sm:$0xff]  ;;  %v340_v47 = vld [vmem:[#allocation9 + $0x678] sm:$0xff] }
  0xd0   :  { %6291 = vmatprep.subr.bf16.mxu1 %v9166_v21  ;;  %6221 = vmatpush1.bf16.msra.mxu0 %v9169_v5  ;;  %v9190_v21 = vpack.c.bf16 %v308_v19, %v300_v13  ;;  %v290_v5 = vld [vmem:[#allocation9 + $0x4e8] sm:$0xff]  ;;  %10994 = vst [vmem:[#allocation123_spill] sm:$0xff] %v9193_v6  ;;  %v9196_v25 = vpack.c.bf16 %v307_v59, %v299_v61  ;;  %v281_v13 = vld [vmem:[#allocation9 + $0x4a0] sm:$0xff] }
  0xd1   :  { %6223 = vmatprep.subr.bf16.mxu0 %v9175_v31  ;;  %v9199_v22 = vpack.c.bf16 %v290_v5, %v282_v41  ;;  %v289_v19 = vld [vmem:[#allocation9 + $0x4e0] sm:$0xff]  ;;  %v298_v31 = vld [vmem:[#allocation9 + $0x528] sm:$0xff]  ;;  %v331_v41 = vld [vmem:[#allocation9 + $0x630] sm:$0xff] }
  0xd2   :  { %10993 = vst [vmem:[#allocation122_spill] sm:$0xff] %v9190_v21  ;;  %10995 = vst [vmem:[#allocation124_spill] sm:$0xff] %v9196_v25  ;;  %v9205_v59 = vpack.c.bf16 %v289_v19, %v281_v13  ;;  %v348_v13 = vld [vmem:[#allocation9 + $0x6b8] sm:$0xff] }
  0xd3   :  { %6293 = vmatpush1.bf16.msra.mxu1 %v9172_v60  ;;  %10996 = vst [vmem:[#allocation125_spill] sm:$0xff] %v9199_v22  ;;  %v323_v60 = vld [vmem:[#allocation9 + $0x5f0] sm:$0xff]  ;;  %v356_v19 = vld [vmem:[#allocation9 + $0x6f8] sm:$0xff] }
  0xd4   :  { %6295 = vmatprep.subr.bf16.mxu1 %v9178_v62  ;;  %6225 = vmatpush1.bf16.msra.mxu0 %v9181_v48  ;;  %v9202_v62 = vpack.c.bf16 %v324_v36, %v316_v55  ;;  %v306_v48 = vld [vmem:[#allocation9 + $0x568] sm:$0xff]  ;;  %10998 = vst [vmem:[#allocation127_spill] sm:$0xff] %v9205_v59  ;;  %v9208_v61 = vpack.c.bf16 %v323_v60, %v315_v26  ;;  %v297_v55 = vld [vmem:[#allocation9 + $0x520] sm:$0xff] }
  0xd5   :  { %6227 = vmatprep.subr.bf16.mxu0 %v9187_v49  ;;  %v9211_v5 = vpack.c.bf16 %v306_v48, %v298_v31  ;;  %v305_v36 = vld [vmem:[#allocation9 + $0x560] sm:$0xff]  ;;  %v314_v49 = vld [vmem:[#allocation9 + $0x5a8] sm:$0xff]  ;;  %v347_v31 = vld [vmem:[#allocation9 + $0x6b0] sm:$0xff] }
  0xd6   :  { %10997 = vst [vmem:[#allocation126_spill] sm:$0xff] %v9202_v62  ;;  %10999 = vst [vmem:[#allocation128_spill] sm:$0xff] %v9208_v61  ;;  %v9217_v60 = vpack.c.bf16 %v305_v36, %v297_v55  ;;  %v364_v55 = vld [vmem:[#allocation9 + $0x738] sm:$0xff] }
  0xd7   :  { %6297 = vmatpush1.bf16.msra.mxu1 %v9184_v0  ;;  %11000 = vst [vmem:[#allocation129_spill] sm:$0xff] %v9211_v5  ;;  %v339_v0 = vld [vmem:[#allocation9 + $0x670] sm:$0xff]  ;;  %v372_v36 = vld [vmem:[#allocation9 + $0x778] sm:$0xff] }
  0xd8   :  { %6299 = vmatprep.subr.bf16.mxu1 %v9190_v21  ;;  %6229 = vmatpush1.bf16.msra.mxu0 %v9193_v6  ;;  %v9214_v21 = vpack.c.bf16 %v340_v47, %v332_v32  ;;  %v322_v6 = vld [vmem:[#allocation9 + $0x5e8] sm:$0xff]  ;;  %11002 = vst [vmem:[#allocation131_spill] sm:$0xff] %v9217_v60  ;;  %v9220_v26 = vpack.c.bf16 %v339_v0, %v331_v41  ;;  %v313_v32 = vld [vmem:[#allocation9 + $0x5a0] sm:$0xff] }
  0xd9   :  { %6231 = vmatprep.subr.bf16.mxu0 %v9199_v22  ;;  %v9223_v48 = vpack.c.bf16 %v322_v6, %v314_v49  ;;  %v321_v47 = vld [vmem:[#allocation9 + $0x5e0] sm:$0xff]  ;;  %v330_v22 = vld [vmem:[#allocation9 + $0x628] sm:$0xff]  ;;  %v363_v49 = vld [vmem:[#allocation9 + $0x730] sm:$0xff] }
  0xda   :  { %11001 = vst [vmem:[#allocation130_spill] sm:$0xff] %v9214_v21  ;;  %11003 = vst [vmem:[#allocation132_spill] sm:$0xff] %v9220_v26  ;;  %v9229_v0 = vpack.c.bf16 %v321_v47, %v313_v32  ;;  %v380_v32 = vld [vmem:[#allocation9 + $0x7b8] sm:$0xff] }
  0xdb   :  { %6301 = vmatpush1.bf16.msra.mxu1 %v9196_v25  ;;  %11004 = vst [vmem:[#allocation133_spill] sm:$0xff] %v9223_v48  ;;  %v355_v25 = vld [vmem:[#allocation9 + $0x6f0] sm:$0xff]  ;;  %v388_v47 = vld [vmem:[#allocation9 + $0x7f8] sm:$0xff] }
  0xdc   :  { %6303 = vmatprep.subr.bf16.mxu1 %v9202_v62  ;;  %6233 = vmatpush1.bf16.msra.mxu0 %v9205_v59  ;;  %v9226_v62 = vpack.c.bf16 %v356_v19, %v348_v13  ;;  %v338_v59 = vld [vmem:[#allocation9 + $0x668] sm:$0xff]  ;;  %11006 = vst [vmem:[#allocation135_spill] sm:$0xff] %v9229_v0  ;;  %v9232_v41 = vpack.c.bf16 %v355_v25, %v347_v31  ;;  %v329_v13 = vld [vmem:[#allocation9 + $0x620] sm:$0xff] }
  0xdd   :  { %6235 = vmatprep.subr.bf16.mxu0 %v9211_v5  ;;  %v9235_v6 = vpack.c.bf16 %v338_v59, %v330_v22  ;;  %v337_v19 = vld [vmem:[#allocation9 + $0x660] sm:$0xff]  ;;  %v346_v5 = vld [vmem:[#allocation9 + $0x6a8] sm:$0xff]  ;;  %v379_v22 = vld [vmem:[#allocation9 + $0x7b0] sm:$0xff] }
  0xde   :  { %11005 = vst [vmem:[#allocation134_spill] sm:$0xff] %v9226_v62  ;;  %11007 = vst [vmem:[#allocation136_spill] sm:$0xff] %v9232_v41  ;;  %v9241_v25 = vpack.c.bf16 %v337_v19, %v329_v13  ;;  %v9262_v19 = vld [vmem:[#allocation7 + $0x8] sm:$0xff] }
  0xdf   :  { %6305 = vmatpush1.bf16.msra.mxu1 %v9208_v61  ;;  %11008 = vst [vmem:[#allocation137_spill] sm:$0xff] %v9235_v6  ;;  %v371_v61 = vld [vmem:[#allocation9 + $0x770] sm:$0xff]  ;;  %11017 = vst [vmem:[#allocation146_spill] sm:$0xff] %v9262_v19 }
  0xe0   :  { %6307 = vmatprep.subr.bf16.mxu1 %v9214_v21  ;;  %6237 = vmatpush1.bf16.msra.mxu0 %v9217_v60  ;;  %v9238_v21 = vpack.c.bf16 %v372_v36, %v364_v55  ;;  %v354_v60 = vld [vmem:[#allocation9 + $0x6e8] sm:$0xff]  ;;  %11010 = vst [vmem:[#allocation139_spill] sm:$0xff] %v9241_v25  ;;  %v9244_v31 = vpack.c.bf16 %v371_v61, %v363_v49  ;;  %v345_v55 = vld [vmem:[#allocation9 + $0x6a0] sm:$0xff] }
  0xe1   :  { %6239 = vmatprep.subr.bf16.mxu0 %v9223_v48  ;;  %v9247_v59 = vpack.c.bf16 %v354_v60, %v346_v5  ;;  %v353_v36 = vld [vmem:[#allocation9 + $0x6e0] sm:$0xff]  ;;  %v362_v48 = vld [vmem:[#allocation9 + $0x728] sm:$0xff] }
  0xe2   :  { %11009 = vst [vmem:[#allocation138_spill] sm:$0xff] %v9238_v21  ;;  %11011 = vst [vmem:[#allocation140_spill] sm:$0xff] %v9244_v31  ;;  %v9253_v13 = vpack.c.bf16 %v353_v36, %v345_v55  ;;  %v361_v60 = vld [vmem:[#allocation9 + $0x720] sm:$0xff]  ;;  %v9274_v36 = vld [vmem:[#allocation7 + $0x18] sm:$0xff] }
  0xe3   :  { %6309 = vmatpush1.bf16.msra.mxu1 %v9220_v26  ;;  %11012 = vst [vmem:[#allocation141_spill] sm:$0xff] %v9247_v59  ;;  %v387_v26 = vld [vmem:[#allocation9 + $0x7f0] sm:$0xff]  ;;  %v369_v49 = vld [vmem:[#allocation9 + $0x760] sm:$0xff] }
  0xe4   :  { %6311 = vmatprep.subr.bf16.mxu1 %v9226_v62  ;;  %6241 = vmatpush1.bf16.msra.mxu0 %v9229_v0  ;;  %v9250_v62 = vpack.c.bf16 %v388_v47, %v380_v32  ;;  %v370_v0 = vld [vmem:[#allocation9 + $0x768] sm:$0xff]  ;;  %11014 = vst [vmem:[#allocation143_spill] sm:$0xff] %v9253_v13  ;;  %v9256_v61 = vpack.c.bf16 %v387_v26, %v379_v22  ;;  %v377_v26 = vld [vmem:[#allocation9 + $0x7a0] sm:$0xff] }
  0xe5   :  { %6243 = vmatprep.subr.bf16.mxu0 %v9235_v6  ;;  %v9259_v5 = vpack.c.bf16 %v370_v0, %v362_v48  ;;  %v378_v32 = vld [vmem:[#allocation9 + $0x7a8] sm:$0xff]  ;;  %v9265_v55 = vpack.c.bf16 %v369_v49, %v361_v60  ;;  %v385_v22 = vld [vmem:[#allocation9 + $0x7e0] sm:$0xff]  ;;  %v11021_v49 = vmov 0.0  }
  0xe6   :  { %11013 = vst [vmem:[#allocation142_spill] sm:$0xff] %v9250_v62  ;;  %11015 = vst [vmem:[#allocation144_spill] sm:$0xff] %v9256_v61  ;;  %v386_v47 = vld [vmem:[#allocation9 + $0x7e8] sm:$0xff]  ;;  %v9270_v48 = vld [vmem:[#allocation7] sm:$0xff]  ;;  %v9278_v60 = vpack.c.bf16 %v385_v22, %v377_v26 }
  0xe7   :  { %6313 = vmatpush1.bf16.msra.mxu1 %v9232_v41  ;;  %11016 = vst [vmem:[#allocation145_spill] sm:$0xff] %v9259_v5  ;;  %11018 = vst [vmem:[#allocation147_spill] sm:$0xff] %v9265_v55  ;;  %v9272_v0 = vpack.c.bf16 %v386_v47, %v378_v32  ;;  %v9286_v32 = vld [vmem:[#allocation7 + $0x28] sm:$0xff]  ;;  %v9293_v47 = vld [vmem:[#allocation7 + $0x20] sm:$0xff] }
  0xe8   :  { %6315 = vmatprep.subr.bf16.mxu1 %v9238_v21  ;;  %6245 = vmatpush1.bf16.msra.mxu0 %v9241_v25  ;;  %11020 = vst [vmem:[#allocation149_spill] sm:$0xff] %v9278_v60  ;;  %v9296_v26 = vld [vmem:[#allocation7 + $0x38] sm:$0xff]  ;;  %v9304_v22 = vld [vmem:[#allocation7 + $0x30] sm:$0xff] }
  0xe9   :  { %6247 = vmatprep.subr.bf16.mxu0 %v9247_v59  ;;  %11019 = vst [vmem:[#allocation148_spill] sm:$0xff] %v9272_v0 }
  0xeb   :  { %6317 = vmatpush1.bf16.msra.mxu1 %v9244_v31 }
  0xec   :  { %6319 = vmatprep.subr.bf16.mxu1 %v9250_v62  ;;  %6249 = vmatpush1.bf16.msra.mxu0 %v9253_v13 }
  0xed   :  { %6251 = vmatprep.subr.bf16.mxu0 %v9259_v5 }
  0xef   :  { %6321 = vmatpush1.bf16.msra.mxu1 %v9256_v61  ;;  %v124_v61 = vld [vmem:[#allocation4] sm:$0x3] }
  0xf0   :  { %688 = vmatprep.subr.mxu1 %v9262_v19  ;;  %6253 = vmatpush1.bf16.msra.mxu0 %v9265_v55  ;;  %v9283_v19 = vld [vmem:[#allocation7 + $0x10] sm:$0xff] }
  0xf1   :  { %6255 = vmatprep.subr.bf16.mxu0 %v9272_v0 }
  0xf2   :  { %678 = vmatmul.mubr.f32.vlgmr.msra.gmra.mrb[2].mxu1 %v8988_v30 }
  0xf3   :  { %689 = vmatpush1.msra.mxu1 %v9270_v48  ;;  %752 = vmatprep.mubr.f32.mxu1 %v11021_v49 }
  0xf4   :  { %759 = vmatprep.subr.mxu1 %v9274_v36  ;;  %6257 = vmatpush1.bf16.msra.mxu0 %v9278_v60 }
  0xf5   :  { %6323 = vmatprep.subr.bf16.mxu0 %v8894_v27 }
  0xf6   :  { %5840 = vmatmul.mubr.msk.f32.vlgmr.msra.gmra.mrb[4].mxu1 %vm684_vm0, %v124_v61 }
  0xf7   :  { %760 = vmatpush1.msra.mxu1 %v9283_v19  ;;  %823 = vmatprep.mubr.f32.mxu1 %v11021_v49 }
  0xf8   :  { %830 = vmatprep.subr.mxu1 %v9286_v32  ;;  %607 = vmatmul.mubr.f32.vlgmr.msra.gmra.mrb[2].mxu0 %v8988_v30  ;;  %v11022_v30 = vld [vmem:[#allocation54_spill] sm:$0xff] }
  0xf9   :  { %6325 = vmatpush1.bf16.msra.mxu0 %v8896_v28 }
  0xfa   :  { %5841 = vmatmul.mubr.msk.f32.vlgmr.msra.gmra.mrb[0].mxu1 %vm684_vm0, %v124_v61  ;;  %6327 = vmatprep.subr.bf16.mxu0 %v8902_v34 }
  0xfb   :  { %831 = vmatpush1.msra.mxu1 %v9293_v47  ;;  %894 = vmatprep.mubr.f32.mxu1 %v11021_v49 }
  0xfc   :  { %901 = vmatprep.subr.mxu1 %v9296_v26 }
  0xfd   :  { %6329 = vmatpush1.bf16.msra.mxu0 %v8905_v37 }
  0xfe   :  { %5842 = vmatmul.mubr.msk.f32.vlgmr.msra.gmra.mrb[6].mxu1 %vm684_vm0, %v124_v61  ;;  %6331 = vmatprep.subr.bf16.mxu0 %v8914_v45 }
  0xff   :  { %902 = vmatpush1.msra.mxu1 %v9304_v22  ;;  %965 = vmatprep.mubr.f32.mxu1 %v11021_v49 }
 0x100   :  { %6387 = vmatprep.subr.bf16.mxu1 %v8878_v4 }
 0x101   :  { %6333 = vmatpush1.bf16.msra.mxu0 %v8917_v50 }
 0x102   :  { %5843 = vmatmul.mubr.msk.f32.vlgmr.msra.gmra.mrb[2].mxu1 %vm684_vm0, %v124_v61  ;;  %6335 = vmatprep.subr.bf16.mxu0 %v8923_v54  ;;  %v11023_v61 = vld [vmem:[#allocation71_spill] sm:$0xff] }
 0x103   :  { %6389 = vmatpush1.bf16.msra.mxu1 %v8880_v8 }
 0x104   :  { %6391 = vmatprep.subr.bf16.mxu1 %v8882_v9 }
 0x105   :  { %6337 = vmatpush1.bf16.msra.mxu0 %v8929_v63 }
 0x106   :  { %6339 = vmatprep.subr.bf16.mxu0 %v8935_v3 }
 0x107   :  { %6393 = vmatpush1.bf16.msra.mxu1 %v8886_v14 }
 0x108   :  { %6395 = vmatprep.subr.bf16.mxu1 %v8889_v15 }
 0x109   :  { %6341 = vmatpush1.bf16.msra.mxu0 %v8941_v17 }
 0x10a   :  { %6343 = vmatprep.subr.bf16.mxu0 %v8947_v20 }
 0x10b   :  { %6397 = vmatpush1.bf16.msra.mxu1 %v8892_v24 }
 0x10c   :  { %6399 = vmatprep.subr.bf16.mxu1 %v8899_v29 }
 0x10d   :  { %6345 = vmatpush1.bf16.msra.mxu0 %v8953_v33 }
 0x10e   :  { %6347 = vmatprep.subr.bf16.mxu0 %v8959_v39 }
 0x10f   :  { %6401 = vmatpush1.bf16.msra.mxu1 %v8908_v38 }
 0x110   :  { %6403 = vmatprep.subr.bf16.mxu1 %v8912_v42 }
 0x111   :  { %6349 = vmatpush1.bf16.msra.mxu0 %v8965_v51 }
 0x112   :  { %6351 = vmatprep.subr.bf16.mxu0 %v8971_v56 }
 0x113   :  { %6405 = vmatpush1.bf16.msra.mxu1 %v8920_v52 }
 0x114   :  { %6407 = vmatprep.subr.bf16.mxu1 %v8926_v57 }
 0x115   :  { %6353 = vmatpush1.bf16.msra.mxu0 %v8977_v11 }
 0x116   :  { %6355 = vmatprep.subr.bf16.mxu0 %v8983_v16 }
 0x117   :  { %6409 = vmatpush1.bf16.msra.mxu1 %v8932_v1 }
 0x118   :  { %6411 = vmatprep.subr.bf16.mxu1 %v8938_v7 }
 0x119   :  { %6357 = vmatpush1.bf16.msra.mxu0 %v8995_v40 }
 0x11a   :  { %6359 = vmatprep.subr.bf16.mxu0 %v9001_v46 }
 0x11b   :  { %6413 = vmatpush1.bf16.msra.mxu1 %v8944_v18  ;;  %v11024_v18 = vld [vmem:[#allocation56_spill] sm:$0xff] }
 0x11c   :  { %6415 = vmatprep.subr.bf16.mxu1 %v8950_v23  ;;  %v11025_v23 = vld [vmem:[#allocation73_spill] sm:$0xff] }
 0x11d   :  { %6361 = vmatpush1.bf16.msra.mxu0 %v9009_v2  ;;  %v11026_v2 = vld [vmem:[#allocation58_spill] sm:$0xff] }
 0x11e   :  { %6363 = vmatprep.subr.bf16.mxu0 %v9015_v10  ;;  %v11028_v10 = vld [vmem:[#allocation60_spill] sm:$0xff] }
 0x11f   :  { %6417 = vmatpush1.bf16.msra.mxu1 %v8956_v35  ;;  %v11027_v35 = vld [vmem:[#allocation75_spill] sm:$0xff] }
 0x120   :  { %6419 = vmatprep.subr.bf16.mxu1 %v8962_v43  ;;  %v11029_v43 = vld [vmem:[#allocation77_spill] sm:$0xff] }
 0x121   :  { %6365 = vmatpush1.bf16.msra.mxu0 %v9021_v44  ;;  %v11030_v44 = vld [vmem:[#allocation62_spill] sm:$0xff] }
 0x122   :  { %6367 = vmatprep.subr.bf16.mxu0 %v9027_v58  ;;  %v11032_v58 = vld [vmem:[#allocation64_spill] sm:$0xff] }
 0x123   :  { %6421 = vmatpush1.bf16.msra.mxu1 %v8968_v53  ;;  %v11031_v53 = vld [vmem:[#allocation79_spill] sm:$0xff] }
 0x124   :  { %6423 = vmatprep.subr.bf16.mxu1 %v11022_v30  ;;  %v11033_v30 = vld [vmem:[#allocation81_spill] sm:$0xff] }
 0x125   :  { %6369 = vmatpush1.bf16.msra.mxu0 %v11023_v61  ;;  %v11034_v61 = vld [vmem:[#allocation66_spill] sm:$0xff] }
 0x126   :  { %6371 = vmatprep.subr.bf16.mxu0 %v11025_v23  ;;  %v11036_v23 = vld [vmem:[#allocation68_spill] sm:$0xff] }
 0x127   :  { %6425 = vmatpush1.bf16.msra.mxu1 %v11024_v18  ;;  %v11035_v18 = vld [vmem:[#allocation83_spill] sm:$0xff] }
 0x128   :  { %6427 = vmatprep.subr.bf16.mxu1 %v11026_v2  ;;  %v11037_v2 = vld [vmem:[#allocation85_spill] sm:$0xff] }
 0x129   :  { %6373 = vmatpush1.bf16.msra.mxu0 %v11027_v35  ;;  %v11038_v35 = vld [vmem:[#allocation70_spill] sm:$0xff] }
 0x12a   :  { %6375 = vmatprep.subr.bf16.mxu0 %v11029_v43  ;;  %v11040_v43 = vld [vmem:[#allocation72_spill] sm:$0xff] }
 0x12b   :  { %6429 = vmatpush1.bf16.msra.mxu1 %v11028_v10  ;;  %v11039_v10 = vld [vmem:[#allocation87_spill] sm:$0xff] }
 0x12c   :  { %6431 = vmatprep.subr.bf16.mxu1 %v11030_v44  ;;  %v11041_v44 = vld [vmem:[#allocation74_spill] sm:$0xff] }
 0x12d   :  { %6377 = vmatpush1.bf16.msra.mxu0 %v11031_v53  ;;  %v974_v53 = vlaneseq }
 0x12e   :  { %6379 = vmatprep.subr.bf16.mxu0 %v11033_v30  ;;  %v11043_v30 = vld [vmem:[#allocation78_spill] sm:$0xff] }
 0x12f   :  { %6433 = vmatpush1.bf16.msra.mxu1 %v11032_v58  ;;  %v11042_v58 = vld [vmem:[#allocation76_spill] sm:$0xff] }
 0x130   :  { %6435 = vmatprep.subr.bf16.mxu1 %v11034_v61  ;;  %v11044_v61 = vld [vmem:[#allocation80_spill] sm:$0xff] }
 0x131   :  { %6381 = vmatpush1.bf16.msra.mxu0 %v11035_v18  ;;  %v11045_v18 = vld [vmem:[#allocation82_spill] sm:$0xff] }
 0x132   :  { %6383 = vmatprep.subr.bf16.mxu0 %v11037_v2 }
 0x133   :  { %6437 = vmatpush1.bf16.msra.mxu1 %v11036_v23 }
 0x134   :  { %6439 = vmatprep.subr.bf16.mxu1 %v11038_v35  ;;  %v975_v35 = vshrl.u32 %v974_v53, 7 }
 0x135   :  { %6385 = vmatpush1.bf16.msra.mxu0 %v11039_v10 }
 0x136   :  { %6451 = vmatprep.subr.bf16.mxu0 %v9088_v12  ;;  %v976_v7 = vsub.s32 0, %v975_v35  ;;  %v980_v12 = vsub.s32 1, %v975_v35  ;;  %v984_v10 = vsub.s32 2, %v975_v35  ;;  %v992_v42 = vsub.s32 4, %v975_v35 }
 0x137   :  { %6441 = vmatpush1.bf16.msra.mxu1 %v11040_v43  ;;  %v972_v43 = vld [vmem:[%s10571_s3] sm:$0xff]  ;;  %v1000_v51 = vsub.s32 6, %v975_v35 }
 0x138   :  { %6443 = vmatprep.subr.bf16.mxu1 %v11041_v44  ;;  %v988_v44 = vsub.s32 3, %v975_v35  ;;  %v9377_v1 = vrot.slane %v972_v43, %v976_v7 }
 0x13a   :  { %11046 = vst [vmem:[#allocation150_spill] sm:$0xff] %v9377_v1  ;;  %v9383_v57 = vrot.slane %v972_v43, %v988_v44 }
 0x13b   :  { %6445 = vmatpush1.bf16.msra.mxu1 %v11042_v58 }
 0x13c   :  { %6447 = vmatprep.subr.bf16.mxu1 %v11043_v30  ;;  %v9379_v30 = vrot.slane %v972_v43, %v980_v12  ;;  %11049 = vst [vmem:[#allocation153_spill] sm:$0xff] %v9383_v57 }
 0x13e   :  { %11047 = vst [vmem:[#allocation151_spill] sm:$0xff] %v9379_v30 }
 0x13f   :  { %6449 = vmatpush1.bf16.msra.mxu1 %v11044_v61 }
 0x140   :  { %6515 = vmatprep.subr.bf16.mxu1 %v11045_v18  ;;  %v9381_v18 = vrot.slane %v972_v43, %v984_v10 }
 0x142   :  { %11048 = vst [vmem:[#allocation152_spill] sm:$0xff] %v9381_v18 }
 0x18a   :  { %v466_v23 = vpop.f32.mrb[0].mxu0 }
 0x18b   :  { %v468_v2 = vpop.f32.mrb[1].mxu0 }
 0x1c9   :  { %v754_v58 = vpop.f32.mrb[4].mxu1 }
 0x1ca   :  { %v755_v61 = vadd.f32 %v754_v58, %v466_v23  ;;  %v756_v46 = vpop.f32.mrb[5].mxu1  ;;  %v996_v23 = vsub.s32 5, %v975_v35 }
 0x1cb   :  { %v757_v40 = vadd.f32 %v756_v46, %v468_v2  ;;  %v608_v52 = vpop.f32.mrb[2].mxu0  ;;  %v1004_v46 = vsub.s32 7, %v975_v35 }
 0x1cc   :  { %v1014_v53 = vadd.f32 %v9377_v1, %v755_v61  ;;  %v610_v38 = vpop.f32.mrb[3].mxu0  ;;  %v9389_v1 = vrot.slane %v972_v43, %v992_v42 }
 0x1cd   :  { %v1015_v16 = vadd.f32 %v9379_v30, %v757_v40  ;;  %v825_v11 = vpop.f32.mrb[0].mxu1  ;;  %v9391_v30 = vrot.slane %v972_v43, %v1000_v51 }
 0x1ce   :  { %v5844_v7 = vmul.f32 -1.442695, %v1014_v53  ;;  %v1016_v56 = vadd.f32 %v9381_v18, %v825_v11  ;;  %v827_v12 = vpop.f32.mrb[1].mxu1  ;;  %v9393_v11 = vrot.slane %v972_v43, %v996_v23  ;;  %v9395_v18 = vrot.slane %v972_v43, %v1004_v46 }
 0x1cf   :  { %v5845_v58 = vmul.f32 -1.442695, %v1015_v16  ;;  %v1017_v10 = vadd.f32 %v9383_v57, %v827_v12 }
 0x1d0   :  { %8274 = vpow2.f32 %v5844_v7  ;;  %v5846_v2 = vmul.f32 -1.442695, %v1016_v56  ;;  %11050 = vst [vmem:[#allocation154_spill] sm:$0xff] %v9393_v11  ;;  %11051 = vst [vmem:[#allocation155_spill] sm:$0xff] %v9395_v18 }
 0x1d1   :  { %8276 = vpow2.f32 %v5845_v58  ;;  %v5847_v44 = vmul.f32 -1.442695, %v1017_v10  ;;  %v896_v61 = vpop.f32.mrb[6].mxu1 }
 0x1d2   :  { %8278 = vpow2.f32 %v5846_v2  ;;  %v898_v40 = vpop.f32.mrb[7].mxu1  ;;  %v897_v53 = vadd.f32 %v896_v61, %v608_v52 }
 0x1d3   :  { %8280 = vpow2.f32 %v5847_v44  ;;  %v899_v16 = vadd.f32 %v898_v40, %v610_v38 }
 0x1d4   :  { %v1018_v35 = vadd.f32 %v9389_v1, %v897_v53 }
 0x1d5   :  { %v967_v12 = vpop.f32.mrb[2].mxu1  ;;  %v1019_v42 = vadd.f32 %v9393_v11, %v899_v16  ;;  %v5850_v16 = vld.sshfl [vmem:[#allocation3] sm:$0x33 pattern:$0x76325410] }
 0x1d6   :  { %v1020_v56 = vadd.f32 %v9391_v30, %v967_v12  ;;  %v969_v7 = vpop.f32.mrb[3].mxu1  ;;  %8282 = vtanh.f32 %v1018_v35 }
 0x1d7   :  { %v1021_v58 = vadd.f32 %v9395_v18, %v969_v7  ;;  %8284 = vtanh.f32 %v1019_v42  ;;  %v1068_v7 = vcombine.high %v5850_v16, %v5850_v16 }
 0x1d8   :  { %v5848_v10 = vmul.f32 -1.442695, %v1020_v56 }
 0x1d9   :  { %v5849_v51 = vmul.f32 -1.442695, %v1021_v58 }
 0x1da   :  { %v8275_v52 = vpop.eup %8274  ;;  %8286 = vpow2.f32 %v5848_v10 }
 0x1db   :  { %v8277_v23 = vpop.eup %8276  ;;  %v1028_v2 = vadd.f32 1.0, %v8275_v52  ;;  %8288 = vpow2.f32 %v5849_v51 }
 0x1dc   :  { %v8279_v43 = vpop.eup %8278  ;;  %v1029_v38 = vadd.f32 1.0, %v8277_v23 }
 0x1dd   :  { %v8281_v46 = vpop.eup %8280  ;;  %8290 = vrcp.f32 %v1028_v2  ;;  %v1040_v44 = vadd.f32 1.0, %v8279_v43 }
 0x1de   :  { %8292 = vrcp.f32 %v1029_v38  ;;  %v1041_v61 = vadd.f32 1.0, %v8281_v46 }
 0x1df   :  { %8294 = vrcp.f32 %v1040_v44 }
 0x1e0   :  { %8296 = vrcp.f32 %v1041_v61  ;;  %v8283_v40 = vpop.eup %8282 }
 0x1e1   :  { %v8285_v53 = vpop.eup %8284 }
 0x1e4   :  { %v8287_v12 = vpop.eup %8286 }
 0x1e5   :  { %v8289_v35 = vpop.eup %8288  ;;  %v1054_v43 = vadd.f32 1.0, %v8287_v12  ;;  %v11054_v12 = vld [vmem:[#allocation93_spill] sm:$0xff] }
 0x1e6   :  { %v1055_v52 = vadd.f32 1.0, %v8289_v35 }
 0x1e7   :  { %v8291_v56 = vpop.eup %8290 }
 0x1e8   :  { %v8293_v42 = vpop.eup %8292  ;;  %v1073_v58 = vmul.f32 %v8291_v56, %v8283_v40  ;;  %8298 = vrcp.f32 %v1055_v52  ;;  %v11059_v52 = vld [vmem:[#allocation90_spill] sm:$0xff] }
 0x1e9   :  { %v8295_v10 = vpop.eup %8294  ;;  %v1074_v23 = vmul.f32 %v8293_v42, %v8285_v53  ;;  %v11056_v42 = vld [vmem:[#allocation95_spill] sm:$0xff] }
 0x1ea   :  { %v8297_v51 = vpop.eup %8296  ;;  %v1071_v18 = vmul.f32 %v8295_v10, %v5850_v16  ;;  %v11053_v16 = vld [vmem:[#allocation84_spill] sm:$0xff]  ;;  %v11058_v10 = vld [vmem:[#allocation97_spill] sm:$0xff] }
 0x1eb   :  { %v1072_v2 = vmul.f32 %v8297_v51, %v1068_v7  ;;  %v11055_v7 = vld [vmem:[#allocation86_spill] sm:$0xff]  ;;  %v11061_v51 = vld [vmem:[#allocation92_spill] sm:$0xff] }
 0x1ec   :  { %v9401_v38 = vadd.f32 %v1073_v58, %v1071_v18  ;;  %v11052_v18 = vld [vmem:[#allocation91_spill] sm:$0xff]  ;;  %v11057_v58 = vld [vmem:[#allocation88_spill] sm:$0xff] }
 0x1ed   :  { %v9403_v46 = vadd.f32 %v1074_v23, %v1072_v2  ;;  %v11060_v23 = vld [vmem:[#allocation99_spill] sm:$0xff]  ;;  %v11062_v2 = vld [vmem:[#allocation101_spill] sm:$0xff] }
 0x1ee   :  { %8300 = vtanh.f32 %v9401_v38 }
 0x1ef   :  { %8302 = vtanh.f32 %v9403_v46 }
 0x1f0   :  { %8304 = vrcp.f32 %v1054_v43  ;;  %v11063_v43 = vld [vmem:[#allocation94_spill] sm:$0xff] }
 0x1f2   :  { %v8299_v44 = vpop.eup %8298 }
 0x1f8   :  { %v8301_v61 = vpop.eup %8300 }
 0x1f9   :  { %v8303_v40 = vpop.eup %8302 }
 0x1fa   :  { %v8305_v56 = vpop.eup %8304  ;;  %v1080_v35 = vmul.f32 %v8303_v40, %v8299_v44  ;;  %v11064_v44 = vld [vmem:[#allocation103_spill] sm:$0xff]  ;;  %v11066_v40 = vld [vmem:[#allocation105_spill] sm:$0xff] }
 0x1fb   :  { %v9407_v53 = vmul.f32 %v8305_v56, %v8301_v61  ;;  %v11065_v61 = vld [vmem:[#allocation96_spill] sm:$0xff]  ;;  %v11067_v56 = vld [vmem:[#allocation98_spill] sm:$0xff] }
 0x1fc   :  { %1147 = vmatprep.mubr.f32.mxu0 %v1080_v35  ;;  %1218 = vmatprep.mubr.f32.mxu1 %v1080_v35 }
 0x1fd   :  { %1148 = vmatmul.mubr.f32.vlgmr.msra.gmra.mrb[4].mxu0 %v9407_v53  ;;  %1219 = vmatmul.mubr.f32.vlgmr.msra.gmra.mrb[8].mxu1 %v9407_v53 }
 0x1fe   :  { %6453 = vmatpush1.bf16.msra.mxu0 %v11052_v18  ;;  %6517 = vmatpush1.bf16.msra.mxu1 %v11053_v16 }
 0x1ff   :  { %1289 = vmatprep.mubr.f32.mxu0 %v1080_v35  ;;  %1360 = vmatprep.mubr.f32.mxu1 %v1080_v35  ;;  %v11068_v35 = vld [vmem:[#allocation107_spill] sm:$0xff] }
 0x200   :  { %6455 = vmatprep.subr.bf16.mxu0 %v11054_v12  ;;  %6519 = vmatprep.subr.bf16.mxu1 %v11055_v7 }
 0x202   :  { %6457 = vmatpush1.bf16.msra.mxu0 %v11056_v42  ;;  %6521 = vmatpush1.bf16.msra.mxu1 %v11057_v58 }
 0x203   :  { %6459 = vmatprep.subr.bf16.mxu0 %v11058_v10  ;;  %6523 = vmatprep.subr.bf16.mxu1 %v11059_v52  ;;  %v11069_v10 = vld [vmem:[#allocation100_spill] sm:$0xff]  ;;  %v11070_v52 = vld [vmem:[#allocation109_spill] sm:$0xff] }
 0x206   :  { %6461 = vmatpush1.bf16.msra.mxu0 %v11060_v23  ;;  %6525 = vmatpush1.bf16.msra.mxu1 %v11061_v51  ;;  %v11071_v23 = vld [vmem:[#allocation102_spill] sm:$0xff]  ;;  %v11072_v51 = vld [vmem:[#allocation111_spill] sm:$0xff] }
 0x207   :  { %6463 = vmatprep.subr.bf16.mxu0 %v11062_v2  ;;  %6527 = vmatprep.subr.bf16.mxu1 %v11063_v43  ;;  %v11073_v2 = vld [vmem:[#allocation104_spill] sm:$0xff]  ;;  %v11074_v43 = vld [vmem:[#allocation113_spill] sm:$0xff] }
 0x20a   :  { %6465 = vmatpush1.bf16.msra.mxu0 %v11064_v44  ;;  %6529 = vmatpush1.bf16.msra.mxu1 %v11065_v61  ;;  %v11075_v44 = vld [vmem:[#allocation106_spill] sm:$0xff]  ;;  %v11076_v61 = vld [vmem:[#allocation115_spill] sm:$0xff] }
 0x20b   :  { %6467 = vmatprep.subr.bf16.mxu0 %v11066_v40  ;;  %6531 = vmatprep.subr.bf16.mxu1 %v11067_v56  ;;  %v11077_v40 = vld [vmem:[#allocation108_spill] sm:$0xff]  ;;  %v11078_v56 = vld [vmem:[#allocation117_spill] sm:$0xff] }
 0x20e   :  { %6469 = vmatpush1.bf16.msra.mxu0 %v11068_v35  ;;  %6533 = vmatpush1.bf16.msra.mxu1 %v11069_v10  ;;  %v11079_v35 = vld [vmem:[#allocation110_spill] sm:$0xff]  ;;  %v11080_v10 = vld [vmem:[#allocation119_spill] sm:$0xff] }
 0x20f   :  { %6471 = vmatprep.subr.bf16.mxu0 %v11070_v52  ;;  %6535 = vmatprep.subr.bf16.mxu1 %v11071_v23  ;;  %v11081_v52 = vld [vmem:[#allocation112_spill] sm:$0xff]  ;;  %v11082_v23 = vld [vmem:[#allocation121_spill] sm:$0xff] }
 0x212   :  { %6473 = vmatpush1.bf16.msra.mxu0 %v11072_v51  ;;  %6537 = vmatpush1.bf16.msra.mxu1 %v11073_v2  ;;  %v11083_v51 = vld [vmem:[#allocation114_spill] sm:$0xff]  ;;  %v11084_v2 = vld [vmem:[#allocation123_spill] sm:$0xff] }
 0x213   :  { %6475 = vmatprep.subr.bf16.mxu0 %v11074_v43  ;;  %6539 = vmatprep.subr.bf16.mxu1 %v11075_v44  ;;  %v11085_v43 = vld [vmem:[#allocation116_spill] sm:$0xff]  ;;  %v11086_v44 = vld [vmem:[#allocation125_spill] sm:$0xff] }
 0x216   :  { %6477 = vmatpush1.bf16.msra.mxu0 %v11076_v61  ;;  %6541 = vmatpush1.bf16.msra.mxu1 %v11077_v40  ;;  %v11087_v61 = vld [vmem:[#allocation118_spill] sm:$0xff]  ;;  %v11088_v40 = vld [vmem:[#allocation127_spill] sm:$0xff] }
 0x217   :  { %6479 = vmatprep.subr.bf16.mxu0 %v11078_v56  ;;  %6543 = vmatprep.subr.bf16.mxu1 %v11079_v35  ;;  %v11089_v56 = vld [vmem:[#allocation120_spill] sm:$0xff]  ;;  %v11090_v35 = vld [vmem:[#allocation129_spill] sm:$0xff] }
 0x21a   :  { %6481 = vmatpush1.bf16.msra.mxu0 %v11080_v10  ;;  %6545 = vmatpush1.bf16.msra.mxu1 %v11081_v52  ;;  %v11091_v10 = vld [vmem:[#allocation122_spill] sm:$0xff]  ;;  %v11092_v52 = vld [vmem:[#allocation131_spill] sm:$0xff] }
 0x21b   :  { %6483 = vmatprep.subr.bf16.mxu0 %v11082_v23  ;;  %6547 = vmatprep.subr.bf16.mxu1 %v11083_v51  ;;  %v11093_v23 = vld [vmem:[#allocation124_spill] sm:$0xff]  ;;  %v11094_v51 = vld [vmem:[#allocation133_spill] sm:$0xff] }
 0x21e   :  { %6485 = vmatpush1.bf16.msra.mxu0 %v11084_v2  ;;  %6549 = vmatpush1.bf16.msra.mxu1 %v11085_v43  ;;  %v11095_v2 = vld [vmem:[#allocation126_spill] sm:$0xff]  ;;  %v11096_v43 = vld [vmem:[#allocation135_spill] sm:$0xff] }
 0x21f   :  { %6487 = vmatprep.subr.bf16.mxu0 %v11086_v44  ;;  %6551 = vmatprep.subr.bf16.mxu1 %v11087_v61  ;;  %v11097_v44 = vld [vmem:[#allocation128_spill] sm:$0xff] }
 0x222   :  { %6489 = vmatpush1.bf16.msra.mxu0 %v11088_v40  ;;  %6553 = vmatpush1.bf16.msra.mxu1 %v11089_v56  ;;  %v11098_v40 = vld [vmem:[#allocation130_spill] sm:$0xff] }
 0x223   :  { %6491 = vmatprep.subr.bf16.mxu0 %v11090_v35  ;;  %6555 = vmatprep.subr.bf16.mxu1 %v11091_v10  ;;  %v11099_v35 = vld [vmem:[#allocation132_spill] sm:$0xff] }
 0x226   :  { %6493 = vmatpush1.bf16.msra.mxu0 %v11092_v52  ;;  %6557 = vmatpush1.bf16.msra.mxu1 %v11093_v23  ;;  %v11100_v52 = vld [vmem:[#allocation134_spill] sm:$0xff] }
 0x227   :  { %6495 = vmatprep.subr.bf16.mxu0 %v11094_v51  ;;  %6559 = vmatprep.subr.bf16.mxu1 %v11095_v2 }
 0x22a   :  { %6497 = vmatpush1.bf16.msra.mxu0 %v11096_v43  ;;  %6561 = vmatpush1.bf16.msra.mxu1 %v11097_v44 }
 0x22b   :  { %6499 = vmatprep.subr.bf16.mxu0 %v9235_v6  ;;  %6563 = vmatprep.subr.bf16.mxu1 %v11098_v40 }
 0x22e   :  { %6501 = vmatpush1.bf16.msra.mxu0 %v9241_v25  ;;  %6565 = vmatpush1.bf16.msra.mxu1 %v11099_v35 }
 0x22f   :  { %6503 = vmatprep.subr.bf16.mxu0 %v9247_v59  ;;  %6567 = vmatprep.subr.bf16.mxu1 %v11100_v52  ;;  %v11101_v59 = vld [vmem:[#allocation144_spill] sm:$0xff]  ;;  %v11102_v52 = vld [vmem:[#allocation146_spill] sm:$0xff] }
 0x232   :  { %6505 = vmatpush1.bf16.msra.mxu0 %v9253_v13  ;;  %6569 = vmatpush1.bf16.msra.mxu1 %v9232_v41 }
 0x233   :  { %6507 = vmatprep.subr.bf16.mxu0 %v9259_v5  ;;  %6571 = vmatprep.subr.bf16.mxu1 %v9238_v21 }
 0x236   :  { %6509 = vmatpush1.bf16.msra.mxu0 %v9265_v55  ;;  %6573 = vmatpush1.bf16.msra.mxu1 %v9244_v31  ;;  %v1082_v31 = vld [vmem:[#allocation4 + $0x2] sm:$0x3] }
 0x237   :  { %6511 = vmatprep.subr.bf16.mxu0 %v9272_v0  ;;  %6575 = vmatprep.subr.bf16.mxu1 %v9250_v62 }
 0x23a   :  { %6513 = vmatpush1.bf16.msra.mxu0 %v9278_v60  ;;  %6577 = vmatpush1.bf16.msra.mxu1 %v11101_v59 }
 0x23b   :  { %1370 = vmatprep.subr.mxu1 %v11102_v52  ;;  %6579 = vmatprep.subr.bf16.mxu0 %v8894_v27 }
 0x23d   :  { %1290 = vmatmul.mubr.f32.vlgmr.msra.gmra.mrb[6].mxu0 %v9407_v53  ;;  %1361 = vmatmul.mubr.f32.vlgmr.msra.gmra.mrb[10].mxu1 %v9407_v53  ;;  %v11104_v53 = vld [vmem:[#allocation53_spill] sm:$0xff] }
 0x23e   :  { %1371 = vmatpush1.msra.mxu1 %v9270_v48  ;;  %1434 = vmatprep.mubr.f32.mxu1 %v11021_v49 }
 0x23f   :  { %1441 = vmatprep.subr.mxu1 %v9274_v36  ;;  %6581 = vmatpush1.bf16.msra.mxu0 %v8896_v28 }
 0x240   :  { %6583 = vmatprep.subr.bf16.mxu0 %v8902_v34  ;;  %v11151_v34 = vld [vmem:[#allocation152_spill] sm:$0xff] }
 0x241   :  { %5851 = vmatmul.mubr.msk.f32.vlgmr.msra.gmra.mrb[12].mxu1 %vm684_vm0, %v1082_v31 }
 0x242   :  { %1442 = vmatpush1.msra.mxu1 %v9283_v19  ;;  %1505 = vmatprep.mubr.f32.mxu1 %v11021_v49 }
 0x243   :  { %1512 = vmatprep.subr.mxu1 %v9286_v32  ;;  %6585 = vmatpush1.bf16.msra.mxu0 %v8905_v37  ;;  %v11150_v37 = vld [vmem:[#allocation151_spill] sm:$0xff] }
 0x244   :  { %6587 = vmatprep.subr.bf16.mxu0 %v8914_v45 }
 0x245   :  { %5852 = vmatmul.mubr.msk.f32.vlgmr.msra.gmra.mrb[8].mxu1 %vm684_vm0, %v1082_v31 }
 0x246   :  { %1513 = vmatpush1.msra.mxu1 %v9293_v47  ;;  %1576 = vmatprep.mubr.f32.mxu1 %v11021_v49 }
 0x247   :  { %1583 = vmatprep.subr.mxu1 %v9296_v26  ;;  %6589 = vmatpush1.bf16.msra.mxu0 %v8917_v50 }
 0x248   :  { %6591 = vmatprep.subr.bf16.mxu0 %v8923_v54  ;;  %v11109_v54 = vld [vmem:[#allocation36_spill] sm:$0xff] }
 0x249   :  { %5853 = vmatmul.mubr.msk.f32.vlgmr.msra.gmra.mrb[14].mxu1 %vm684_vm0, %v1082_v31 }
 0x24a   :  { %1584 = vmatpush1.msra.mxu1 %v9304_v22  ;;  %1647 = vmatprep.mubr.f32.mxu1 %v11021_v49 }
 0x24b   :  { %6643 = vmatprep.subr.bf16.mxu1 %v8878_v4  ;;  %6593 = vmatpush1.bf16.msra.mxu0 %v8929_v63  ;;  %v11108_v63 = vld [vmem:[#allocation57_spill] sm:$0xff] }
 0x24c   :  { %6595 = vmatprep.subr.bf16.mxu0 %v8935_v3  ;;  %v11105_v3 = vld [vmem:[#allocation32_spill] sm:$0xff] }
 0x24d   :  { %5854 = vmatmul.mubr.msk.f32.vlgmr.msra.gmra.mrb[10].mxu1 %vm684_vm0, %v1082_v31  ;;  %v11103_v31 = vld [vmem:[#allocation51_spill] sm:$0xff] }
 0x24e   :  { %6645 = vmatpush1.bf16.msra.mxu1 %v8880_v8 }
 0x24f   :  { %6647 = vmatprep.subr.bf16.mxu1 %v8882_v9  ;;  %6597 = vmatpush1.bf16.msra.mxu0 %v8941_v17  ;;  %v11106_v17 = vld [vmem:[#allocation33_spill] sm:$0xff] }
 0x250   :  { %6599 = vmatprep.subr.bf16.mxu0 %v8947_v20  ;;  %v11107_v20 = vld [vmem:[#allocation55_spill] sm:$0xff] }
 0x252   :  { %6649 = vmatpush1.bf16.msra.mxu1 %v8886_v14  ;;  %v11149_v14 = vld [vmem:[#allocation150_spill] sm:$0xff] }
 0x253   :  { %6651 = vmatprep.subr.bf16.mxu1 %v8889_v15  ;;  %6601 = vmatpush1.bf16.msra.mxu0 %v8953_v33  ;;  %v11110_v33 = vld [vmem:[#allocation38_spill] sm:$0xff] }
 0x254   :  { %6603 = vmatprep.subr.bf16.mxu0 %v8959_v39  ;;  %v11111_v39 = vld [vmem:[#allocation59_spill] sm:$0xff] }
 0x256   :  { %6653 = vmatpush1.bf16.msra.mxu1 %v8892_v24  ;;  %v11112_v24 = vld [vmem:[#allocation61_spill] sm:$0xff] }
 0x257   :  { %6655 = vmatprep.subr.bf16.mxu1 %v8899_v29  ;;  %6605 = vmatpush1.bf16.msra.mxu0 %v11103_v31  ;;  %v11113_v29 = vld [vmem:[#allocation40_spill] sm:$0xff]  ;;  %v11114_v31 = vld [vmem:[#allocation42_spill] sm:$0xff] }
 0x258   :  { %6607 = vmatprep.subr.bf16.mxu0 %v11104_v53  ;;  %v11115_v53 = vld [vmem:[#allocation63_spill] sm:$0xff] }
 0x25a   :  { %6657 = vmatpush1.bf16.msra.mxu1 %v11105_v3  ;;  %v11116_v3 = vld [vmem:[#allocation65_spill] sm:$0xff] }
 0x25b   :  { %6659 = vmatprep.subr.bf16.mxu1 %v11106_v17  ;;  %6609 = vmatpush1.bf16.msra.mxu0 %v11107_v20  ;;  %v11117_v17 = vld [vmem:[#allocation44_spill] sm:$0xff]  ;;  %v11118_v20 = vld [vmem:[#allocation46_spill] sm:$0xff] }
 0x25c   :  { %6611 = vmatprep.subr.bf16.mxu0 %v11108_v63  ;;  %v11119_v63 = vld [vmem:[#allocation67_spill] sm:$0xff] }
 0x25e   :  { %6661 = vmatpush1.bf16.msra.mxu1 %v11109_v54  ;;  %v11120_v54 = vld [vmem:[#allocation69_spill] sm:$0xff] }
 0x25f   :  { %6663 = vmatprep.subr.bf16.mxu1 %v11110_v33  ;;  %6613 = vmatpush1.bf16.msra.mxu0 %v11111_v39  ;;  %v11121_v33 = vld [vmem:[#allocation48_spill] sm:$0xff]  ;;  %v11122_v39 = vld [vmem:[#allocation50_spill] sm:$0xff] }
 0x260   :  { %6615 = vmatprep.subr.bf16.mxu0 %v11112_v24  ;;  %v11123_v24 = vld [vmem:[#allocation71_spill] sm:$0xff] }
 0x262   :  { %6665 = vmatpush1.bf16.msra.mxu1 %v11113_v29  ;;  %v11124_v29 = vld [vmem:[#allocation73_spill] sm:$0xff] }
 0x263   :  { %6667 = vmatprep.subr.bf16.mxu1 %v11114_v31  ;;  %6617 = vmatpush1.bf16.msra.mxu0 %v11115_v53  ;;  %v11125_v31 = vld [vmem:[#allocation52_spill] sm:$0xff]  ;;  %v11126_v53 = vld [vmem:[#allocation54_spill] sm:$0xff] }
 0x264   :  { %6619 = vmatprep.subr.bf16.mxu0 %v11116_v3  ;;  %v11127_v3 = vld [vmem:[#allocation75_spill] sm:$0xff] }
 0x266   :  { %6669 = vmatpush1.bf16.msra.mxu1 %v11117_v17  ;;  %v11128_v17 = vld [vmem:[#allocation77_spill] sm:$0xff] }
 0x267   :  { %6671 = vmatprep.subr.bf16.mxu1 %v11118_v20  ;;  %6621 = vmatpush1.bf16.msra.mxu0 %v11119_v63  ;;  %v11129_v20 = vld [vmem:[#allocation56_spill] sm:$0xff]  ;;  %v11130_v63 = vld [vmem:[#allocation58_spill] sm:$0xff] }
 0x268   :  { %6623 = vmatprep.subr.bf16.mxu0 %v11120_v54  ;;  %v11131_v54 = vld [vmem:[#allocation79_spill] sm:$0xff] }
 0x26a   :  { %6673 = vmatpush1.bf16.msra.mxu1 %v11121_v33  ;;  %v11132_v33 = vld [vmem:[#allocation81_spill] sm:$0xff] }
 0x26b   :  { %6675 = vmatprep.subr.bf16.mxu1 %v11122_v39  ;;  %6625 = vmatpush1.bf16.msra.mxu0 %v11123_v24  ;;  %v11133_v39 = vld [vmem:[#allocation60_spill] sm:$0xff]  ;;  %v11134_v24 = vld [vmem:[#allocation62_spill] sm:$0xff] }
 0x26c   :  { %6627 = vmatprep.subr.bf16.mxu0 %v11124_v29  ;;  %v11135_v29 = vld [vmem:[#allocation83_spill] sm:$0xff] }
 0x26e   :  { %6677 = vmatpush1.bf16.msra.mxu1 %v11125_v31  ;;  %v11136_v31 = vld [vmem:[#allocation85_spill] sm:$0xff] }
 0x26f   :  { %6679 = vmatprep.subr.bf16.mxu1 %v11126_v53  ;;  %6629 = vmatpush1.bf16.msra.mxu0 %v11127_v3  ;;  %v11137_v53 = vld [vmem:[#allocation64_spill] sm:$0xff]  ;;  %v11138_v3 = vld [vmem:[#allocation66_spill] sm:$0xff] }
 0x270   :  { %6631 = vmatprep.subr.bf16.mxu0 %v11128_v17  ;;  %v11139_v17 = vld [vmem:[#allocation87_spill] sm:$0xff] }
 0x272   :  { %6681 = vmatpush1.bf16.msra.mxu1 %v11129_v20  ;;  %v11140_v20 = vld [vmem:[#allocation89_spill] sm:$0xff] }
 0x273   :  { %6683 = vmatprep.subr.bf16.mxu1 %v11130_v63  ;;  %6633 = vmatpush1.bf16.msra.mxu0 %v11131_v54  ;;  %v11141_v63 = vld [vmem:[#allocation68_spill] sm:$0xff]  ;;  %v11142_v54 = vld [vmem:[#allocation70_spill] sm:$0xff] }
 0x274   :  { %6635 = vmatprep.subr.bf16.mxu0 %v11132_v33  ;;  %v11143_v33 = vld [vmem:[#allocation72_spill] sm:$0xff] }
 0x276   :  { %6685 = vmatpush1.bf16.msra.mxu1 %v11133_v39  ;;  %v11144_v39 = vld [vmem:[#allocation74_spill] sm:$0xff] }
 0x277   :  { %6687 = vmatprep.subr.bf16.mxu1 %v11134_v24  ;;  %6637 = vmatpush1.bf16.msra.mxu0 %v11135_v29  ;;  %v11145_v24 = vld [vmem:[#allocation76_spill] sm:$0xff]  ;;  %v11146_v29 = vld [vmem:[#allocation78_spill] sm:$0xff] }
 0x278   :  { %6639 = vmatprep.subr.bf16.mxu0 %v11136_v31  ;;  %v11147_v31 = vld [vmem:[#allocation80_spill] sm:$0xff] }
 0x27a   :  { %6689 = vmatpush1.bf16.msra.mxu1 %v11137_v53  ;;  %v11148_v53 = vld [vmem:[#allocation82_spill] sm:$0xff] }
 0x27b   :  { %6691 = vmatprep.subr.bf16.mxu1 %v11138_v3  ;;  %6641 = vmatpush1.bf16.msra.mxu0 %v11139_v17 }
 0x27c   :  { %6707 = vmatprep.subr.bf16.mxu0 %v11140_v20 }
 0x27e   :  { %6693 = vmatpush1.bf16.msra.mxu1 %v11141_v63 }
 0x27f   :  { %6695 = vmatprep.subr.bf16.mxu1 %v11142_v54 }
 0x282   :  { %6697 = vmatpush1.bf16.msra.mxu1 %v11143_v33 }
 0x283   :  { %6699 = vmatprep.subr.bf16.mxu1 %v11144_v39 }
 0x286   :  { %6701 = vmatpush1.bf16.msra.mxu1 %v11145_v24 }
 0x287   :  { %6703 = vmatprep.subr.bf16.mxu1 %v11146_v29 }
 0x28a   :  { %6705 = vmatpush1.bf16.msra.mxu1 %v11147_v31 }
 0x28b   :  { %6771 = vmatprep.subr.bf16.mxu1 %v11148_v53 }
 0x2d0   :  { %v1149_v3 = vpop.f32.mrb[4].mxu0 }
 0x2d1   :  { %v1151_v17 = vpop.f32.mrb[5].mxu0 }
 0x310   :  { %v1291_v50 = vpop.f32.mrb[6].mxu0 }
 0x311   :  { %v1293_v20 = vpop.f32.mrb[7].mxu0 }
 0x314   :  { %v1436_v15 = vpop.f32.mrb[12].mxu1 }
 0x315   :  { %v1437_v63 = vadd.f32 %v1436_v15, %v1149_v3  ;;  %v1438_v45 = vpop.f32.mrb[13].mxu1 }
 0x316   :  { %v1439_v54 = vadd.f32 %v1438_v45, %v1151_v17 }
 0x317   :  { %v1654_v33 = vadd.f32 %v1437_v63, %v11149_v14 }
 0x318   :  { %v1655_v39 = vadd.f32 %v1439_v54, %v11150_v37  ;;  %v1507_v9 = vpop.f32.mrb[8].mxu1 }
 0x319   :  { %v5855_v24 = vmul.f32 -1.442695, %v1654_v33  ;;  %v1656_v29 = vadd.f32 %v1507_v9, %v11151_v34  ;;  %v1509_v8 = vpop.f32.mrb[9].mxu1 }
 0x31a   :  { %v5856_v31 = vmul.f32 -1.442695, %v1655_v39  ;;  %v1657_v53 = vadd.f32 %v1509_v8, %v9383_v57  ;;  %v11152_v39 = vld [vmem:[#allocation155_spill] sm:$0xff] }
 0x31b   :  { %8306 = vpow2.f32 %v5855_v24  ;;  %v5857_v28 = vmul.f32 -1.442695, %v1656_v29 }
 0x31c   :  { %8308 = vpow2.f32 %v5856_v31  ;;  %v5858_v4 = vmul.f32 -1.442695, %v1657_v53  ;;  %v1578_v27 = vpop.f32.mrb[14].mxu1 }
 0x31d   :  { %8310 = vpow2.f32 %v5857_v28  ;;  %v1579_v15 = vadd.f32 %v1578_v27, %v1291_v50  ;;  %v1580_v45 = vpop.f32.mrb[15].mxu1 }
 0x31e   :  { %8312 = vpow2.f32 %v5858_v4  ;;  %v1581_v63 = vadd.f32 %v1580_v45, %v1293_v20 }
 0x31f   :  { %v1658_v54 = vadd.f32 %v1579_v15, %v9389_v1 }
 0x320   :  { %v1649_v3 = vpop.f32.mrb[10].mxu1  ;;  %v1659_v17 = vadd.f32 %v1581_v63, %v9393_v11 }
 0x321   :  { %v1660_v9 = vadd.f32 %v1649_v3, %v9391_v30  ;;  %v1651_v33 = vpop.f32.mrb[11].mxu1  ;;  %8314 = vtanh.f32 %v1658_v54 }
 0x322   :  { %v1661_v8 = vadd.f32 %v1651_v33, %v11152_v39  ;;  %8316 = vtanh.f32 %v1659_v17 }
 0x323   :  { %v5859_v24 = vmul.f32 -1.442695, %v1660_v9 }
 0x324   :  { %v5860_v29 = vmul.f32 -1.442695, %v1661_v8 }
 0x325   :  { %v8307_v31 = vpop.eup %8306  ;;  %8318 = vpow2.f32 %v5859_v24 }
 0x326   :  { %v8309_v28 = vpop.eup %8308  ;;  %v1668_v27 = vadd.f32 1.0, %v8307_v31  ;;  %8320 = vpow2.f32 %v5860_v29 }
 0x327   :  { %v8311_v4 = vpop.eup %8310  ;;  %v1669_v50 = vadd.f32 1.0, %v8309_v28 }
 0x328   :  { %v8313_v20 = vpop.eup %8312  ;;  %8322 = vrcp.f32 %v1668_v27  ;;  %v1680_v53 = vadd.f32 1.0, %v8311_v4 }
 0x329   :  { %8324 = vrcp.f32 %v1669_v50  ;;  %v1681_v15 = vadd.f32 1.0, %v8313_v20 }
 0x32a   :  { %8326 = vrcp.f32 %v1680_v53 }
 0x32b   :  { %8328 = vrcp.f32 %v1681_v15  ;;  %v8315_v45 = vpop.eup %8314 }
 0x32c   :  { %v8317_v63 = vpop.eup %8316 }
 0x32f   :  { %v8319_v3 = vpop.eup %8318 }
 0x330   :  { %v8321_v54 = vpop.eup %8320  ;;  %v1694_v4 = vadd.f32 1.0, %v8319_v3  ;;  %v11156_v3 = vld [vmem:[#allocation92_spill] sm:$0xff] }
 0x331   :  { %v1695_v24 = vadd.f32 1.0, %v8321_v54 }
 0x332   :  { %v8323_v9 = vpop.eup %8322 }
 0x333   :  { %v8325_v33 = vpop.eup %8324  ;;  %v1702_v17 = vmul.f32 %v8323_v9, %v8315_v45  ;;  %8330 = vrcp.f32 %v1695_v24  ;;  %v11157_v9 = vld [vmem:[#allocation101_spill] sm:$0xff]  ;;  %v11162_v24 = vld [vmem:[#allocation98_spill] sm:$0xff] }
 0x334   :  { %v8327_v8 = vpop.eup %8326  ;;  %v1703_v31 = vmul.f32 %v8325_v33, %v8317_v63  ;;  %v11158_v33 = vld [vmem:[#allocation94_spill] sm:$0xff] }
 0x335   :  { %v8329_v11 = vpop.eup %8328  ;;  %v1700_v29 = vmul.f32 %v8327_v8, %v9401_v38  ;;  %v11154_v38 = vld [vmem:[#allocation90_spill] sm:$0xff]  ;;  %v11160_v8 = vld [vmem:[#allocation96_spill] sm:$0xff] }
 0x336   :  { %v1701_v28 = vmul.f32 %v8329_v11, %v9403_v46  ;;  %v11153_v11 = vld [vmem:[#allocation97_spill] sm:$0xff]  ;;  %v11155_v46 = vld [vmem:[#allocation99_spill] sm:$0xff] }
 0x337   :  { %v9567_v27 = vadd.f32 %v1702_v17, %v1700_v29  ;;  %v11159_v17 = vld [vmem:[#allocation103_spill] sm:$0xff] }
 0x338   :  { %v9569_v50 = vadd.f32 %v1703_v31, %v1701_v28  ;;  %v11161_v31 = vld [vmem:[#allocation105_spill] sm:$0xff]  ;;  %v11163_v29 = vld [vmem:[#allocation107_spill] sm:$0xff]  ;;  %v11164_v28 = vld [vmem:[#allocation100_spill] sm:$0xff] }
 0x339   :  { %8332 = vtanh.f32 %v9567_v27 }
 0x33a   :  { %8334 = vtanh.f32 %v9569_v50 }
 0x33b   :  { %8336 = vrcp.f32 %v1694_v4  ;;  %v11165_v4 = vld [vmem:[#allocation109_spill] sm:$0xff] }
 0x33d   :  { %v8331_v20 = vpop.eup %8330 }
 0x343   :  { %v8333_v53 = vpop.eup %8332 }
 0x344   :  { %v8335_v15 = vpop.eup %8334 }
 0x345   :  { %v8337_v45 = vpop.eup %8336  ;;  %v1709_v63 = vmul.f32 %v8335_v15, %v8331_v20  ;;  %v11166_v20 = vld [vmem:[#allocation102_spill] sm:$0xff]  ;;  %v11168_v15 = vld [vmem:[#allocation104_spill] sm:$0xff] }
 0x346   :  { %v9573_v54 = vmul.f32 %v8337_v45, %v8333_v53  ;;  %v11167_v53 = vld [vmem:[#allocation111_spill] sm:$0xff]  ;;  %v11169_v45 = vld [vmem:[#allocation113_spill] sm:$0xff] }
 0x347   :  { %1776 = vmatprep.mubr.f32.mxu0 %v1709_v63  ;;  %1847 = vmatprep.mubr.f32.mxu1 %v1709_v63 }
 0x348   :  { %1777 = vmatmul.mubr.f32.vlgmr.msra.gmra.mrb[8].mxu0 %v9573_v54  ;;  %1848 = vmatmul.mubr.f32.vlgmr.msra.gmra.mrb[16].mxu1 %v9573_v54 }
 0x349   :  { %6709 = vmatpush1.bf16.msra.mxu0 %v11052_v18  ;;  %6773 = vmatpush1.bf16.msra.mxu1 %v11053_v16 }
 0x34a   :  { %1918 = vmatprep.mubr.f32.mxu0 %v1709_v63  ;;  %1989 = vmatprep.mubr.f32.mxu1 %v1709_v63  ;;  %v11170_v63 = vld [vmem:[#allocation106_spill] sm:$0xff] }
 0x34b   :  { %6711 = vmatprep.subr.bf16.mxu0 %v11054_v12  ;;  %6775 = vmatprep.subr.bf16.mxu1 %v11055_v7 }
 0x34d   :  { %6713 = vmatpush1.bf16.msra.mxu0 %v11056_v42  ;;  %6777 = vmatpush1.bf16.msra.mxu1 %v11057_v58 }
 0x34e   :  { %6715 = vmatprep.subr.bf16.mxu0 %v11153_v11  ;;  %6779 = vmatprep.subr.bf16.mxu1 %v11154_v38 }
 0x351   :  { %6717 = vmatpush1.bf16.msra.mxu0 %v11155_v46  ;;  %6781 = vmatpush1.bf16.msra.mxu1 %v11156_v3 }
 0x352   :  { %6719 = vmatprep.subr.bf16.mxu0 %v11157_v9  ;;  %6783 = vmatprep.subr.bf16.mxu1 %v11158_v33 }
 0x355   :  { %6721 = vmatpush1.bf16.msra.mxu0 %v11159_v17  ;;  %6785 = vmatpush1.bf16.msra.mxu1 %v11160_v8  ;;  %v11171_v8 = vld [vmem:[#allocation115_spill] sm:$0xff] }
 0x356   :  { %6723 = vmatprep.subr.bf16.mxu0 %v11161_v31  ;;  %6787 = vmatprep.subr.bf16.mxu1 %v11162_v24  ;;  %v11172_v31 = vld [vmem:[#allocation108_spill] sm:$0xff]  ;;  %v11173_v24 = vld [vmem:[#allocation117_spill] sm:$0xff] }
 0x359   :  { %6725 = vmatpush1.bf16.msra.mxu0 %v11163_v29  ;;  %6789 = vmatpush1.bf16.msra.mxu1 %v11164_v28  ;;  %v11174_v29 = vld [vmem:[#allocation110_spill] sm:$0xff]  ;;  %v11175_v28 = vld [vmem:[#allocation119_spill] sm:$0xff] }
 0x35a   :  { %6727 = vmatprep.subr.bf16.mxu0 %v11165_v4  ;;  %6791 = vmatprep.subr.bf16.mxu1 %v11166_v20  ;;  %v11176_v4 = vld [vmem:[#allocation112_spill] sm:$0xff]  ;;  %v11177_v20 = vld [vmem:[#allocation121_spill] sm:$0xff] }
 0x35d   :  { %6729 = vmatpush1.bf16.msra.mxu0 %v11167_v53  ;;  %6793 = vmatpush1.bf16.msra.mxu1 %v11168_v15  ;;  %v11178_v53 = vld [vmem:[#allocation114_spill] sm:$0xff]  ;;  %v11179_v15 = vld [vmem:[#allocation123_spill] sm:$0xff] }
 0x35e   :  { %6731 = vmatprep.subr.bf16.mxu0 %v11169_v45  ;;  %6795 = vmatprep.subr.bf16.mxu1 %v11170_v63  ;;  %v11180_v45 = vld [vmem:[#allocation116_spill] sm:$0xff]  ;;  %v11181_v63 = vld [vmem:[#allocation125_spill] sm:$0xff] }
 0x361   :  { %6733 = vmatpush1.bf16.msra.mxu0 %v11171_v8  ;;  %6797 = vmatpush1.bf16.msra.mxu1 %v11172_v31  ;;  %v11182_v31 = vld [vmem:[#allocation127_spill] sm:$0xff] }
 0x362   :  { %6735 = vmatprep.subr.bf16.mxu0 %v11173_v24  ;;  %6799 = vmatprep.subr.bf16.mxu1 %v11174_v29  ;;  %v11183_v29 = vld [vmem:[#allocation129_spill] sm:$0xff] }
 0x365   :  { %6737 = vmatpush1.bf16.msra.mxu0 %v11175_v28  ;;  %6801 = vmatpush1.bf16.msra.mxu1 %v11176_v4  ;;  %v11184_v4 = vld [vmem:[#allocation131_spill] sm:$0xff] }
 0x366   :  { %6739 = vmatprep.subr.bf16.mxu0 %v11177_v20  ;;  %6803 = vmatprep.subr.bf16.mxu1 %v11178_v53 }
 0x369   :  { %6741 = vmatpush1.bf16.msra.mxu0 %v11179_v15  ;;  %6805 = vmatpush1.bf16.msra.mxu1 %v11180_v45 }
 0x36a   :  { %6743 = vmatprep.subr.bf16.mxu0 %v11181_v63  ;;  %6807 = vmatprep.subr.bf16.mxu1 %v11087_v61 }
 0x36d   :  { %6745 = vmatpush1.bf16.msra.mxu0 %v11182_v31  ;;  %6809 = vmatpush1.bf16.msra.mxu1 %v11089_v56 }
 0x36e   :  { %6747 = vmatprep.subr.bf16.mxu0 %v11183_v29  ;;  %6811 = vmatprep.subr.bf16.mxu1 %v11091_v10  ;;  %v11185_v10 = vld [vmem:[#allocation141_spill] sm:$0xff] }
 0x371   :  { %6749 = vmatpush1.bf16.msra.mxu0 %v11184_v4  ;;  %6813 = vmatpush1.bf16.msra.mxu1 %v11093_v23  ;;  %v11186_v4 = vld [vmem:[#allocation134_spill] sm:$0xff] }
 0x372   :  { %6751 = vmatprep.subr.bf16.mxu0 %v11094_v51  ;;  %6815 = vmatprep.subr.bf16.mxu1 %v11095_v2 }
 0x375   :  { %6753 = vmatpush1.bf16.msra.mxu0 %v11096_v43  ;;  %6817 = vmatpush1.bf16.msra.mxu1 %v11097_v44 }
 0x376   :  { %6755 = vmatprep.subr.bf16.mxu0 %v9235_v6  ;;  %6819 = vmatprep.subr.bf16.mxu1 %v11098_v40  ;;  %v11187_v6 = vld [vmem:[#allocation140_spill] sm:$0xff] }
 0x379   :  { %6757 = vmatpush1.bf16.msra.mxu0 %v9241_v25  ;;  %6821 = vmatpush1.bf16.msra.mxu1 %v11099_v35 }
 0x37a   :  { %6759 = vmatprep.subr.bf16.mxu0 %v11185_v10  ;;  %6823 = vmatprep.subr.bf16.mxu1 %v11186_v4 }
 0x37d   :  { %6761 = vmatpush1.bf16.msra.mxu0 %v9253_v13  ;;  %6825 = vmatpush1.bf16.msra.mxu1 %v9232_v41 }
 0x37e   :  { %6763 = vmatprep.subr.bf16.mxu0 %v9259_v5  ;;  %6827 = vmatprep.subr.bf16.mxu1 %v9238_v21 }
 0x381   :  { %6765 = vmatpush1.bf16.msra.mxu0 %v9265_v55  ;;  %6829 = vmatpush1.bf16.msra.mxu1 %v11187_v6  ;;  %v1711_v6 = vld [vmem:[#allocation4 + $0x4] sm:$0x3] }
 0x382   :  { %6767 = vmatprep.subr.bf16.mxu0 %v9272_v0  ;;  %6831 = vmatprep.subr.bf16.mxu1 %v9250_v62 }
 0x385   :  { %6769 = vmatpush1.bf16.msra.mxu0 %v9278_v60  ;;  %6833 = vmatpush1.bf16.msra.mxu1 %v11101_v59 }
 0x386   :  { %1999 = vmatprep.subr.mxu0 %v11102_v52  ;;  %2070 = vmatprep.subr.mxu1 %v9274_v36  ;;  %v11190_v36 = vld [vmem:[#allocation28_spill] sm:$0xff]  ;;  %v11194_v52 = vld [vmem:[#allocation31_spill] sm:$0xff] }
 0x388   :  { %1919 = vmatmul.mubr.f32.vlgmr.msra.gmra.mrb[10].mxu0 %v9573_v54  ;;  %1990 = vmatmul.mubr.f32.vlgmr.msra.gmra.mrb[18].mxu1 %v9573_v54  ;;  %v11196_v54 = vld [vmem:[#allocation34_spill] sm:$0xff] }
 0x389   :  { %2000 = vmatpush1.msra.mxu0 %v9270_v48  ;;  %2071 = vmatpush1.msra.mxu1 %v9283_v19  ;;  %v11188_v19 = vld [vmem:[#allocation27_spill] sm:$0xff]  ;;  %v11189_v48 = vld [vmem:[#allocation21_spill] sm:$0xff] }
 0x38a   :  { %2063 = vmatprep.mubr.f32.mxu0 %v11021_v49  ;;  %2134 = vmatprep.mubr.f32.mxu1 %v11021_v49 }
 0x38b   :  { %2141 = vmatprep.subr.mxu0 %v9286_v32  ;;  %2212 = vmatprep.subr.mxu1 %v9296_v26  ;;  %v11191_v32 = vld [vmem:[#allocation22_spill] sm:$0xff] }
 0x38c   :  { %5861 = vmatmul.mubr.msk.f32.vlgmr.msra.gmra.mrb[8].mxu0 %vm684_vm0, %v1711_v6  ;;  %5862 = vmatmul.mubr.msk.f32.vlgmr.msra.gmra.mrb[16].mxu1 %vm684_vm0, %v1711_v6  ;;  %v11192_v26 = vld [vmem:[#allocation30_spill] sm:$0xff] }
 0x38d   :  { %2142 = vmatpush1.msra.mxu0 %v9293_v47  ;;  %2205 = vmatprep.mubr.f32.mxu0 %v11021_v49  ;;  %v11193_v47 = vld [vmem:[#allocation23_spill] sm:$0xff] }
 0x38e   :  { %2213 = vmatpush1.msra.mxu1 %v9304_v22  ;;  %2276 = vmatprep.mubr.f32.mxu1 %v11021_v49  ;;  %v11195_v22 = vld [vmem:[#allocation24_spill] sm:$0xff]  ;;  %v11199_v49 = vld [vmem:[#allocation26_spill] sm:$0xff] }
 0x38f   :  { %6835 = vmatprep.subr.bf16.mxu0 %v11188_v19  ;;  %6899 = vmatprep.subr.bf16.mxu1 %v11189_v48  ;;  %v11197_v19 = vld [vmem:[#allocation25_spill] sm:$0xff]  ;;  %v11198_v48 = vld [vmem:[#allocation35_spill] sm:$0xff] }
 0x390   :  { %5863 = vmatmul.mubr.msk.f32.vlgmr.msra.gmra.mrb[10].mxu0 %vm684_vm0, %v1711_v6  ;;  %5864 = vmatmul.mubr.msk.f32.vlgmr.msra.gmra.mrb[18].mxu1 %vm684_vm0, %v1711_v6  ;;  %v11200_v6 = vld [vmem:[#allocation37_spill] sm:$0xff] }
 0x391   :  { %6837 = vmatpush1.bf16.msra.mxu0 %v11190_v36  ;;  %6901 = vmatpush1.bf16.msra.mxu1 %v11191_v32  ;;  %v11201_v36 = vld [vmem:[#allocation29_spill] sm:$0xff]  ;;  %v11202_v32 = vld [vmem:[#allocation39_spill] sm:$0xff] }
 0x392   :  { %6839 = vmatprep.subr.bf16.mxu0 %v11192_v26  ;;  %6903 = vmatprep.subr.bf16.mxu1 %v11193_v47  ;;  %v11203_v26 = vld [vmem:[#allocation32_spill] sm:$0xff]  ;;  %v11204_v47 = vld [vmem:[#allocation41_spill] sm:$0xff] }
 0x395   :  { %6841 = vmatpush1.bf16.msra.mxu0 %v11194_v52  ;;  %6905 = vmatpush1.bf16.msra.mxu1 %v11195_v22  ;;  %v11205_v52 = vld [vmem:[#allocation33_spill] sm:$0xff]  ;;  %v11206_v22 = vld [vmem:[#allocation43_spill] sm:$0xff] }
 0x396   :  { %6843 = vmatprep.subr.bf16.mxu0 %v11196_v54  ;;  %6907 = vmatprep.subr.bf16.mxu1 %v11197_v19  ;;  %v11207_v54 = vld [vmem:[#allocation36_spill] sm:$0xff]  ;;  %v11208_v19 = vld [vmem:[#allocation45_spill] sm:$0xff] }
 0x399   :  { %6845 = vmatpush1.bf16.msra.mxu0 %v11198_v48  ;;  %6909 = vmatpush1.bf16.msra.mxu1 %v11199_v49  ;;  %v11209_v48 = vld [vmem:[#allocation38_spill] sm:$0xff]  ;;  %v11210_v49 = vld [vmem:[#allocation47_spill] sm:$0xff] }
 0x39a   :  { %6847 = vmatprep.subr.bf16.mxu0 %v11200_v6  ;;  %6911 = vmatprep.subr.bf16.mxu1 %v11201_v36  ;;  %v11211_v6 = vld [vmem:[#allocation40_spill] sm:$0xff]  ;;  %v11212_v36 = vld [vmem:[#allocation49_spill] sm:$0xff] }
 0x39d   :  { %6849 = vmatpush1.bf16.msra.mxu0 %v11202_v32  ;;  %6913 = vmatpush1.bf16.msra.mxu1 %v11203_v26  ;;  %v11213_v32 = vld [vmem:[#allocation42_spill] sm:$0xff]  ;;  %v11214_v26 = vld [vmem:[#allocation51_spill] sm:$0xff] }
 0x39e   :  { %6851 = vmatprep.subr.bf16.mxu0 %v11204_v47  ;;  %6915 = vmatprep.subr.bf16.mxu1 %v11205_v52  ;;  %v11215_v47 = vld [vmem:[#allocation44_spill] sm:$0xff]  ;;  %v11216_v52 = vld [vmem:[#allocation53_spill] sm:$0xff] }
 0x3a1   :  { %6853 = vmatpush1.bf16.msra.mxu0 %v11206_v22  ;;  %6917 = vmatpush1.bf16.msra.mxu1 %v11207_v54  ;;  %v11217_v22 = vld [vmem:[#allocation46_spill] sm:$0xff]  ;;  %v11218_v54 = vld [vmem:[#allocation55_spill] sm:$0xff] }
 0x3a2   :  { %6855 = vmatprep.subr.bf16.mxu0 %v11208_v19  ;;  %6919 = vmatprep.subr.bf16.mxu1 %v11209_v48  ;;  %v11219_v19 = vld [vmem:[#allocation48_spill] sm:$0xff]  ;;  %v11220_v48 = vld [vmem:[#allocation57_spill] sm:$0xff] }
 0x3a5   :  { %6857 = vmatpush1.bf16.msra.mxu0 %v11210_v49  ;;  %6921 = vmatpush1.bf16.msra.mxu1 %v11211_v6  ;;  %v11221_v49 = vld [vmem:[#allocation50_spill] sm:$0xff]  ;;  %v11222_v6 = vld [vmem:[#allocation59_spill] sm:$0xff] }
 0x3a6   :  { %6859 = vmatprep.subr.bf16.mxu0 %v11212_v36  ;;  %6923 = vmatprep.subr.bf16.mxu1 %v11213_v32  ;;  %v11223_v36 = vld [vmem:[#allocation52_spill] sm:$0xff]  ;;  %v11224_v32 = vld [vmem:[#allocation61_spill] sm:$0xff] }
 0x3a9   :  { %6861 = vmatpush1.bf16.msra.mxu0 %v11214_v26  ;;  %6925 = vmatpush1.bf16.msra.mxu1 %v11215_v47  ;;  %v11225_v26 = vld [vmem:[#allocation54_spill] sm:$0xff]  ;;  %v11226_v47 = vld [vmem:[#allocation63_spill] sm:$0xff] }
 0x3aa   :  { %6863 = vmatprep.subr.bf16.mxu0 %v11216_v52  ;;  %6927 = vmatprep.subr.bf16.mxu1 %v11217_v22  ;;  %v11227_v52 = vld [vmem:[#allocation56_spill] sm:$0xff]  ;;  %v11228_v22 = vld [vmem:[#allocation65_spill] sm:$0xff] }
 0x3ad   :  { %6865 = vmatpush1.bf16.msra.mxu0 %v11218_v54  ;;  %6929 = vmatpush1.bf16.msra.mxu1 %v11219_v19  ;;  %v11229_v54 = vld [vmem:[#allocation58_spill] sm:$0xff]  ;;  %v11230_v19 = vld [vmem:[#allocation67_spill] sm:$0xff] }
 0x3ae   :  { %6867 = vmatprep.subr.bf16.mxu0 %v11220_v48  ;;  %6931 = vmatprep.subr.bf16.mxu1 %v11221_v49  ;;  %v11231_v48 = vld [vmem:[#allocation60_spill] sm:$0xff]  ;;  %v11232_v49 = vld [vmem:[#allocation69_spill] sm:$0xff] }
 0x3b1   :  { %6869 = vmatpush1.bf16.msra.mxu0 %v11222_v6  ;;  %6933 = vmatpush1.bf16.msra.mxu1 %v11223_v36  ;;  %v11233_v6 = vld [vmem:[#allocation62_spill] sm:$0xff]  ;;  %v11234_v36 = vld [vmem:[#allocation71_spill] sm:$0xff] }
 0x3b2   :  { %6871 = vmatprep.subr.bf16.mxu0 %v11224_v32  ;;  %6935 = vmatprep.subr.bf16.mxu1 %v11225_v26  ;;  %v11235_v32 = vld [vmem:[#allocation64_spill] sm:$0xff]  ;;  %v11236_v26 = vld [vmem:[#allocation73_spill] sm:$0xff] }
 0x3b5   :  { %6873 = vmatpush1.bf16.msra.mxu0 %v11226_v47  ;;  %6937 = vmatpush1.bf16.msra.mxu1 %v11227_v52  ;;  %v11237_v47 = vld [vmem:[#allocation66_spill] sm:$0xff]  ;;  %v11238_v52 = vld [vmem:[#allocation75_spill] sm:$0xff] }
 0x3b6   :  { %6875 = vmatprep.subr.bf16.mxu0 %v11228_v22  ;;  %6939 = vmatprep.subr.bf16.mxu1 %v11229_v54  ;;  %v11239_v22 = vld [vmem:[#allocation68_spill] sm:$0xff]  ;;  %v11240_v54 = vld [vmem:[#allocation77_spill] sm:$0xff] }
 0x3b9   :  { %6877 = vmatpush1.bf16.msra.mxu0 %v11230_v19  ;;  %6941 = vmatpush1.bf16.msra.mxu1 %v11231_v48  ;;  %v11241_v19 = vld [vmem:[#allocation70_spill] sm:$0xff]  ;;  %v11242_v48 = vld [vmem:[#allocation79_spill] sm:$0xff] }
 0x3ba   :  { %6879 = vmatprep.subr.bf16.mxu0 %v11232_v49  ;;  %6943 = vmatprep.subr.bf16.mxu1 %v11233_v6  ;;  %v11243_v49 = vld [vmem:[#allocation72_spill] sm:$0xff]  ;;  %v11244_v6 = vld [vmem:[#allocation81_spill] sm:$0xff] }
 0x3bd   :  { %6881 = vmatpush1.bf16.msra.mxu0 %v11234_v36  ;;  %6945 = vmatpush1.bf16.msra.mxu1 %v11235_v32  ;;  %v11245_v36 = vld [vmem:[#allocation74_spill] sm:$0xff]  ;;  %v11246_v32 = vld [vmem:[#allocation83_spill] sm:$0xff] }
 0x3be   :  { %6883 = vmatprep.subr.bf16.mxu0 %v11236_v26  ;;  %6947 = vmatprep.subr.bf16.mxu1 %v11237_v47  ;;  %v11247_v26 = vld [vmem:[#allocation76_spill] sm:$0xff]  ;;  %v11248_v47 = vld [vmem:[#allocation85_spill] sm:$0xff] }
 0x3c1   :  { %6885 = vmatpush1.bf16.msra.mxu0 %v11238_v52  ;;  %6949 = vmatpush1.bf16.msra.mxu1 %v11239_v22  ;;  %v11249_v52 = vld [vmem:[#allocation78_spill] sm:$0xff]  ;;  %v11250_v22 = vld [vmem:[#allocation87_spill] sm:$0xff] }
 0x3c2   :  { %6887 = vmatprep.subr.bf16.mxu0 %v11240_v54  ;;  %6951 = vmatprep.subr.bf16.mxu1 %v11241_v19  ;;  %v11251_v54 = vld [vmem:[#allocation80_spill] sm:$0xff]  ;;  %v11252_v19 = vld [vmem:[#allocation89_spill] sm:$0xff] }
 0x3c5   :  { %6889 = vmatpush1.bf16.msra.mxu0 %v11242_v48  ;;  %6953 = vmatpush1.bf16.msra.mxu1 %v11243_v49  ;;  %v11253_v48 = vld [vmem:[#allocation82_spill] sm:$0xff] }
 0x3c6   :  { %6891 = vmatprep.subr.bf16.mxu0 %v11244_v6  ;;  %6955 = vmatprep.subr.bf16.mxu1 %v11245_v36 }
 0x3c9   :  { %6893 = vmatpush1.bf16.msra.mxu0 %v11246_v32  ;;  %6957 = vmatpush1.bf16.msra.mxu1 %v11247_v26 }
 0x3ca   :  { %6895 = vmatprep.subr.bf16.mxu0 %v11248_v47  ;;  %6959 = vmatprep.subr.bf16.mxu1 %v11249_v52 }
 0x3cd   :  { %6897 = vmatpush1.bf16.msra.mxu0 %v11250_v22  ;;  %6961 = vmatpush1.bf16.msra.mxu1 %v11251_v54 }
 0x3ce   :  { %6963 = vmatprep.subr.bf16.mxu0 %v11252_v19  ;;  %7027 = vmatprep.subr.bf16.mxu1 %v11253_v48 }
 0x45f   :  { %v2065_v49 = vpop.f32.mrb[8].mxu0  ;;  %v2136_v6 = vpop.f32.mrb[16].mxu1 }
 0x460   :  { %v2283_v36 = vadd.f32 %v2065_v49, %v11149_v14  ;;  %v2285_v32 = vadd.f32 %v2136_v6, %v11151_v34  ;;  %v2067_v59 = vpop.f32.mrb[9].mxu0  ;;  %v2138_v26 = vpop.f32.mrb[17].mxu1 }
 0x461   :  { %v2284_v47 = vadd.f32 %v2067_v59, %v11150_v37  ;;  %v2286_v52 = vadd.f32 %v2138_v26, %v9383_v57  ;;  %v11254_v26 = vld [vmem:[#allocation154_spill] sm:$0xff] }
 0x462   :  { %v5865_v60 = vmul.f32 -1.442695, %v2283_v36  ;;  %v5867_v22 = vmul.f32 -1.442695, %v2285_v32 }
 0x463   :  { %v5866_v62 = vmul.f32 -1.442695, %v2284_v47  ;;  %v5868_v54 = vmul.f32 -1.442695, %v2286_v52  ;;  %v2207_v0 = vpop.f32.mrb[10].mxu0  ;;  %v2278_v19 = vpop.f32.mrb[18].mxu1 }
 0x464   :  { %8338 = vpow2.f32 %v5865_v60  ;;  %v2209_v48 = vpop.f32.mrb[11].mxu0  ;;  %v2280_v55 = vpop.f32.mrb[19].mxu1  ;;  %v2289_v49 = vadd.f32 %v2278_v19, %v9391_v30  ;;  %v2287_v59 = vadd.f32 %v2207_v0, %v9389_v1 }
 0x465   :  { %8340 = vpow2.f32 %v5867_v22  ;;  %v2290_v6 = vadd.f32 %v2280_v55, %v11152_v39  ;;  %v2288_v36 = vadd.f32 %v2209_v48, %v11254_v26 }
 0x466   :  { %8342 = vpow2.f32 %v5866_v62  ;;  %v5869_v37 = vmul.f32 -1.442695, %v2289_v49 }
 0x467   :  { %8344 = vpow2.f32 %v5868_v54  ;;  %v5870_v32 = vmul.f32 -1.442695, %v2290_v6 }
 0x468   :  { %8346 = vtanh.f32 %v2287_v59 }
 0x469   :  { %8348 = vpow2.f32 %v5869_v37 }
 0x46a   :  { %8350 = vtanh.f32 %v2288_v36 }
 0x46b   :  { %8352 = vpow2.f32 %v5870_v32 }
 0x46e   :  { %v8339_v47 = vpop.eup %8338 }
 0x46f   :  { %v8341_v52 = vpop.eup %8340  ;;  %v2297_v60 = vadd.f32 1.0, %v8339_v47 }
 0x470   :  { %v8343_v57 = vpop.eup %8342  ;;  %v2309_v22 = vadd.f32 1.0, %v8341_v52 }
 0x471   :  { %v8345_v62 = vpop.eup %8344  ;;  %8354 = vrcp.f32 %v2297_v60  ;;  %v2298_v19 = vadd.f32 1.0, %v8343_v57 }
 0x472   :  { %8356 = vrcp.f32 %v2309_v22  ;;  %v2310_v55 = vadd.f32 1.0, %v8345_v62  ;;  %v8347_v0 = vpop.eup %8346 }
 0x473   :  { %8358 = vrcp.f32 %v2298_v19  ;;  %v8349_v54 = vpop.eup %8348 }
 0x474   :  { %8360 = vrcp.f32 %v2310_v55  ;;  %v8351_v48 = vpop.eup %8350  ;;  %v2323_v22 = vadd.f32 1.0, %v8349_v54  ;;  %v11257_v54 = vld [vmem:[#allocation98_spill] sm:$0xff] }
 0x475   :  { %v8353_v49 = vpop.eup %8352 }
 0x476   :  { %v2324_v47 = vadd.f32 1.0, %v8353_v49 }
 0x478   :  { %8362 = vrcp.f32 %v2324_v47  ;;  %v11262_v47 = vld [vmem:[#allocation111_spill] sm:$0xff] }
 0x47b   :  { %v8355_v6 = vpop.eup %8354 }
 0x47c   :  { %v8357_v59 = vpop.eup %8356  ;;  %v2331_v37 = vmul.f32 %v8355_v6, %v8347_v0 }
 0x47d   :  { %v8359_v26 = vpop.eup %8358  ;;  %v2329_v36 = vmul.f32 %v8357_v59, %v9567_v27  ;;  %v11259_v59 = vld [vmem:[#allocation100_spill] sm:$0xff] }
 0x47e   :  { %v8361_v52 = vpop.eup %8360  ;;  %v2332_v32 = vmul.f32 %v8359_v26, %v8351_v48  ;;  %v11256_v26 = vld [vmem:[#allocation105_spill] sm:$0xff]  ;;  %v11258_v48 = vld [vmem:[#allocation107_spill] sm:$0xff] }
 0x47f   :  { %v2330_v60 = vmul.f32 %v8361_v52, %v9569_v50  ;;  %v9733_v57 = vadd.f32 %v2331_v37, %v2329_v36  ;;  %v11255_v50 = vld [vmem:[#allocation96_spill] sm:$0xff]  ;;  %v11260_v37 = vld [vmem:[#allocation109_spill] sm:$0xff]  ;;  %v11261_v36 = vld [vmem:[#allocation102_spill] sm:$0xff] }
 0x480   :  { %v11263_v52 = vld [vmem:[#allocation104_spill] sm:$0xff] }
 0x481   :  { %v9735_v62 = vadd.f32 %v2332_v32, %v2330_v60  ;;  %8364 = vtanh.f32 %v9733_v57  ;;  %v11264_v32 = vld [vmem:[#allocation113_spill] sm:$0xff]  ;;  %v11265_v60 = vld [vmem:[#allocation106_spill] sm:$0xff] }
 0x482   :  { %v8363_v19 = vpop.eup %8362 }
 0x483   :  { %8366 = vtanh.f32 %v9735_v62 }
 0x484   :  { %8368 = vrcp.f32 %v2323_v22  ;;  %v11266_v22 = vld [vmem:[#allocation108_spill] sm:$0xff] }
 0x48b   :  { %v8365_v55 = vpop.eup %8364 }
 0x48d   :  { %v8367_v0 = vpop.eup %8366 }
 0x48e   :  { %v8369_v27 = vpop.eup %8368  ;;  %v2338_v49 = vmul.f32 %v8367_v0, %v8363_v19  ;;  %v11267_v19 = vld [vmem:[#allocation110_spill] sm:$0xff] }
 0x48f   :  { %v9739_v6 = vmul.f32 %v8369_v27, %v8365_v55  ;;  %v11268_v55 = vld [vmem:[#allocation112_spill] sm:$0xff]  ;;  %v11269_v0 = vld [vmem:[#allocation122_spill] sm:$0xff]  ;;  %v11270_v27 = vld [vmem:[#allocation131_spill] sm:$0xff] }
 0x490   :  { %2405 = vmatprep.mubr.f32.mxu0 %v2338_v49  ;;  %2476 = vmatprep.mubr.f32.mxu1 %v2338_v49 }
 0x491   :  { %2406 = vmatmul.mubr.f32.vlgmr.msra.gmra.mrb[12].mxu0 %v9739_v6  ;;  %2477 = vmatmul.mubr.f32.vlgmr.msra.gmra.mrb[20].mxu1 %v9739_v6 }
 0x492   :  { %6965 = vmatpush1.bf16.msra.mxu0 %v11052_v18  ;;  %7029 = vmatpush1.bf16.msra.mxu1 %v11053_v16 }
 0x493   :  { %2547 = vmatprep.mubr.f32.mxu0 %v2338_v49  ;;  %2618 = vmatprep.mubr.f32.mxu1 %v2338_v49  ;;  %v11271_v49 = vld [vmem:[#allocation137_spill] sm:$0xff] }
 0x494   :  { %6967 = vmatprep.subr.bf16.mxu0 %v11054_v12  ;;  %7031 = vmatprep.subr.bf16.mxu1 %v11055_v7 }
 0x496   :  { %6969 = vmatpush1.bf16.msra.mxu0 %v11056_v42  ;;  %7033 = vmatpush1.bf16.msra.mxu1 %v11057_v58 }
 0x497   :  { %6971 = vmatprep.subr.bf16.mxu0 %v11153_v11  ;;  %7035 = vmatprep.subr.bf16.mxu1 %v11154_v38 }
 0x49a   :  { %6973 = vmatpush1.bf16.msra.mxu0 %v11155_v46  ;;  %7037 = vmatpush1.bf16.msra.mxu1 %v11156_v3 }
 0x49b   :  { %6975 = vmatprep.subr.bf16.mxu0 %v11157_v9  ;;  %7039 = vmatprep.subr.bf16.mxu1 %v11158_v33 }
 0x49e   :  { %6977 = vmatpush1.bf16.msra.mxu0 %v11159_v17  ;;  %7041 = vmatpush1.bf16.msra.mxu1 %v11255_v50 }
 0x49f   :  { %6979 = vmatprep.subr.bf16.mxu0 %v11256_v26  ;;  %7043 = vmatprep.subr.bf16.mxu1 %v11257_v54 }
 0x4a2   :  { %6981 = vmatpush1.bf16.msra.mxu0 %v11258_v48  ;;  %7045 = vmatpush1.bf16.msra.mxu1 %v11259_v59 }
 0x4a3   :  { %6983 = vmatprep.subr.bf16.mxu0 %v11260_v37  ;;  %7047 = vmatprep.subr.bf16.mxu1 %v11261_v36 }
 0x4a6   :  { %6985 = vmatpush1.bf16.msra.mxu0 %v11262_v47  ;;  %7049 = vmatpush1.bf16.msra.mxu1 %v11263_v52 }
 0x4a7   :  { %6987 = vmatprep.subr.bf16.mxu0 %v11264_v32  ;;  %7051 = vmatprep.subr.bf16.mxu1 %v11265_v60 }
 0x4aa   :  { %6989 = vmatpush1.bf16.msra.mxu0 %v11171_v8  ;;  %7053 = vmatpush1.bf16.msra.mxu1 %v11266_v22 }
 0x4ab   :  { %6991 = vmatprep.subr.bf16.mxu0 %v11173_v24  ;;  %7055 = vmatprep.subr.bf16.mxu1 %v11267_v19 }
 0x4ae   :  { %6993 = vmatpush1.bf16.msra.mxu0 %v11175_v28  ;;  %7057 = vmatpush1.bf16.msra.mxu1 %v11268_v55 }
 0x4af   :  { %6995 = vmatprep.subr.bf16.mxu0 %v11177_v20  ;;  %7059 = vmatprep.subr.bf16.mxu1 %v11178_v53 }
 0x4b2   :  { %6997 = vmatpush1.bf16.msra.mxu0 %v11179_v15  ;;  %7061 = vmatpush1.bf16.msra.mxu1 %v11180_v45 }
 0x4b3   :  { %6999 = vmatprep.subr.bf16.mxu0 %v11181_v63  ;;  %7063 = vmatprep.subr.bf16.mxu1 %v11087_v61 }
 0x4b6   :  { %7001 = vmatpush1.bf16.msra.mxu0 %v11182_v31  ;;  %7065 = vmatpush1.bf16.msra.mxu1 %v11089_v56 }
 0x4b7   :  { %7003 = vmatprep.subr.bf16.mxu0 %v11183_v29  ;;  %7067 = vmatprep.subr.bf16.mxu1 %v11269_v0 }
 0x4ba   :  { %7005 = vmatpush1.bf16.msra.mxu0 %v11270_v27  ;;  %7069 = vmatpush1.bf16.msra.mxu1 %v11093_v23 }
 0x4bb   :  { %7007 = vmatprep.subr.bf16.mxu0 %v11094_v51  ;;  %7071 = vmatprep.subr.bf16.mxu1 %v11095_v2  ;;  %v11354_v2 = vld [vmem:[#allocation153_spill] sm:$0xff] }
 0x4be   :  { %7009 = vmatpush1.bf16.msra.mxu0 %v11096_v43  ;;  %7073 = vmatpush1.bf16.msra.mxu1 %v11097_v44  ;;  %v11272_v44 = vld [vmem:[#allocation147_spill] sm:$0xff] }
 0x4bf   :  { %7011 = vmatprep.subr.bf16.mxu0 %v11271_v49  ;;  %7075 = vmatprep.subr.bf16.mxu1 %v11098_v40  ;;  %v11273_v49 = vld [vmem:[#allocation140_spill] sm:$0xff]  ;;  %v11353_v43 = vld [vmem:[#allocation151_spill] sm:$0xff] }
 0x4c0   :  { %v11274_v40 = vld [vmem:[#allocation148_spill] sm:$0xff] }
 0x4c2   :  { %7013 = vmatpush1.bf16.msra.mxu0 %v9241_v25  ;;  %7077 = vmatpush1.bf16.msra.mxu1 %v11099_v35  ;;  %v11275_v25 = vld [vmem:[#allocation142_spill] sm:$0xff]  ;;  %v11276_v35 = vld [vmem:[#allocation149_spill] sm:$0xff] }
 0x4c3   :  { %7015 = vmatprep.subr.bf16.mxu0 %v11185_v10  ;;  %7079 = vmatprep.subr.bf16.mxu1 %v11186_v4  ;;  %v11277_v10 = vld [vmem:[#allocation144_spill] sm:$0xff]  ;;  %v9805_v4 = vld [vmem:[#allocation7 + $0x8] sm:$0xff] }
 0x4c4   :  { %11278 = vst [vmem:[#allocation91_spill] sm:$0xff] %v9805_v4 }
 0x4c6   :  { %7017 = vmatpush1.bf16.msra.mxu0 %v9253_v13  ;;  %7081 = vmatpush1.bf16.msra.mxu1 %v9232_v41  ;;  %v9808_v41 = vld [vmem:[#allocation7 + $0x18] sm:$0xff] }
 0x4c7   :  { %7019 = vmatprep.subr.bf16.mxu0 %v9259_v5  ;;  %7083 = vmatprep.subr.bf16.mxu1 %v9238_v21  ;;  %11279 = vst [vmem:[#allocation84_spill] sm:$0xff] %v9808_v41  ;;  %v11293_v21 = vld [vmem:[#allocation31_spill] sm:$0xff]  ;;  %v11298_v5 = vld [vmem:[#allocation26_spill] sm:$0xff] }
 0x4ca   :  { %7021 = vmatpush1.bf16.msra.mxu0 %v11272_v44  ;;  %7085 = vmatpush1.bf16.msra.mxu1 %v11273_v49  ;;  %v9813_v49 = vld [vmem:[#allocation7] sm:$0xff]  ;;  %v11292_v44 = vld [vmem:[#allocation23_spill] sm:$0xff] }
 0x4cb   :  { %7023 = vmatprep.subr.bf16.mxu0 %v11274_v40  ;;  %7087 = vmatprep.subr.bf16.mxu1 %v11275_v25  ;;  %11280 = vst [vmem:[#allocation93_spill] sm:$0xff] %v9813_v49  ;;  %v9816_v25 = vld [vmem:[#allocation7 + $0x10] sm:$0xff] }
 0x4cc   :  { %11281 = vst [vmem:[#allocation86_spill] sm:$0xff] %v9816_v25  ;;  %v11290_v40 = vld [vmem:[#allocation22_spill] sm:$0xff] }
 0x4ce   :  { %7025 = vmatpush1.bf16.msra.mxu0 %v11276_v35  ;;  %7089 = vmatpush1.bf16.msra.mxu1 %v11277_v10  ;;  %v2340_v10 = vld [vmem:[#allocation4 + $0x6] sm:$0x3]  ;;  %v11282_v35 = vmov 0.0  }
 0x4cf   :  { %2628 = vmatprep.subr.mxu0 %v9805_v4  ;;  %2699 = vmatprep.subr.mxu1 %v9808_v41  ;;  %v9821_v4 = vld [vmem:[#allocation7 + $0x28] sm:$0xff]  ;;  %v9824_v41 = vld [vmem:[#allocation7 + $0x38] sm:$0xff] }
 0x4d0   :  { %11283 = vst [vmem:[#allocation95_spill] sm:$0xff] %v9821_v4  ;;  %11284 = vst [vmem:[#allocation88_spill] sm:$0xff] %v9824_v41 }
 0x4d1   :  { %2548 = vmatmul.mubr.f32.vlgmr.msra.gmra.mrb[14].mxu0 %v9739_v6  ;;  %2619 = vmatmul.mubr.f32.vlgmr.msra.gmra.mrb[22].mxu1 %v9739_v6  ;;  %v9829_v6 = vld [vmem:[#allocation7 + $0x20] sm:$0xff] }
 0x4d2   :  { %2629 = vmatpush1.msra.mxu0 %v9813_v49  ;;  %2700 = vmatpush1.msra.mxu1 %v9816_v25  ;;  %11285 = vst [vmem:[#allocation118_spill] sm:$0xff] %v9829_v6  ;;  %v9833_v25 = vld [vmem:[#allocation7 + $0x30] sm:$0xff]  ;;  %v11288_v49 = vld [vmem:[#allocation21_spill] sm:$0xff] }
 0x4d3   :  { %2692 = vmatprep.mubr.f32.mxu0 %v11282_v35  ;;  %2763 = vmatprep.mubr.f32.mxu1 %v11282_v35  ;;  %11286 = vst [vmem:[#allocation120_spill] sm:$0xff] %v9833_v25 }
 0x4d4   :  { %2770 = vmatprep.subr.mxu0 %v9821_v4  ;;  %2841 = vmatprep.subr.mxu1 %v9824_v41  ;;  %v11287_v4 = vld [vmem:[#allocation27_spill] sm:$0xff]  ;;  %v11289_v41 = vld [vmem:[#allocation28_spill] sm:$0xff] }
 0x4d5   :  { %5871 = vmatmul.mubr.msk.f32.vlgmr.msra.gmra.mrb[12].mxu0 %vm684_vm0, %v2340_v10  ;;  %5872 = vmatmul.mubr.msk.f32.vlgmr.msra.gmra.mrb[20].mxu1 %vm684_vm0, %v2340_v10 }
 0x4d6   :  { %2771 = vmatpush1.msra.mxu0 %v9829_v6  ;;  %2834 = vmatprep.mubr.f32.mxu0 %v11282_v35  ;;  %v11291_v6 = vld [vmem:[#allocation30_spill] sm:$0xff] }
 0x4d7   :  { %2842 = vmatpush1.msra.mxu1 %v9833_v25  ;;  %2905 = vmatprep.mubr.f32.mxu1 %v11282_v35  ;;  %v11294_v25 = vld [vmem:[#allocation24_spill] sm:$0xff]  ;;  %v11295_v35 = vld [vmem:[#allocation34_spill] sm:$0xff] }
 0x4d8   :  { %7091 = vmatprep.subr.bf16.mxu0 %v11287_v4  ;;  %7155 = vmatprep.subr.bf16.mxu1 %v11288_v49  ;;  %v11296_v4 = vld [vmem:[#allocation25_spill] sm:$0xff]  ;;  %v11297_v49 = vld [vmem:[#allocation35_spill] sm:$0xff] }
 0x4d9   :  { %5873 = vmatmul.mubr.msk.f32.vlgmr.msra.gmra.mrb[14].mxu0 %vm684_vm0, %v2340_v10  ;;  %5874 = vmatmul.mubr.msk.f32.vlgmr.msra.gmra.mrb[22].mxu1 %vm684_vm0, %v2340_v10  ;;  %v11299_v10 = vld [vmem:[#allocation37_spill] sm:$0xff] }
 0x4da   :  { %7093 = vmatpush1.bf16.msra.mxu0 %v11289_v41  ;;  %7157 = vmatpush1.bf16.msra.mxu1 %v11290_v40  ;;  %v11300_v41 = vld [vmem:[#allocation29_spill] sm:$0xff]  ;;  %v11301_v40 = vld [vmem:[#allocation39_spill] sm:$0xff] }
 0x4db   :  { %7095 = vmatprep.subr.bf16.mxu0 %v11291_v6  ;;  %7159 = vmatprep.subr.bf16.mxu1 %v11292_v44  ;;  %v11302_v6 = vld [vmem:[#allocation32_spill] sm:$0xff]  ;;  %v11303_v44 = vld [vmem:[#allocation41_spill] sm:$0xff] }
 0x4de   :  { %7097 = vmatpush1.bf16.msra.mxu0 %v11293_v21  ;;  %7161 = vmatpush1.bf16.msra.mxu1 %v11294_v25  ;;  %v11304_v21 = vld [vmem:[#allocation33_spill] sm:$0xff]  ;;  %v11305_v25 = vld [vmem:[#allocation43_spill] sm:$0xff] }
 0x4df   :  { %7099 = vmatprep.subr.bf16.mxu0 %v11295_v35  ;;  %7163 = vmatprep.subr.bf16.mxu1 %v11296_v4  ;;  %v11306_v35 = vld [vmem:[#allocation36_spill] sm:$0xff]  ;;  %v11307_v4 = vld [vmem:[#allocation45_spill] sm:$0xff] }
 0x4e2   :  { %7101 = vmatpush1.bf16.msra.mxu0 %v11297_v49  ;;  %7165 = vmatpush1.bf16.msra.mxu1 %v11298_v5  ;;  %v11308_v49 = vld [vmem:[#allocation38_spill] sm:$0xff]  ;;  %v11309_v5 = vld [vmem:[#allocation47_spill] sm:$0xff] }
 0x4e3   :  { %7103 = vmatprep.subr.bf16.mxu0 %v11299_v10  ;;  %7167 = vmatprep.subr.bf16.mxu1 %v11300_v41  ;;  %v11310_v10 = vld [vmem:[#allocation40_spill] sm:$0xff]  ;;  %v11311_v41 = vld [vmem:[#allocation49_spill] sm:$0xff] }
 0x4e6   :  { %7105 = vmatpush1.bf16.msra.mxu0 %v11301_v40  ;;  %7169 = vmatpush1.bf16.msra.mxu1 %v11302_v6  ;;  %v11312_v40 = vld [vmem:[#allocation42_spill] sm:$0xff]  ;;  %v11313_v6 = vld [vmem:[#allocation51_spill] sm:$0xff] }
 0x4e7   :  { %7107 = vmatprep.subr.bf16.mxu0 %v11303_v44  ;;  %7171 = vmatprep.subr.bf16.mxu1 %v11304_v21  ;;  %v11314_v44 = vld [vmem:[#allocation44_spill] sm:$0xff]  ;;  %v11315_v21 = vld [vmem:[#allocation53_spill] sm:$0xff] }
 0x4ea   :  { %7109 = vmatpush1.bf16.msra.mxu0 %v11305_v25  ;;  %7173 = vmatpush1.bf16.msra.mxu1 %v11306_v35  ;;  %v11316_v25 = vld [vmem:[#allocation46_spill] sm:$0xff]  ;;  %v11317_v35 = vld [vmem:[#allocation55_spill] sm:$0xff] }
 0x4eb   :  { %7111 = vmatprep.subr.bf16.mxu0 %v11307_v4  ;;  %7175 = vmatprep.subr.bf16.mxu1 %v11308_v49  ;;  %v11318_v4 = vld [vmem:[#allocation48_spill] sm:$0xff]  ;;  %v11319_v49 = vld [vmem:[#allocation57_spill] sm:$0xff] }
 0x4ee   :  { %7113 = vmatpush1.bf16.msra.mxu0 %v11309_v5  ;;  %7177 = vmatpush1.bf16.msra.mxu1 %v11310_v10  ;;  %v11320_v5 = vld [vmem:[#allocation50_spill] sm:$0xff]  ;;  %v11321_v10 = vld [vmem:[#allocation59_spill] sm:$0xff] }
 0x4ef   :  { %7115 = vmatprep.subr.bf16.mxu0 %v11311_v41  ;;  %7179 = vmatprep.subr.bf16.mxu1 %v11312_v40  ;;  %v11322_v41 = vld [vmem:[#allocation52_spill] sm:$0xff]  ;;  %v11323_v40 = vld [vmem:[#allocation61_spill] sm:$0xff] }
 0x4f2   :  { %7117 = vmatpush1.bf16.msra.mxu0 %v11313_v6  ;;  %7181 = vmatpush1.bf16.msra.mxu1 %v11314_v44  ;;  %v11324_v6 = vld [vmem:[#allocation54_spill] sm:$0xff]  ;;  %v11325_v44 = vld [vmem:[#allocation63_spill] sm:$0xff] }
 0x4f3   :  { %7119 = vmatprep.subr.bf16.mxu0 %v11315_v21  ;;  %7183 = vmatprep.subr.bf16.mxu1 %v11316_v25  ;;  %v11326_v21 = vld [vmem:[#allocation56_spill] sm:$0xff]  ;;  %v11327_v25 = vld [vmem:[#allocation65_spill] sm:$0xff] }
 0x4f6   :  { %7121 = vmatpush1.bf16.msra.mxu0 %v11317_v35  ;;  %7185 = vmatpush1.bf16.msra.mxu1 %v11318_v4  ;;  %v11328_v35 = vld [vmem:[#allocation58_spill] sm:$0xff]  ;;  %v11329_v4 = vld [vmem:[#allocation67_spill] sm:$0xff] }
 0x4f7   :  { %7123 = vmatprep.subr.bf16.mxu0 %v11319_v49  ;;  %7187 = vmatprep.subr.bf16.mxu1 %v11320_v5  ;;  %v11330_v49 = vld [vmem:[#allocation60_spill] sm:$0xff]  ;;  %v11331_v5 = vld [vmem:[#allocation69_spill] sm:$0xff] }
 0x4fa   :  { %7125 = vmatpush1.bf16.msra.mxu0 %v11321_v10  ;;  %7189 = vmatpush1.bf16.msra.mxu1 %v11322_v41  ;;  %v11332_v10 = vld [vmem:[#allocation62_spill] sm:$0xff]  ;;  %v11333_v41 = vld [vmem:[#allocation71_spill] sm:$0xff] }
 0x4fb   :  { %7127 = vmatprep.subr.bf16.mxu0 %v11323_v40  ;;  %7191 = vmatprep.subr.bf16.mxu1 %v11324_v6  ;;  %v11334_v40 = vld [vmem:[#allocation64_spill] sm:$0xff]  ;;  %v11335_v6 = vld [vmem:[#allocation73_spill] sm:$0xff] }
 0x4fe   :  { %7129 = vmatpush1.bf16.msra.mxu0 %v11325_v44  ;;  %7193 = vmatpush1.bf16.msra.mxu1 %v11326_v21  ;;  %v11336_v44 = vld [vmem:[#allocation66_spill] sm:$0xff]  ;;  %v11337_v21 = vld [vmem:[#allocation75_spill] sm:$0xff] }
 0x4ff   :  { %7131 = vmatprep.subr.bf16.mxu0 %v11327_v25  ;;  %7195 = vmatprep.subr.bf16.mxu1 %v11328_v35  ;;  %v11338_v25 = vld [vmem:[#allocation68_spill] sm:$0xff]  ;;  %v11339_v35 = vld [vmem:[#allocation77_spill] sm:$0xff] }
 0x502   :  { %7133 = vmatpush1.bf16.msra.mxu0 %v11329_v4  ;;  %7197 = vmatpush1.bf16.msra.mxu1 %v11330_v49  ;;  %v11340_v4 = vld [vmem:[#allocation70_spill] sm:$0xff]  ;;  %v11341_v49 = vld [vmem:[#allocation79_spill] sm:$0xff] }
 0x503   :  { %7135 = vmatprep.subr.bf16.mxu0 %v11331_v5  ;;  %7199 = vmatprep.subr.bf16.mxu1 %v11332_v10  ;;  %v11342_v5 = vld [vmem:[#allocation72_spill] sm:$0xff]  ;;  %v11343_v10 = vld [vmem:[#allocation81_spill] sm:$0xff] }
 0x506   :  { %7137 = vmatpush1.bf16.msra.mxu0 %v11333_v41  ;;  %7201 = vmatpush1.bf16.msra.mxu1 %v11334_v40  ;;  %v11344_v41 = vld [vmem:[#allocation74_spill] sm:$0xff]  ;;  %v11345_v40 = vld [vmem:[#allocation83_spill] sm:$0xff] }
 0x507   :  { %7139 = vmatprep.subr.bf16.mxu0 %v11335_v6  ;;  %7203 = vmatprep.subr.bf16.mxu1 %v11336_v44  ;;  %v11346_v6 = vld [vmem:[#allocation76_spill] sm:$0xff]  ;;  %v11347_v44 = vld [vmem:[#allocation85_spill] sm:$0xff] }
 0x50a   :  { %7141 = vmatpush1.bf16.msra.mxu0 %v11337_v21  ;;  %7205 = vmatpush1.bf16.msra.mxu1 %v11338_v25  ;;  %v11348_v21 = vld [vmem:[#allocation78_spill] sm:$0xff]  ;;  %v11349_v25 = vld [vmem:[#allocation87_spill] sm:$0xff] }
 0x50b   :  { %7143 = vmatprep.subr.bf16.mxu0 %v11339_v35  ;;  %7207 = vmatprep.subr.bf16.mxu1 %v11340_v4  ;;  %v11350_v35 = vld [vmem:[#allocation80_spill] sm:$0xff]  ;;  %v11351_v4 = vld [vmem:[#allocation89_spill] sm:$0xff] }
 0x50e   :  { %7145 = vmatpush1.bf16.msra.mxu0 %v11341_v49  ;;  %7209 = vmatpush1.bf16.msra.mxu1 %v11342_v5  ;;  %v11352_v49 = vld [vmem:[#allocation82_spill] sm:$0xff] }
 0x50f   :  { %7147 = vmatprep.subr.bf16.mxu0 %v11343_v10  ;;  %7211 = vmatprep.subr.bf16.mxu1 %v11344_v41 }
 0x512   :  { %7149 = vmatpush1.bf16.msra.mxu0 %v11345_v40  ;;  %7213 = vmatpush1.bf16.msra.mxu1 %v11346_v6 }
 0x513   :  { %7151 = vmatprep.subr.bf16.mxu0 %v11347_v44  ;;  %7215 = vmatprep.subr.bf16.mxu1 %v11348_v21 }
 0x516   :  { %7153 = vmatpush1.bf16.msra.mxu0 %v11349_v25  ;;  %7217 = vmatpush1.bf16.msra.mxu1 %v11350_v35 }
 0x517   :  { %7219 = vmatprep.subr.bf16.mxu0 %v11351_v4  ;;  %7283 = vmatprep.subr.bf16.mxu1 %v11352_v49 }
 0x5a8   :  { %v2694_v5 = vpop.f32.mrb[12].mxu0  ;;  %v2765_v10 = vpop.f32.mrb[20].mxu1 }
 0x5a9   :  { %v2912_v41 = vadd.f32 %v2694_v5, %v11149_v14  ;;  %v2914_v40 = vadd.f32 %v2765_v10, %v11151_v34  ;;  %v2696_v13 = vpop.f32.mrb[13].mxu0  ;;  %v2767_v6 = vpop.f32.mrb[21].mxu1 }
 0x5aa   :  { %v2913_v44 = vadd.f32 %v2696_v13, %v11353_v43  ;;  %v2915_v21 = vadd.f32 %v2767_v6, %v11354_v2  ;;  %v11355_v6 = vld [vmem:[#allocation154_spill] sm:$0xff] }
 0x5ab   :  { %v5875_v51 = vmul.f32 -1.442695, %v2912_v41  ;;  %v5877_v25 = vmul.f32 -1.442695, %v2914_v40 }
 0x5ac   :  { %v5876_v23 = vmul.f32 -1.442695, %v2913_v44  ;;  %v5878_v35 = vmul.f32 -1.442695, %v2915_v21  ;;  %v2836_v27 = vpop.f32.mrb[14].mxu0  ;;  %v2907_v4 = vpop.f32.mrb[22].mxu1 }
 0x5ad   :  { %8370 = vpow2.f32 %v5875_v51  ;;  %v2838_v49 = vpop.f32.mrb[15].mxu0  ;;  %v2909_v0 = vpop.f32.mrb[23].mxu1  ;;  %v2918_v5 = vadd.f32 %v2907_v4, %v9391_v30  ;;  %v2916_v13 = vadd.f32 %v2836_v27, %v9389_v1 }
 0x5ae   :  { %8372 = vpow2.f32 %v5877_v25  ;;  %v2919_v10 = vadd.f32 %v2909_v0, %v11152_v39  ;;  %v2917_v41 = vadd.f32 %v2838_v49, %v11355_v6 }
 0x5af   :  { %8374 = vpow2.f32 %v5876_v23  ;;  %v5879_v43 = vmul.f32 -1.442695, %v2918_v5 }
 0x5b0   :  { %8376 = vpow2.f32 %v5878_v35  ;;  %v5880_v40 = vmul.f32 -1.442695, %v2919_v10 }
 0x5b1   :  { %8378 = vtanh.f32 %v2916_v13 }
 0x5b2   :  { %8380 = vpow2.f32 %v5879_v43 }
 0x5b3   :  { %8382 = vtanh.f32 %v2917_v41 }
 0x5b4   :  { %8384 = vpow2.f32 %v5880_v40 }
 0x5b7   :  { %v8371_v21 = vpop.eup %8370 }
 0x5b8   :  { %v8373_v44 = vpop.eup %8372  ;;  %v2926_v51 = vadd.f32 1.0, %v8371_v21 }
 0x5b9   :  { %v8375_v2 = vpop.eup %8374  ;;  %v2938_v25 = vadd.f32 1.0, %v8373_v44 }
 0x5ba   :  { %v8377_v23 = vpop.eup %8376  ;;  %8386 = vrcp.f32 %v2926_v51  ;;  %v2927_v35 = vadd.f32 1.0, %v8375_v2 }
 0x5bb   :  { %8388 = vrcp.f32 %v2938_v25  ;;  %v2939_v4 = vadd.f32 1.0, %v8377_v23  ;;  %v8379_v0 = vpop.eup %8378 }
 0x5bc   :  { %8390 = vrcp.f32 %v2927_v35  ;;  %v8381_v27 = vpop.eup %8380 }
 0x5bd   :  { %8392 = vrcp.f32 %v2939_v4  ;;  %v8383_v49 = vpop.eup %8382  ;;  %v2952_v25 = vadd.f32 1.0, %v8381_v27  ;;  %v11358_v27 = vld [vmem:[#allocation124_spill] sm:$0xff] }
 0x5be   :  { %v8385_v5 = vpop.eup %8384 }
 0x5bf   :  { %v2953_v21 = vadd.f32 1.0, %v8385_v5 }
 0x5c1   :  { %8394 = vrcp.f32 %v2953_v21  ;;  %v11363_v21 = vld [vmem:[#allocation137_spill] sm:$0xff] }
 0x5c4   :  { %v8387_v10 = vpop.eup %8386 }
 0x5c5   :  { %v8389_v13 = vpop.eup %8388  ;;  %v2960_v43 = vmul.f32 %v8387_v10, %v8379_v0 }
 0x5c6   :  { %v8391_v6 = vpop.eup %8390  ;;  %v2958_v41 = vmul.f32 %v8389_v13, %v9733_v57  ;;  %v11360_v13 = vld [vmem:[#allocation126_spill] sm:$0xff] }
 0x5c7   :  { %v8393_v44 = vpop.eup %8392  ;;  %v2961_v40 = vmul.f32 %v8391_v6, %v8383_v49  ;;  %v11357_v6 = vld [vmem:[#allocation131_spill] sm:$0xff]  ;;  %v11359_v49 = vld [vmem:[#allocation133_spill] sm:$0xff] }
 0x5c8   :  { %v2959_v51 = vmul.f32 %v8393_v44, %v9735_v62  ;;  %v9915_v2 = vadd.f32 %v2960_v43, %v2958_v41  ;;  %v11356_v62 = vld [vmem:[#allocation122_spill] sm:$0xff]  ;;  %v11361_v43 = vld [vmem:[#allocation135_spill] sm:$0xff]  ;;  %v11362_v41 = vld [vmem:[#allocation128_spill] sm:$0xff] }
 0x5c9   :  { %v11364_v44 = vld [vmem:[#allocation130_spill] sm:$0xff] }
 0x5ca   :  { %v9917_v23 = vadd.f32 %v2961_v40, %v2959_v51  ;;  %8396 = vtanh.f32 %v9915_v2  ;;  %v11365_v40 = vld [vmem:[#allocation139_spill] sm:$0xff]  ;;  %v11366_v51 = vld [vmem:[#allocation132_spill] sm:$0xff] }
 0x5cb   :  { %v8395_v35 = vpop.eup %8394 }
 0x5cc   :  { %8398 = vtanh.f32 %v9917_v23 }
 0x5cd   :  { %8400 = vrcp.f32 %v2952_v25  ;;  %v11367_v25 = vld [vmem:[#allocation141_spill] sm:$0xff] }
 0x5d4   :  { %v8397_v4 = vpop.eup %8396 }
 0x5d6   :  { %v8399_v0 = vpop.eup %8398 }
 0x5d7   :  { %v8401_v57 = vpop.eup %8400  ;;  %v2967_v5 = vmul.f32 %v8399_v0, %v8395_v35  ;;  %v11368_v35 = vld [vmem:[#allocation134_spill] sm:$0xff]  ;;  %v11370_v0 = vld [vmem:[#allocation136_spill] sm:$0xff] }
 0x5d8   :  { %v9921_v10 = vmul.f32 %v8401_v57, %v8397_v4  ;;  %v11369_v4 = vld [vmem:[#allocation143_spill] sm:$0xff]  ;;  %v11371_v57 = vld [vmem:[#allocation145_spill] sm:$0xff] }
 0x5d9   :  { %3034 = vmatprep.mubr.f32.mxu0 %v2967_v5  ;;  %3105 = vmatprep.mubr.f32.mxu1 %v2967_v5 }
 0x5da   :  { %3035 = vmatmul.mubr.f32.vlgmr.msra.gmra.mrb[16].mxu0 %v9921_v10  ;;  %3106 = vmatmul.mubr.f32.vlgmr.msra.gmra.mrb[24].mxu1 %v9921_v10 }
 0x5db   :  { %7221 = vmatpush1.bf16.msra.mxu0 %v11052_v18  ;;  %7285 = vmatpush1.bf16.msra.mxu1 %v11053_v16 }
 0x5dc   :  { %3176 = vmatprep.mubr.f32.mxu0 %v2967_v5  ;;  %3247 = vmatprep.mubr.f32.mxu1 %v2967_v5  ;;  %v11372_v5 = vld [vmem:[#allocation138_spill] sm:$0xff] }
 0x5dd   :  { %7223 = vmatprep.subr.bf16.mxu0 %v11054_v12  ;;  %7287 = vmatprep.subr.bf16.mxu1 %v11055_v7 }
 0x5df   :  { %7225 = vmatpush1.bf16.msra.mxu0 %v11056_v42  ;;  %7289 = vmatpush1.bf16.msra.mxu1 %v11057_v58 }
 0x5e0   :  { %7227 = vmatprep.subr.bf16.mxu0 %v11153_v11  ;;  %7291 = vmatprep.subr.bf16.mxu1 %v11154_v38 }
 0x5e3   :  { %7229 = vmatpush1.bf16.msra.mxu0 %v11155_v46  ;;  %7293 = vmatpush1.bf16.msra.mxu1 %v11156_v3 }
 0x5e4   :  { %7231 = vmatprep.subr.bf16.mxu0 %v11157_v9  ;;  %7295 = vmatprep.subr.bf16.mxu1 %v11158_v33 }
 0x5e7   :  { %7233 = vmatpush1.bf16.msra.mxu0 %v11159_v17  ;;  %7297 = vmatpush1.bf16.msra.mxu1 %v11255_v50 }
 0x5e8   :  { %7235 = vmatprep.subr.bf16.mxu0 %v11256_v26  ;;  %7299 = vmatprep.subr.bf16.mxu1 %v11257_v54 }
 0x5eb   :  { %7237 = vmatpush1.bf16.msra.mxu0 %v11258_v48  ;;  %7301 = vmatpush1.bf16.msra.mxu1 %v11259_v59 }
 0x5ec   :  { %7239 = vmatprep.subr.bf16.mxu0 %v11260_v37  ;;  %7303 = vmatprep.subr.bf16.mxu1 %v11261_v36 }
 0x5ef   :  { %7241 = vmatpush1.bf16.msra.mxu0 %v11262_v47  ;;  %7305 = vmatpush1.bf16.msra.mxu1 %v11263_v52 }
 0x5f0   :  { %7243 = vmatprep.subr.bf16.mxu0 %v11264_v32  ;;  %7307 = vmatprep.subr.bf16.mxu1 %v11265_v60 }
 0x5f3   :  { %7245 = vmatpush1.bf16.msra.mxu0 %v11171_v8  ;;  %7309 = vmatpush1.bf16.msra.mxu1 %v11266_v22 }
 0x5f4   :  { %7247 = vmatprep.subr.bf16.mxu0 %v11173_v24  ;;  %7311 = vmatprep.subr.bf16.mxu1 %v11267_v19 }
 0x5f7   :  { %7249 = vmatpush1.bf16.msra.mxu0 %v11175_v28  ;;  %7313 = vmatpush1.bf16.msra.mxu1 %v11268_v55 }
 0x5f8   :  { %7251 = vmatprep.subr.bf16.mxu0 %v11177_v20  ;;  %7315 = vmatprep.subr.bf16.mxu1 %v11178_v53 }
 0x5fb   :  { %7253 = vmatpush1.bf16.msra.mxu0 %v11179_v15  ;;  %7317 = vmatpush1.bf16.msra.mxu1 %v11180_v45 }
 0x5fc   :  { %7255 = vmatprep.subr.bf16.mxu0 %v11181_v63  ;;  %7319 = vmatprep.subr.bf16.mxu1 %v11087_v61 }
 0x5ff   :  { %7257 = vmatpush1.bf16.msra.mxu0 %v11182_v31  ;;  %7321 = vmatpush1.bf16.msra.mxu1 %v11089_v56 }
 0x600   :  { %7259 = vmatprep.subr.bf16.mxu0 %v11183_v29  ;;  %7323 = vmatprep.subr.bf16.mxu1 %v11356_v62 }
 0x603   :  { %7261 = vmatpush1.bf16.msra.mxu0 %v11357_v6  ;;  %7325 = vmatpush1.bf16.msra.mxu1 %v11358_v27 }
 0x604   :  { %7263 = vmatprep.subr.bf16.mxu0 %v11359_v49  ;;  %7327 = vmatprep.subr.bf16.mxu1 %v11360_v13  ;;  %v11455_v13 = vld [vmem:[#allocation153_spill] sm:$0xff] }
 0x607   :  { %7265 = vmatpush1.bf16.msra.mxu0 %v11361_v43  ;;  %7329 = vmatpush1.bf16.msra.mxu1 %v11362_v41  ;;  %v11373_v41 = vld [vmem:[#allocation147_spill] sm:$0xff] }
 0x608   :  { %7267 = vmatprep.subr.bf16.mxu0 %v11363_v21  ;;  %7331 = vmatprep.subr.bf16.mxu1 %v11364_v44  ;;  %v11374_v21 = vld [vmem:[#allocation140_spill] sm:$0xff]  ;;  %v11454_v43 = vld [vmem:[#allocation151_spill] sm:$0xff] }
 0x609   :  { %v11375_v44 = vld [vmem:[#allocation148_spill] sm:$0xff] }
 0x60b   :  { %7269 = vmatpush1.bf16.msra.mxu0 %v11365_v40  ;;  %7333 = vmatpush1.bf16.msra.mxu1 %v11366_v51  ;;  %v11376_v40 = vld [vmem:[#allocation142_spill] sm:$0xff]  ;;  %v11377_v51 = vld [vmem:[#allocation149_spill] sm:$0xff] }
 0x60c   :  { %7271 = vmatprep.subr.bf16.mxu0 %v11367_v25  ;;  %7335 = vmatprep.subr.bf16.mxu1 %v11368_v35  ;;  %v11378_v25 = vld [vmem:[#allocation144_spill] sm:$0xff]  ;;  %v11379_v35 = vld [vmem:[#allocation91_spill] sm:$0xff] }
 0x60f   :  { %7273 = vmatpush1.bf16.msra.mxu0 %v11369_v4  ;;  %7337 = vmatpush1.bf16.msra.mxu1 %v11370_v0  ;;  %v11380_v4 = vld [vmem:[#allocation84_spill] sm:$0xff] }
 0x610   :  { %7275 = vmatprep.subr.bf16.mxu0 %v11371_v57  ;;  %7339 = vmatprep.subr.bf16.mxu1 %v11372_v5  ;;  %v11381_v5 = vld [vmem:[#allocation93_spill] sm:$0xff]  ;;  %v11399_v57 = vld [vmem:[#allocation26_spill] sm:$0xff] }
 0x613   :  { %7277 = vmatpush1.bf16.msra.mxu0 %v11373_v41  ;;  %7341 = vmatpush1.bf16.msra.mxu1 %v11374_v21  ;;  %v11382_v41 = vld [vmem:[#allocation86_spill] sm:$0xff]  ;;  %v2969_v21 = vld [vmem:[#allocation4 + $0x8] sm:$0x3] }
 0x614   :  { %7279 = vmatprep.subr.bf16.mxu0 %v11375_v44  ;;  %7343 = vmatprep.subr.bf16.mxu1 %v11376_v40  ;;  %v11383_v44 = vmov 0.0   ;;  %v11394_v40 = vld [vmem:[#allocation31_spill] sm:$0xff] }
 0x617   :  { %7281 = vmatpush1.bf16.msra.mxu0 %v11377_v51  ;;  %7345 = vmatpush1.bf16.msra.mxu1 %v11378_v25  ;;  %v11384_v51 = vld [vmem:[#allocation95_spill] sm:$0xff]  ;;  %v11385_v25 = vld [vmem:[#allocation88_spill] sm:$0xff] }
 0x618   :  { %3257 = vmatprep.subr.mxu0 %v11379_v35  ;;  %3328 = vmatprep.subr.mxu1 %v11380_v4  ;;  %v11386_v4 = vld [vmem:[#allocation118_spill] sm:$0xff] }
 0x619   :  { %v11392_v35 = vld [vmem:[#allocation30_spill] sm:$0xff] }
 0x61a   :  { %3177 = vmatmul.mubr.f32.vlgmr.msra.gmra.mrb[18].mxu0 %v9921_v10  ;;  %3248 = vmatmul.mubr.f32.vlgmr.msra.gmra.mrb[26].mxu1 %v9921_v10  ;;  %v11387_v10 = vld [vmem:[#allocation120_spill] sm:$0xff] }
 0x61b   :  { %3258 = vmatpush1.msra.mxu0 %v11381_v5  ;;  %3329 = vmatpush1.msra.mxu1 %v11382_v41  ;;  %v11388_v41 = vld [vmem:[#allocation27_spill] sm:$0xff]  ;;  %v11389_v5 = vld [vmem:[#allocation21_spill] sm:$0xff] }
 0x61c   :  { %3321 = vmatprep.mubr.f32.mxu0 %v11383_v44  ;;  %3392 = vmatprep.mubr.f32.mxu1 %v11383_v44 }
 0x61d   :  { %3399 = vmatprep.subr.mxu0 %v11384_v51  ;;  %3470 = vmatprep.subr.mxu1 %v11385_v25  ;;  %v11390_v25 = vld [vmem:[#allocation28_spill] sm:$0xff]  ;;  %v11391_v51 = vld [vmem:[#allocation22_spill] sm:$0xff] }
 0x61e   :  { %5881 = vmatmul.mubr.msk.f32.vlgmr.msra.gmra.mrb[16].mxu0 %vm684_vm0, %v2969_v21  ;;  %5882 = vmatmul.mubr.msk.f32.vlgmr.msra.gmra.mrb[24].mxu1 %vm684_vm0, %v2969_v21 }
 0x61f   :  { %3400 = vmatpush1.msra.mxu0 %v11386_v4  ;;  %3463 = vmatprep.mubr.f32.mxu0 %v11383_v44  ;;  %v11393_v4 = vld [vmem:[#allocation23_spill] sm:$0xff] }
 0x620   :  { %3471 = vmatpush1.msra.mxu1 %v11387_v10  ;;  %3534 = vmatprep.mubr.f32.mxu1 %v11383_v44  ;;  %v11395_v10 = vld [vmem:[#allocation24_spill] sm:$0xff]  ;;  %v11396_v44 = vld [vmem:[#allocation34_spill] sm:$0xff] }
 0x621   :  { %7347 = vmatprep.subr.bf16.mxu0 %v11388_v41  ;;  %7411 = vmatprep.subr.bf16.mxu1 %v11389_v5  ;;  %v11397_v41 = vld [vmem:[#allocation25_spill] sm:$0xff]  ;;  %v11398_v5 = vld [vmem:[#allocation35_spill] sm:$0xff] }
 0x622   :  { %5883 = vmatmul.mubr.msk.f32.vlgmr.msra.gmra.mrb[18].mxu0 %vm684_vm0, %v2969_v21  ;;  %5884 = vmatmul.mubr.msk.f32.vlgmr.msra.gmra.mrb[26].mxu1 %vm684_vm0, %v2969_v21  ;;  %v11400_v21 = vld [vmem:[#allocation37_spill] sm:$0xff] }
 0x623   :  { %7349 = vmatpush1.bf16.msra.mxu0 %v11390_v25  ;;  %7413 = vmatpush1.bf16.msra.mxu1 %v11391_v51  ;;  %v11401_v25 = vld [vmem:[#allocation29_spill] sm:$0xff]  ;;  %v11402_v51 = vld [vmem:[#allocation39_spill] sm:$0xff] }
 0x624   :  { %7351 = vmatprep.subr.bf16.mxu0 %v11392_v35  ;;  %7415 = vmatprep.subr.bf16.mxu1 %v11393_v4  ;;  %v11403_v35 = vld [vmem:[#allocation32_spill] sm:$0xff]  ;;  %v11404_v4 = vld [vmem:[#allocation41_spill] sm:$0xff] }
 0x627   :  { %7353 = vmatpush1.bf16.msra.mxu0 %v11394_v40  ;;  %7417 = vmatpush1.bf16.msra.mxu1 %v11395_v10  ;;  %v11405_v40 = vld [vmem:[#allocation33_spill] sm:$0xff]  ;;  %v11406_v10 = vld [vmem:[#allocation43_spill] sm:$0xff] }
 0x628   :  { %7355 = vmatprep.subr.bf16.mxu0 %v11396_v44  ;;  %7419 = vmatprep.subr.bf16.mxu1 %v11397_v41  ;;  %v11407_v44 = vld [vmem:[#allocation36_spill] sm:$0xff]  ;;  %v11408_v41 = vld [vmem:[#allocation45_spill] sm:$0xff] }
 0x62b   :  { %7357 = vmatpush1.bf16.msra.mxu0 %v11398_v5  ;;  %7421 = vmatpush1.bf16.msra.mxu1 %v11399_v57  ;;  %v11409_v5 = vld [vmem:[#allocation38_spill] sm:$0xff]  ;;  %v11410_v57 = vld [vmem:[#allocation47_spill] sm:$0xff] }
 0x62c   :  { %7359 = vmatprep.subr.bf16.mxu0 %v11400_v21  ;;  %7423 = vmatprep.subr.bf16.mxu1 %v11401_v25  ;;  %v11411_v21 = vld [vmem:[#allocation40_spill] sm:$0xff]  ;;  %v11412_v25 = vld [vmem:[#allocation49_spill] sm:$0xff] }
 0x62f   :  { %7361 = vmatpush1.bf16.msra.mxu0 %v11402_v51  ;;  %7425 = vmatpush1.bf16.msra.mxu1 %v11403_v35  ;;  %v11413_v51 = vld [vmem:[#allocation42_spill] sm:$0xff]  ;;  %v11414_v35 = vld [vmem:[#allocation51_spill] sm:$0xff] }
 0x630   :  { %7363 = vmatprep.subr.bf16.mxu0 %v11404_v4  ;;  %7427 = vmatprep.subr.bf16.mxu1 %v11405_v40  ;;  %v11415_v4 = vld [vmem:[#allocation44_spill] sm:$0xff]  ;;  %v11416_v40 = vld [vmem:[#allocation53_spill] sm:$0xff] }
 0x633   :  { %7365 = vmatpush1.bf16.msra.mxu0 %v11406_v10  ;;  %7429 = vmatpush1.bf16.msra.mxu1 %v11407_v44  ;;  %v11417_v10 = vld [vmem:[#allocation46_spill] sm:$0xff]  ;;  %v11418_v44 = vld [vmem:[#allocation55_spill] sm:$0xff] }
 0x634   :  { %7367 = vmatprep.subr.bf16.mxu0 %v11408_v41  ;;  %7431 = vmatprep.subr.bf16.mxu1 %v11409_v5  ;;  %v11419_v41 = vld [vmem:[#allocation48_spill] sm:$0xff]  ;;  %v11420_v5 = vld [vmem:[#allocation57_spill] sm:$0xff] }
 0x637   :  { %7369 = vmatpush1.bf16.msra.mxu0 %v11410_v57  ;;  %7433 = vmatpush1.bf16.msra.mxu1 %v11411_v21  ;;  %v11421_v57 = vld [vmem:[#allocation50_spill] sm:$0xff]  ;;  %v11422_v21 = vld [vmem:[#allocation59_spill] sm:$0xff] }
 0x638   :  { %7371 = vmatprep.subr.bf16.mxu0 %v11412_v25  ;;  %7435 = vmatprep.subr.bf16.mxu1 %v11413_v51  ;;  %v11423_v25 = vld [vmem:[#allocation52_spill] sm:$0xff]  ;;  %v11424_v51 = vld [vmem:[#allocation61_spill] sm:$0xff] }
 0x63b   :  { %7373 = vmatpush1.bf16.msra.mxu0 %v11414_v35  ;;  %7437 = vmatpush1.bf16.msra.mxu1 %v11415_v4  ;;  %v11425_v35 = vld [vmem:[#allocation54_spill] sm:$0xff]  ;;  %v11426_v4 = vld [vmem:[#allocation63_spill] sm:$0xff] }
 0x63c   :  { %7375 = vmatprep.subr.bf16.mxu0 %v11416_v40  ;;  %7439 = vmatprep.subr.bf16.mxu1 %v11417_v10  ;;  %v11427_v40 = vld [vmem:[#allocation56_spill] sm:$0xff]  ;;  %v11428_v10 = vld [vmem:[#allocation65_spill] sm:$0xff] }
 0x63f   :  { %7377 = vmatpush1.bf16.msra.mxu0 %v11418_v44  ;;  %7441 = vmatpush1.bf16.msra.mxu1 %v11419_v41  ;;  %v11429_v44 = vld [vmem:[#allocation58_spill] sm:$0xff]  ;;  %v11430_v41 = vld [vmem:[#allocation67_spill] sm:$0xff] }
 0x640   :  { %7379 = vmatprep.subr.bf16.mxu0 %v11420_v5  ;;  %7443 = vmatprep.subr.bf16.mxu1 %v11421_v57  ;;  %v11431_v5 = vld [vmem:[#allocation60_spill] sm:$0xff]  ;;  %v11432_v57 = vld [vmem:[#allocation69_spill] sm:$0xff] }
 0x643   :  { %7381 = vmatpush1.bf16.msra.mxu0 %v11422_v21  ;;  %7445 = vmatpush1.bf16.msra.mxu1 %v11423_v25  ;;  %v11433_v21 = vld [vmem:[#allocation62_spill] sm:$0xff]  ;;  %v11434_v25 = vld [vmem:[#allocation71_spill] sm:$0xff] }
 0x644   :  { %7383 = vmatprep.subr.bf16.mxu0 %v11424_v51  ;;  %7447 = vmatprep.subr.bf16.mxu1 %v11425_v35  ;;  %v11435_v51 = vld [vmem:[#allocation64_spill] sm:$0xff]  ;;  %v11436_v35 = vld [vmem:[#allocation73_spill] sm:$0xff] }
 0x647   :  { %7385 = vmatpush1.bf16.msra.mxu0 %v11426_v4  ;;  %7449 = vmatpush1.bf16.msra.mxu1 %v11427_v40  ;;  %v11437_v4 = vld [vmem:[#allocation66_spill] sm:$0xff]  ;;  %v11438_v40 = vld [vmem:[#allocation75_spill] sm:$0xff] }
 0x648   :  { %7387 = vmatprep.subr.bf16.mxu0 %v11428_v10  ;;  %7451 = vmatprep.subr.bf16.mxu1 %v11429_v44  ;;  %v11439_v10 = vld [vmem:[#allocation68_spill] sm:$0xff]  ;;  %v11440_v44 = vld [vmem:[#allocation77_spill] sm:$0xff] }
 0x64b   :  { %7389 = vmatpush1.bf16.msra.mxu0 %v11430_v41  ;;  %7453 = vmatpush1.bf16.msra.mxu1 %v11431_v5  ;;  %v11441_v41 = vld [vmem:[#allocation70_spill] sm:$0xff]  ;;  %v11442_v5 = vld [vmem:[#allocation79_spill] sm:$0xff] }
 0x64c   :  { %7391 = vmatprep.subr.bf16.mxu0 %v11432_v57  ;;  %7455 = vmatprep.subr.bf16.mxu1 %v11433_v21  ;;  %v11443_v57 = vld [vmem:[#allocation72_spill] sm:$0xff]  ;;  %v11444_v21 = vld [vmem:[#allocation81_spill] sm:$0xff] }
 0x64f   :  { %7393 = vmatpush1.bf16.msra.mxu0 %v11434_v25  ;;  %7457 = vmatpush1.bf16.msra.mxu1 %v11435_v51  ;;  %v11445_v25 = vld [vmem:[#allocation74_spill] sm:$0xff]  ;;  %v11446_v51 = vld [vmem:[#allocation83_spill] sm:$0xff] }
 0x650   :  { %7395 = vmatprep.subr.bf16.mxu0 %v11436_v35  ;;  %7459 = vmatprep.subr.bf16.mxu1 %v11437_v4  ;;  %v11447_v35 = vld [vmem:[#allocation76_spill] sm:$0xff]  ;;  %v11448_v4 = vld [vmem:[#allocation85_spill] sm:$0xff] }
 0x653   :  { %7397 = vmatpush1.bf16.msra.mxu0 %v11438_v40  ;;  %7461 = vmatpush1.bf16.msra.mxu1 %v11439_v10  ;;  %v11449_v40 = vld [vmem:[#allocation78_spill] sm:$0xff]  ;;  %v11450_v10 = vld [vmem:[#allocation87_spill] sm:$0xff] }
 0x654   :  { %7399 = vmatprep.subr.bf16.mxu0 %v11440_v44  ;;  %7463 = vmatprep.subr.bf16.mxu1 %v11441_v41  ;;  %v11451_v44 = vld [vmem:[#allocation80_spill] sm:$0xff]  ;;  %v11452_v41 = vld [vmem:[#allocation89_spill] sm:$0xff] }
 0x657   :  { %7401 = vmatpush1.bf16.msra.mxu0 %v11442_v5  ;;  %7465 = vmatpush1.bf16.msra.mxu1 %v11443_v57  ;;  %v11453_v5 = vld [vmem:[#allocation82_spill] sm:$0xff] }
 0x658   :  { %7403 = vmatprep.subr.bf16.mxu0 %v11444_v21  ;;  %7467 = vmatprep.subr.bf16.mxu1 %v11445_v25 }
 0x65b   :  { %7405 = vmatpush1.bf16.msra.mxu0 %v11446_v51  ;;  %7469 = vmatpush1.bf16.msra.mxu1 %v11447_v35 }
 0x65c   :  { %7407 = vmatprep.subr.bf16.mxu0 %v11448_v4  ;;  %7471 = vmatprep.subr.bf16.mxu1 %v11449_v40 }
 0x65f   :  { %7409 = vmatpush1.bf16.msra.mxu0 %v11450_v10  ;;  %7473 = vmatpush1.bf16.msra.mxu1 %v11451_v44 }
 0x660   :  { %7475 = vmatprep.subr.bf16.mxu0 %v11452_v41  ;;  %7539 = vmatprep.subr.bf16.mxu1 %v11453_v5 }
 0x6f1   :  { %v3323_v57 = vpop.f32.mrb[16].mxu0  ;;  %v3394_v21 = vpop.f32.mrb[24].mxu1 }
 0x6f2   :  { %v3541_v25 = vadd.f32 %v3323_v57, %v11149_v14  ;;  %v3543_v51 = vadd.f32 %v3394_v21, %v11151_v34  ;;  %v3325_v0 = vpop.f32.mrb[17].mxu0  ;;  %v3396_v35 = vpop.f32.mrb[25].mxu1 }
 0x6f3   :  { %v3542_v4 = vadd.f32 %v3325_v0, %v11454_v43  ;;  %v3544_v40 = vadd.f32 %v3396_v35, %v11455_v13  ;;  %v11456_v35 = vld [vmem:[#allocation154_spill] sm:$0xff] }
 0x6f4   :  { %v5885_v49 = vmul.f32 -1.442695, %v3541_v25  ;;  %v5887_v10 = vmul.f32 -1.442695, %v3543_v51 }
 0x6f5   :  { %v5886_v27 = vmul.f32 -1.442695, %v3542_v4  ;;  %v5888_v44 = vmul.f32 -1.442695, %v3544_v40  ;;  %v3465_v6 = vpop.f32.mrb[18].mxu0  ;;  %v3536_v41 = vpop.f32.mrb[26].mxu1 }
 0x6f6   :  { %8402 = vpow2.f32 %v5885_v49  ;;  %v3467_v5 = vpop.f32.mrb[19].mxu0  ;;  %v3538_v62 = vpop.f32.mrb[27].mxu1  ;;  %v3547_v57 = vadd.f32 %v3536_v41, %v9391_v30  ;;  %v3545_v0 = vadd.f32 %v3465_v6, %v9389_v1 }
 0x6f7   :  { %8404 = vpow2.f32 %v5887_v10  ;;  %v3548_v21 = vadd.f32 %v3538_v62, %v11152_v39  ;;  %v3546_v25 = vadd.f32 %v3467_v5, %v11456_v35 }
 0x6f8   :  { %8406 = vpow2.f32 %v5886_v27  ;;  %v5889_v43 = vmul.f32 -1.442695, %v3547_v57 }
 0x6f9   :  { %8408 = vpow2.f32 %v5888_v44  ;;  %v5890_v51 = vmul.f32 -1.442695, %v3548_v21 }
 0x6fa   :  { %8410 = vtanh.f32 %v3545_v0 }
 0x6fb   :  { %8412 = vpow2.f32 %v5889_v43 }
 0x6fc   :  { %8414 = vtanh.f32 %v3546_v25 }
 0x6fd   :  { %8416 = vpow2.f32 %v5890_v51 }
 0x700   :  { %v8403_v40 = vpop.eup %8402 }
 0x701   :  { %v8405_v4 = vpop.eup %8404  ;;  %v3555_v49 = vadd.f32 1.0, %v8403_v40 }
 0x702   :  { %v8407_v13 = vpop.eup %8406  ;;  %v3567_v10 = vadd.f32 1.0, %v8405_v4 }
 0x703   :  { %v8409_v27 = vpop.eup %8408  ;;  %8418 = vrcp.f32 %v3555_v49  ;;  %v3556_v41 = vadd.f32 1.0, %v8407_v13 }
 0x704   :  { %8420 = vrcp.f32 %v3567_v10  ;;  %v3568_v62 = vadd.f32 1.0, %v8409_v27  ;;  %v8411_v6 = vpop.eup %8410 }
 0x705   :  { %8422 = vrcp.f32 %v3556_v41  ;;  %v8413_v44 = vpop.eup %8412 }
 0x706   :  { %8424 = vrcp.f32 %v3568_v62  ;;  %v8415_v5 = vpop.eup %8414  ;;  %v3581_v10 = vadd.f32 1.0, %v8413_v44  ;;  %v11459_v44 = vld [vmem:[#allocation124_spill] sm:$0xff] }
 0x707   :  { %v8417_v57 = vpop.eup %8416 }
 0x708   :  { %v3582_v40 = vadd.f32 1.0, %v8417_v57 }
 0x70a   :  { %8426 = vrcp.f32 %v3582_v40  ;;  %v11464_v40 = vld [vmem:[#allocation137_spill] sm:$0xff] }
 0x70d   :  { %v8419_v21 = vpop.eup %8418 }
 0x70e   :  { %v8421_v0 = vpop.eup %8420  ;;  %v3589_v43 = vmul.f32 %v8419_v21, %v8411_v6 }
 0x70f   :  { %v8423_v35 = vpop.eup %8422  ;;  %v3587_v25 = vmul.f32 %v8421_v0, %v9915_v2  ;;  %v11461_v0 = vld [vmem:[#allocation126_spill] sm:$0xff] }
 0x710   :  { %v8425_v4 = vpop.eup %8424  ;;  %v3590_v51 = vmul.f32 %v8423_v35, %v8415_v5  ;;  %v11458_v35 = vld [vmem:[#allocation131_spill] sm:$0xff]  ;;  %v11460_v5 = vld [vmem:[#allocation133_spill] sm:$0xff] }
 0x711   :  { %v3588_v49 = vmul.f32 %v8425_v4, %v9917_v23  ;;  %v10081_v13 = vadd.f32 %v3589_v43, %v3587_v25  ;;  %v11457_v23 = vld [vmem:[#allocation122_spill] sm:$0xff]  ;;  %v11462_v43 = vld [vmem:[#allocation135_spill] sm:$0xff]  ;;  %v11463_v25 = vld [vmem:[#allocation128_spill] sm:$0xff] }
 0x712   :  { %v11465_v4 = vld [vmem:[#allocation130_spill] sm:$0xff] }
 0x713   :  { %v10083_v27 = vadd.f32 %v3590_v51, %v3588_v49  ;;  %8428 = vtanh.f32 %v10081_v13  ;;  %v11466_v51 = vld [vmem:[#allocation139_spill] sm:$0xff]  ;;  %v11467_v49 = vld [vmem:[#allocation132_spill] sm:$0xff] }
 0x714   :  { %v8427_v41 = vpop.eup %8426 }
 0x715   :  { %8430 = vtanh.f32 %v10083_v27 }
 0x716   :  { %8432 = vrcp.f32 %v3581_v10  ;;  %v11468_v10 = vld [vmem:[#allocation141_spill] sm:$0xff] }
 0x71d   :  { %v8429_v62 = vpop.eup %8428 }
 0x71f   :  { %v8431_v6 = vpop.eup %8430 }
 0x720   :  { %v8433_v2 = vpop.eup %8432  ;;  %v3596_v57 = vmul.f32 %v8431_v6, %v8427_v41  ;;  %v11469_v41 = vld [vmem:[#allocation134_spill] sm:$0xff]  ;;  %v11471_v6 = vld [vmem:[#allocation136_spill] sm:$0xff] }
 0x721   :  { %v10087_v21 = vmul.f32 %v8433_v2, %v8429_v62  ;;  %v11470_v62 = vld [vmem:[#allocation143_spill] sm:$0xff]  ;;  %v11472_v2 = vld [vmem:[#allocation145_spill] sm:$0xff] }
 0x722   :  { %3663 = vmatprep.mubr.f32.mxu0 %v3596_v57  ;;  %3734 = vmatprep.mubr.f32.mxu1 %v3596_v57 }
 0x723   :  { %3664 = vmatmul.mubr.f32.vlgmr.msra.gmra.mrb[20].mxu0 %v10087_v21  ;;  %3735 = vmatmul.mubr.f32.vlgmr.msra.gmra.mrb[28].mxu1 %v10087_v21 }
 0x724   :  { %7477 = vmatpush1.bf16.msra.mxu0 %v11052_v18  ;;  %7541 = vmatpush1.bf16.msra.mxu1 %v11053_v16 }
 0x725   :  { %3805 = vmatprep.mubr.f32.mxu0 %v3596_v57  ;;  %3876 = vmatprep.mubr.f32.mxu1 %v3596_v57  ;;  %v11473_v57 = vld [vmem:[#allocation138_spill] sm:$0xff] }
 0x726   :  { %7479 = vmatprep.subr.bf16.mxu0 %v11054_v12  ;;  %7543 = vmatprep.subr.bf16.mxu1 %v11055_v7 }
 0x728   :  { %7481 = vmatpush1.bf16.msra.mxu0 %v11056_v42  ;;  %7545 = vmatpush1.bf16.msra.mxu1 %v11057_v58 }
 0x729   :  { %7483 = vmatprep.subr.bf16.mxu0 %v11153_v11  ;;  %7547 = vmatprep.subr.bf16.mxu1 %v11154_v38 }
 0x72c   :  { %7485 = vmatpush1.bf16.msra.mxu0 %v11155_v46  ;;  %7549 = vmatpush1.bf16.msra.mxu1 %v11156_v3 }
 0x72d   :  { %7487 = vmatprep.subr.bf16.mxu0 %v11157_v9  ;;  %7551 = vmatprep.subr.bf16.mxu1 %v11158_v33 }
 0x730   :  { %7489 = vmatpush1.bf16.msra.mxu0 %v11159_v17  ;;  %7553 = vmatpush1.bf16.msra.mxu1 %v11255_v50 }
 0x731   :  { %7491 = vmatprep.subr.bf16.mxu0 %v11256_v26  ;;  %7555 = vmatprep.subr.bf16.mxu1 %v11257_v54 }
 0x734   :  { %7493 = vmatpush1.bf16.msra.mxu0 %v11258_v48  ;;  %7557 = vmatpush1.bf16.msra.mxu1 %v11259_v59 }
 0x735   :  { %7495 = vmatprep.subr.bf16.mxu0 %v11260_v37  ;;  %7559 = vmatprep.subr.bf16.mxu1 %v11261_v36 }
 0x738   :  { %7497 = vmatpush1.bf16.msra.mxu0 %v11262_v47  ;;  %7561 = vmatpush1.bf16.msra.mxu1 %v11263_v52 }
 0x739   :  { %7499 = vmatprep.subr.bf16.mxu0 %v11264_v32  ;;  %7563 = vmatprep.subr.bf16.mxu1 %v11265_v60 }
 0x73c   :  { %7501 = vmatpush1.bf16.msra.mxu0 %v11171_v8  ;;  %7565 = vmatpush1.bf16.msra.mxu1 %v11266_v22 }
 0x73d   :  { %7503 = vmatprep.subr.bf16.mxu0 %v11173_v24  ;;  %7567 = vmatprep.subr.bf16.mxu1 %v11267_v19 }
 0x740   :  { %7505 = vmatpush1.bf16.msra.mxu0 %v11175_v28  ;;  %7569 = vmatpush1.bf16.msra.mxu1 %v11268_v55 }
 0x741   :  { %7507 = vmatprep.subr.bf16.mxu0 %v11177_v20  ;;  %7571 = vmatprep.subr.bf16.mxu1 %v11178_v53 }
 0x744   :  { %7509 = vmatpush1.bf16.msra.mxu0 %v11179_v15  ;;  %7573 = vmatpush1.bf16.msra.mxu1 %v11180_v45 }
 0x745   :  { %7511 = vmatprep.subr.bf16.mxu0 %v11181_v63  ;;  %7575 = vmatprep.subr.bf16.mxu1 %v11087_v61 }
 0x748   :  { %7513 = vmatpush1.bf16.msra.mxu0 %v11182_v31  ;;  %7577 = vmatpush1.bf16.msra.mxu1 %v11089_v56 }
 0x749   :  { %7515 = vmatprep.subr.bf16.mxu0 %v11183_v29  ;;  %7579 = vmatprep.subr.bf16.mxu1 %v11457_v23 }
 0x74c   :  { %7517 = vmatpush1.bf16.msra.mxu0 %v11458_v35  ;;  %7581 = vmatpush1.bf16.msra.mxu1 %v11459_v44 }
 0x74d   :  { %7519 = vmatprep.subr.bf16.mxu0 %v11460_v5  ;;  %7583 = vmatprep.subr.bf16.mxu1 %v11461_v0  ;;  %v11556_v0 = vld [vmem:[#allocation153_spill] sm:$0xff] }
 0x750   :  { %7521 = vmatpush1.bf16.msra.mxu0 %v11462_v43  ;;  %7585 = vmatpush1.bf16.msra.mxu1 %v11463_v25  ;;  %v11474_v25 = vld [vmem:[#allocation147_spill] sm:$0xff] }
 0x751   :  { %7523 = vmatprep.subr.bf16.mxu0 %v11464_v40  ;;  %7587 = vmatprep.subr.bf16.mxu1 %v11465_v4  ;;  %v11475_v40 = vld [vmem:[#allocation140_spill] sm:$0xff]  ;;  %v11555_v43 = vld [vmem:[#allocation151_spill] sm:$0xff] }
 0x752   :  { %v11476_v4 = vld [vmem:[#allocation148_spill] sm:$0xff] }
 0x754   :  { %7525 = vmatpush1.bf16.msra.mxu0 %v11466_v51  ;;  %7589 = vmatpush1.bf16.msra.mxu1 %v11467_v49  ;;  %v11477_v51 = vld [vmem:[#allocation142_spill] sm:$0xff]  ;;  %v11478_v49 = vld [vmem:[#allocation149_spill] sm:$0xff] }
 0x755   :  { %7527 = vmatprep.subr.bf16.mxu0 %v11468_v10  ;;  %7591 = vmatprep.subr.bf16.mxu1 %v11469_v41  ;;  %v11479_v10 = vld [vmem:[#allocation144_spill] sm:$0xff]  ;;  %v11480_v41 = vld [vmem:[#allocation91_spill] sm:$0xff] }
 0x758   :  { %7529 = vmatpush1.bf16.msra.mxu0 %v11470_v62  ;;  %7593 = vmatpush1.bf16.msra.mxu1 %v11471_v6  ;;  %v11481_v62 = vld [vmem:[#allocation84_spill] sm:$0xff] }
 0x759   :  { %7531 = vmatprep.subr.bf16.mxu0 %v11472_v2  ;;  %7595 = vmatprep.subr.bf16.mxu1 %v11473_v57  ;;  %v11482_v57 = vld [vmem:[#allocation93_spill] sm:$0xff]  ;;  %v11500_v2 = vld [vmem:[#allocation26_spill] sm:$0xff] }
 0x75c   :  { %7533 = vmatpush1.bf16.msra.mxu0 %v11474_v25  ;;  %7597 = vmatpush1.bf16.msra.mxu1 %v11475_v40  ;;  %v11483_v25 = vld [vmem:[#allocation86_spill] sm:$0xff]  ;;  %v3598_v40 = vld [vmem:[#allocation4 + $0xa] sm:$0x3] }
 0x75d   :  { %7535 = vmatprep.subr.bf16.mxu0 %v11476_v4  ;;  %7599 = vmatprep.subr.bf16.mxu1 %v11477_v51  ;;  %v11484_v4 = vmov 0.0   ;;  %v11495_v51 = vld [vmem:[#allocation31_spill] sm:$0xff] }
 0x760   :  { %7537 = vmatpush1.bf16.msra.mxu0 %v11478_v49  ;;  %7601 = vmatpush1.bf16.msra.mxu1 %v11479_v10  ;;  %v11485_v49 = vld [vmem:[#allocation95_spill] sm:$0xff]  ;;  %v11486_v10 = vld [vmem:[#allocation88_spill] sm:$0xff] }
 0x761   :  { %3886 = vmatprep.subr.mxu0 %v11480_v41  ;;  %3957 = vmatprep.subr.mxu1 %v11481_v62  ;;  %v11487_v41 = vld [vmem:[#allocation118_spill] sm:$0xff]  ;;  %v11490_v62 = vld [vmem:[#allocation21_spill] sm:$0xff] }
 0x763   :  { %3806 = vmatmul.mubr.f32.vlgmr.msra.gmra.mrb[22].mxu0 %v10087_v21  ;;  %3877 = vmatmul.mubr.f32.vlgmr.msra.gmra.mrb[30].mxu1 %v10087_v21  ;;  %v11488_v21 = vld [vmem:[#allocation120_spill] sm:$0xff] }
 0x764   :  { %3887 = vmatpush1.msra.mxu0 %v11482_v57  ;;  %3958 = vmatpush1.msra.mxu1 %v11483_v25  ;;  %v11489_v25 = vld [vmem:[#allocation27_spill] sm:$0xff]  ;;  %v11493_v57 = vld [vmem:[#allocation30_spill] sm:$0xff] }
 0x765   :  { %3950 = vmatprep.mubr.f32.mxu0 %v11484_v4  ;;  %4021 = vmatprep.mubr.f32.mxu1 %v11484_v4 }
 0x766   :  { %4028 = vmatprep.subr.mxu0 %v11485_v49  ;;  %4099 = vmatprep.subr.mxu1 %v11486_v10  ;;  %v11491_v49 = vld [vmem:[#allocation28_spill] sm:$0xff]  ;;  %v11492_v10 = vld [vmem:[#allocation22_spill] sm:$0xff] }
 0x767   :  { %5891 = vmatmul.mubr.msk.f32.vlgmr.msra.gmra.mrb[20].mxu0 %vm684_vm0, %v3598_v40  ;;  %5892 = vmatmul.mubr.msk.f32.vlgmr.msra.gmra.mrb[28].mxu1 %vm684_vm0, %v3598_v40 }
 0x768   :  { %4029 = vmatpush1.msra.mxu0 %v11487_v41  ;;  %4092 = vmatprep.mubr.f32.mxu0 %v11484_v4  ;;  %v11494_v41 = vld [vmem:[#allocation23_spill] sm:$0xff] }
 0x769   :  { %4100 = vmatpush1.msra.mxu1 %v11488_v21  ;;  %4163 = vmatprep.mubr.f32.mxu1 %v11484_v4  ;;  %v11496_v21 = vld [vmem:[#allocation24_spill] sm:$0xff]  ;;  %v11497_v4 = vld [vmem:[#allocation34_spill] sm:$0xff] }
 0x76a   :  { %7603 = vmatprep.subr.bf16.mxu0 %v11489_v25  ;;  %7667 = vmatprep.subr.bf16.mxu1 %v11490_v62  ;;  %v11498_v25 = vld [vmem:[#allocation25_spill] sm:$0xff]  ;;  %v11499_v62 = vld [vmem:[#allocation35_spill] sm:$0xff] }
 0x76b   :  { %5893 = vmatmul.mubr.msk.f32.vlgmr.msra.gmra.mrb[22].mxu0 %vm684_vm0, %v3598_v40  ;;  %5894 = vmatmul.mubr.msk.f32.vlgmr.msra.gmra.mrb[30].mxu1 %vm684_vm0, %v3598_v40  ;;  %v11501_v40 = vld [vmem:[#allocation37_spill] sm:$0xff] }
 0x76c   :  { %7605 = vmatpush1.bf16.msra.mxu0 %v11491_v49  ;;  %7669 = vmatpush1.bf16.msra.mxu1 %v11492_v10  ;;  %v11502_v49 = vld [vmem:[#allocation29_spill] sm:$0xff]  ;;  %v11503_v10 = vld [vmem:[#allocation39_spill] sm:$0xff] }
 0x76d   :  { %7607 = vmatprep.subr.bf16.mxu0 %v11493_v57  ;;  %7671 = vmatprep.subr.bf16.mxu1 %v11494_v41  ;;  %v11504_v57 = vld [vmem:[#allocation32_spill] sm:$0xff]  ;;  %v11505_v41 = vld [vmem:[#allocation41_spill] sm:$0xff] }
 0x770   :  { %7609 = vmatpush1.bf16.msra.mxu0 %v11495_v51  ;;  %7673 = vmatpush1.bf16.msra.mxu1 %v11496_v21  ;;  %v11506_v51 = vld [vmem:[#allocation33_spill] sm:$0xff]  ;;  %v11507_v21 = vld [vmem:[#allocation43_spill] sm:$0xff] }
 0x771   :  { %7611 = vmatprep.subr.bf16.mxu0 %v11497_v4  ;;  %7675 = vmatprep.subr.bf16.mxu1 %v11498_v25  ;;  %v11508_v4 = vld [vmem:[#allocation36_spill] sm:$0xff]  ;;  %v11509_v25 = vld [vmem:[#allocation45_spill] sm:$0xff] }
 0x774   :  { %7613 = vmatpush1.bf16.msra.mxu0 %v11499_v62  ;;  %7677 = vmatpush1.bf16.msra.mxu1 %v11500_v2  ;;  %v11510_v62 = vld [vmem:[#allocation38_spill] sm:$0xff]  ;;  %v11511_v2 = vld [vmem:[#allocation47_spill] sm:$0xff] }
 0x775   :  { %7615 = vmatprep.subr.bf16.mxu0 %v11501_v40  ;;  %7679 = vmatprep.subr.bf16.mxu1 %v11502_v49  ;;  %v11512_v40 = vld [vmem:[#allocation40_spill] sm:$0xff]  ;;  %v11513_v49 = vld [vmem:[#allocation49_spill] sm:$0xff] }
 0x778   :  { %7617 = vmatpush1.bf16.msra.mxu0 %v11503_v10  ;;  %7681 = vmatpush1.bf16.msra.mxu1 %v11504_v57  ;;  %v11514_v10 = vld [vmem:[#allocation42_spill] sm:$0xff]  ;;  %v11515_v57 = vld [vmem:[#allocation51_spill] sm:$0xff] }
 0x779   :  { %7619 = vmatprep.subr.bf16.mxu0 %v11505_v41  ;;  %7683 = vmatprep.subr.bf16.mxu1 %v11506_v51  ;;  %v11516_v41 = vld [vmem:[#allocation44_spill] sm:$0xff]  ;;  %v11517_v51 = vld [vmem:[#allocation53_spill] sm:$0xff] }
 0x77c   :  { %7621 = vmatpush1.bf16.msra.mxu0 %v11507_v21  ;;  %7685 = vmatpush1.bf16.msra.mxu1 %v11508_v4  ;;  %v11518_v21 = vld [vmem:[#allocation46_spill] sm:$0xff]  ;;  %v11519_v4 = vld [vmem:[#allocation55_spill] sm:$0xff] }
 0x77d   :  { %7623 = vmatprep.subr.bf16.mxu0 %v11509_v25  ;;  %7687 = vmatprep.subr.bf16.mxu1 %v11510_v62  ;;  %v11520_v25 = vld [vmem:[#allocation48_spill] sm:$0xff]  ;;  %v11521_v62 = vld [vmem:[#allocation57_spill] sm:$0xff] }
 0x780   :  { %7625 = vmatpush1.bf16.msra.mxu0 %v11511_v2  ;;  %7689 = vmatpush1.bf16.msra.mxu1 %v11512_v40  ;;  %v11522_v2 = vld [vmem:[#allocation50_spill] sm:$0xff]  ;;  %v11523_v40 = vld [vmem:[#allocation59_spill] sm:$0xff] }
 0x781   :  { %7627 = vmatprep.subr.bf16.mxu0 %v11513_v49  ;;  %7691 = vmatprep.subr.bf16.mxu1 %v11514_v10  ;;  %v11524_v49 = vld [vmem:[#allocation52_spill] sm:$0xff]  ;;  %v11525_v10 = vld [vmem:[#allocation61_spill] sm:$0xff] }
 0x784   :  { %7629 = vmatpush1.bf16.msra.mxu0 %v11515_v57  ;;  %7693 = vmatpush1.bf16.msra.mxu1 %v11516_v41  ;;  %v11526_v57 = vld [vmem:[#allocation54_spill] sm:$0xff]  ;;  %v11527_v41 = vld [vmem:[#allocation63_spill] sm:$0xff] }
 0x785   :  { %7631 = vmatprep.subr.bf16.mxu0 %v11517_v51  ;;  %7695 = vmatprep.subr.bf16.mxu1 %v11518_v21  ;;  %v11528_v51 = vld [vmem:[#allocation56_spill] sm:$0xff]  ;;  %v11529_v21 = vld [vmem:[#allocation65_spill] sm:$0xff] }
 0x788   :  { %7633 = vmatpush1.bf16.msra.mxu0 %v11519_v4  ;;  %7697 = vmatpush1.bf16.msra.mxu1 %v11520_v25  ;;  %v11530_v4 = vld [vmem:[#allocation58_spill] sm:$0xff]  ;;  %v11531_v25 = vld [vmem:[#allocation67_spill] sm:$0xff] }
 0x789   :  { %7635 = vmatprep.subr.bf16.mxu0 %v11521_v62  ;;  %7699 = vmatprep.subr.bf16.mxu1 %v11522_v2  ;;  %v11532_v62 = vld [vmem:[#allocation60_spill] sm:$0xff]  ;;  %v11533_v2 = vld [vmem:[#allocation69_spill] sm:$0xff] }
 0x78c   :  { %7637 = vmatpush1.bf16.msra.mxu0 %v11523_v40  ;;  %7701 = vmatpush1.bf16.msra.mxu1 %v11524_v49  ;;  %v11534_v40 = vld [vmem:[#allocation62_spill] sm:$0xff]  ;;  %v11535_v49 = vld [vmem:[#allocation71_spill] sm:$0xff] }
 0x78d   :  { %7639 = vmatprep.subr.bf16.mxu0 %v11525_v10  ;;  %7703 = vmatprep.subr.bf16.mxu1 %v11526_v57  ;;  %v11536_v10 = vld [vmem:[#allocation64_spill] sm:$0xff]  ;;  %v11537_v57 = vld [vmem:[#allocation73_spill] sm:$0xff] }
 0x790   :  { %7641 = vmatpush1.bf16.msra.mxu0 %v11527_v41  ;;  %7705 = vmatpush1.bf16.msra.mxu1 %v11528_v51  ;;  %v11538_v41 = vld [vmem:[#allocation66_spill] sm:$0xff]  ;;  %v11539_v51 = vld [vmem:[#allocation75_spill] sm:$0xff] }
 0x791   :  { %7643 = vmatprep.subr.bf16.mxu0 %v11529_v21  ;;  %7707 = vmatprep.subr.bf16.mxu1 %v11530_v4  ;;  %v11540_v21 = vld [vmem:[#allocation68_spill] sm:$0xff]  ;;  %v11541_v4 = vld [vmem:[#allocation77_spill] sm:$0xff] }
 0x794   :  { %7645 = vmatpush1.bf16.msra.mxu0 %v11531_v25  ;;  %7709 = vmatpush1.bf16.msra.mxu1 %v11532_v62  ;;  %v11542_v25 = vld [vmem:[#allocation70_spill] sm:$0xff]  ;;  %v11543_v62 = vld [vmem:[#allocation79_spill] sm:$0xff] }
 0x795   :  { %7647 = vmatprep.subr.bf16.mxu0 %v11533_v2  ;;  %7711 = vmatprep.subr.bf16.mxu1 %v11534_v40  ;;  %v11544_v2 = vld [vmem:[#allocation72_spill] sm:$0xff]  ;;  %v11545_v40 = vld [vmem:[#allocation81_spill] sm:$0xff] }
 0x798   :  { %7649 = vmatpush1.bf16.msra.mxu0 %v11535_v49  ;;  %7713 = vmatpush1.bf16.msra.mxu1 %v11536_v10  ;;  %v11546_v49 = vld [vmem:[#allocation74_spill] sm:$0xff]  ;;  %v11547_v10 = vld [vmem:[#allocation83_spill] sm:$0xff] }
 0x799   :  { %7651 = vmatprep.subr.bf16.mxu0 %v11537_v57  ;;  %7715 = vmatprep.subr.bf16.mxu1 %v11538_v41  ;;  %v11548_v57 = vld [vmem:[#allocation76_spill] sm:$0xff]  ;;  %v11549_v41 = vld [vmem:[#allocation85_spill] sm:$0xff] }
 0x79c   :  { %7653 = vmatpush1.bf16.msra.mxu0 %v11539_v51  ;;  %7717 = vmatpush1.bf16.msra.mxu1 %v11540_v21  ;;  %v11550_v51 = vld [vmem:[#allocation78_spill] sm:$0xff]  ;;  %v11551_v21 = vld [vmem:[#allocation87_spill] sm:$0xff] }
 0x79d   :  { %7655 = vmatprep.subr.bf16.mxu0 %v11541_v4  ;;  %7719 = vmatprep.subr.bf16.mxu1 %v11542_v25  ;;  %v11552_v4 = vld [vmem:[#allocation80_spill] sm:$0xff]  ;;  %v11553_v25 = vld [vmem:[#allocation89_spill] sm:$0xff] }
 0x7a0   :  { %7657 = vmatpush1.bf16.msra.mxu0 %v11543_v62  ;;  %7721 = vmatpush1.bf16.msra.mxu1 %v11544_v2  ;;  %v11554_v62 = vld [vmem:[#allocation82_spill] sm:$0xff] }
 0x7a1   :  { %7659 = vmatprep.subr.bf16.mxu0 %v11545_v40  ;;  %7723 = vmatprep.subr.bf16.mxu1 %v11546_v49 }
 0x7a4   :  { %7661 = vmatpush1.bf16.msra.mxu0 %v11547_v10  ;;  %7725 = vmatpush1.bf16.msra.mxu1 %v11548_v57 }
 0x7a5   :  { %7663 = vmatprep.subr.bf16.mxu0 %v11549_v41  ;;  %7727 = vmatprep.subr.bf16.mxu1 %v11550_v51 }
 0x7a8   :  { %7665 = vmatpush1.bf16.msra.mxu0 %v11551_v21  ;;  %7729 = vmatpush1.bf16.msra.mxu1 %v11552_v4 }
 0x7a9   :  { %7731 = vmatprep.subr.bf16.mxu0 %v11553_v25  ;;  %7795 = vmatprep.subr.bf16.mxu1 %v11554_v62 }
 0x83a   :  { %v3952_v2 = vpop.f32.mrb[20].mxu0  ;;  %v4023_v40 = vpop.f32.mrb[28].mxu1 }
 0x83b   :  { %v4170_v49 = vadd.f32 %v3952_v2, %v11149_v14  ;;  %v4172_v10 = vadd.f32 %v4023_v40, %v11151_v34  ;;  %v3954_v6 = vpop.f32.mrb[21].mxu0  ;;  %v4025_v57 = vpop.f32.mrb[29].mxu1 }
 0x83c   :  { %v4171_v41 = vadd.f32 %v3954_v6, %v11555_v43  ;;  %v4173_v51 = vadd.f32 %v4025_v57, %v11556_v0  ;;  %v11557_v57 = vld [vmem:[#allocation154_spill] sm:$0xff] }
 0x83d   :  { %v5895_v5 = vmul.f32 -1.442695, %v4170_v49  ;;  %v5897_v21 = vmul.f32 -1.442695, %v4172_v10 }
 0x83e   :  { %v5896_v44 = vmul.f32 -1.442695, %v4171_v41  ;;  %v5898_v4 = vmul.f32 -1.442695, %v4173_v51  ;;  %v4094_v35 = vpop.f32.mrb[22].mxu0  ;;  %v4165_v25 = vpop.f32.mrb[30].mxu1 }
 0x83f   :  { %8434 = vpow2.f32 %v5895_v5  ;;  %v4096_v62 = vpop.f32.mrb[23].mxu0  ;;  %v4167_v23 = vpop.f32.mrb[31].mxu1  ;;  %v4176_v2 = vadd.f32 %v4165_v25, %v9391_v30  ;;  %v4174_v6 = vadd.f32 %v4094_v35, %v9389_v1 }
 0x840   :  { %8436 = vpow2.f32 %v5897_v21  ;;  %v4177_v40 = vadd.f32 %v4167_v23, %v11152_v39  ;;  %v4175_v49 = vadd.f32 %v4096_v62, %v11557_v57 }
 0x841   :  { %8438 = vpow2.f32 %v5896_v44  ;;  %v5899_v43 = vmul.f32 -1.442695, %v4176_v2 }
 0x842   :  { %8440 = vpow2.f32 %v5898_v4  ;;  %v5900_v10 = vmul.f32 -1.442695, %v4177_v40 }
 0x843   :  { %8442 = vtanh.f32 %v4174_v6 }
 0x844   :  { %8444 = vpow2.f32 %v5899_v43 }
 0x845   :  { %8446 = vtanh.f32 %v4175_v49 }
 0x846   :  { %8448 = vpow2.f32 %v5900_v10 }
 0x849   :  { %v8435_v51 = vpop.eup %8434 }
 0x84a   :  { %v8437_v41 = vpop.eup %8436  ;;  %v4184_v5 = vadd.f32 1.0, %v8435_v51 }
 0x84b   :  { %v8439_v0 = vpop.eup %8438  ;;  %v4196_v21 = vadd.f32 1.0, %v8437_v41 }
 0x84c   :  { %v8441_v44 = vpop.eup %8440  ;;  %8450 = vrcp.f32 %v4184_v5  ;;  %v4185_v4 = vadd.f32 1.0, %v8439_v0 }
 0x84d   :  { %8452 = vrcp.f32 %v4196_v21  ;;  %v4197_v23 = vadd.f32 1.0, %v8441_v44  ;;  %v8443_v35 = vpop.eup %8442 }
 0x84e   :  { %8454 = vrcp.f32 %v4185_v4  ;;  %v8445_v25 = vpop.eup %8444 }
 0x84f   :  { %8456 = vrcp.f32 %v4197_v23  ;;  %v8447_v62 = vpop.eup %8446  ;;  %v4210_v21 = vadd.f32 1.0, %v8445_v25  ;;  %v11560_v25 = vld [vmem:[#allocation124_spill] sm:$0xff] }
 0x850   :  { %v8449_v2 = vpop.eup %8448 }
 0x851   :  { %v4211_v51 = vadd.f32 1.0, %v8449_v2 }
 0x853   :  { %8458 = vrcp.f32 %v4211_v51  ;;  %v11565_v51 = vld [vmem:[#allocation137_spill] sm:$0xff] }
 0x856   :  { %v8451_v40 = vpop.eup %8450 }
 0x857   :  { %v8453_v6 = vpop.eup %8452  ;;  %v4218_v43 = vmul.f32 %v8451_v40, %v8443_v35 }
 0x858   :  { %v8455_v57 = vpop.eup %8454  ;;  %v4216_v49 = vmul.f32 %v8453_v6, %v10081_v13  ;;  %v11562_v6 = vld [vmem:[#allocation126_spill] sm:$0xff] }
 0x859   :  { %v8457_v41 = vpop.eup %8456  ;;  %v4219_v10 = vmul.f32 %v8455_v57, %v8447_v62  ;;  %v11559_v57 = vld [vmem:[#allocation131_spill] sm:$0xff]  ;;  %v11561_v62 = vld [vmem:[#allocation133_spill] sm:$0xff] }
 0x85a   :  { %v4217_v5 = vmul.f32 %v8457_v41, %v10083_v27  ;;  %v10247_v0 = vadd.f32 %v4218_v43, %v4216_v49  ;;  %v11558_v27 = vld [vmem:[#allocation122_spill] sm:$0xff]  ;;  %v11563_v43 = vld [vmem:[#allocation135_spill] sm:$0xff]  ;;  %v11564_v49 = vld [vmem:[#allocation128_spill] sm:$0xff] }
 0x85b   :  { %v11566_v41 = vld [vmem:[#allocation130_spill] sm:$0xff] }
 0x85c   :  { %v10249_v44 = vadd.f32 %v4219_v10, %v4217_v5  ;;  %8460 = vtanh.f32 %v10247_v0  ;;  %v11567_v10 = vld [vmem:[#allocation139_spill] sm:$0xff]  ;;  %v11568_v5 = vld [vmem:[#allocation132_spill] sm:$0xff] }
 0x85d   :  { %v8459_v4 = vpop.eup %8458 }
 0x85e   :  { %8462 = vtanh.f32 %v10249_v44 }
 0x85f   :  { %8464 = vrcp.f32 %v4210_v21  ;;  %v11569_v21 = vld [vmem:[#allocation141_spill] sm:$0xff] }
 0x866   :  { %v8461_v23 = vpop.eup %8460 }
 0x868   :  { %v8463_v35 = vpop.eup %8462 }
 0x869   :  { %v8465_v13 = vpop.eup %8464  ;;  %v4225_v2 = vmul.f32 %v8463_v35, %v8459_v4  ;;  %v11570_v4 = vld [vmem:[#allocation134_spill] sm:$0xff]  ;;  %v11572_v35 = vld [vmem:[#allocation136_spill] sm:$0xff] }
 0x86a   :  { %v10253_v40 = vmul.f32 %v8465_v13, %v8461_v23  ;;  %v11571_v23 = vld [vmem:[#allocation143_spill] sm:$0xff]  ;;  %v11573_v13 = vld [vmem:[#allocation145_spill] sm:$0xff] }
 0x86b   :  { %4292 = vmatprep.mubr.f32.mxu0 %v4225_v2  ;;  %4363 = vmatprep.mubr.f32.mxu1 %v4225_v2 }
 0x86c   :  { %4293 = vmatmul.mubr.f32.vlgmr.msra.gmra.mrb[24].mxu0 %v10253_v40  ;;  %4364 = vmatmul.mubr.f32.vlgmr.msra.gmra.mrb[32].mxu1 %v10253_v40 }
 0x86d   :  { %7733 = vmatpush1.bf16.msra.mxu0 %v11052_v18  ;;  %7797 = vmatpush1.bf16.msra.mxu1 %v11053_v16 }
 0x86e   :  { %4434 = vmatprep.mubr.f32.mxu0 %v4225_v2  ;;  %4505 = vmatprep.mubr.f32.mxu1 %v4225_v2  ;;  %v11574_v2 = vld [vmem:[#allocation138_spill] sm:$0xff] }
 0x86f   :  { %7735 = vmatprep.subr.bf16.mxu0 %v11054_v12  ;;  %7799 = vmatprep.subr.bf16.mxu1 %v11055_v7 }
 0x871   :  { %7737 = vmatpush1.bf16.msra.mxu0 %v11056_v42  ;;  %7801 = vmatpush1.bf16.msra.mxu1 %v11057_v58 }
 0x872   :  { %7739 = vmatprep.subr.bf16.mxu0 %v11153_v11  ;;  %7803 = vmatprep.subr.bf16.mxu1 %v11154_v38 }
 0x875   :  { %7741 = vmatpush1.bf16.msra.mxu0 %v11155_v46  ;;  %7805 = vmatpush1.bf16.msra.mxu1 %v11156_v3 }
 0x876   :  { %7743 = vmatprep.subr.bf16.mxu0 %v11157_v9  ;;  %7807 = vmatprep.subr.bf16.mxu1 %v11158_v33 }
 0x879   :  { %7745 = vmatpush1.bf16.msra.mxu0 %v11159_v17  ;;  %7809 = vmatpush1.bf16.msra.mxu1 %v11255_v50 }
 0x87a   :  { %7747 = vmatprep.subr.bf16.mxu0 %v11256_v26  ;;  %7811 = vmatprep.subr.bf16.mxu1 %v11257_v54 }
 0x87d   :  { %7749 = vmatpush1.bf16.msra.mxu0 %v11258_v48  ;;  %7813 = vmatpush1.bf16.msra.mxu1 %v11259_v59 }
 0x87e   :  { %7751 = vmatprep.subr.bf16.mxu0 %v11260_v37  ;;  %7815 = vmatprep.subr.bf16.mxu1 %v11261_v36 }
 0x881   :  { %7753 = vmatpush1.bf16.msra.mxu0 %v11262_v47  ;;  %7817 = vmatpush1.bf16.msra.mxu1 %v11263_v52 }
 0x882   :  { %7755 = vmatprep.subr.bf16.mxu0 %v11264_v32  ;;  %7819 = vmatprep.subr.bf16.mxu1 %v11265_v60 }
 0x885   :  { %7757 = vmatpush1.bf16.msra.mxu0 %v11171_v8  ;;  %7821 = vmatpush1.bf16.msra.mxu1 %v11266_v22 }
 0x886   :  { %7759 = vmatprep.subr.bf16.mxu0 %v11173_v24  ;;  %7823 = vmatprep.subr.bf16.mxu1 %v11267_v19 }
 0x889   :  { %7761 = vmatpush1.bf16.msra.mxu0 %v11175_v28  ;;  %7825 = vmatpush1.bf16.msra.mxu1 %v11268_v55 }
 0x88a   :  { %7763 = vmatprep.subr.bf16.mxu0 %v11177_v20  ;;  %7827 = vmatprep.subr.bf16.mxu1 %v11178_v53 }
 0x88d   :  { %7765 = vmatpush1.bf16.msra.mxu0 %v11179_v15  ;;  %7829 = vmatpush1.bf16.msra.mxu1 %v11180_v45 }
 0x88e   :  { %7767 = vmatprep.subr.bf16.mxu0 %v11181_v63  ;;  %7831 = vmatprep.subr.bf16.mxu1 %v11087_v61 }
 0x891   :  { %7769 = vmatpush1.bf16.msra.mxu0 %v11182_v31  ;;  %7833 = vmatpush1.bf16.msra.mxu1 %v11089_v56 }
 0x892   :  { %7771 = vmatprep.subr.bf16.mxu0 %v11183_v29  ;;  %7835 = vmatprep.subr.bf16.mxu1 %v11558_v27 }
 0x895   :  { %7773 = vmatpush1.bf16.msra.mxu0 %v11559_v57  ;;  %7837 = vmatpush1.bf16.msra.mxu1 %v11560_v25 }
 0x896   :  { %7775 = vmatprep.subr.bf16.mxu0 %v11561_v62  ;;  %7839 = vmatprep.subr.bf16.mxu1 %v11562_v6  ;;  %v11657_v6 = vld [vmem:[#allocation153_spill] sm:$0xff] }
 0x899   :  { %7777 = vmatpush1.bf16.msra.mxu0 %v11563_v43  ;;  %7841 = vmatpush1.bf16.msra.mxu1 %v11564_v49  ;;  %v11575_v49 = vld [vmem:[#allocation147_spill] sm:$0xff] }
 0x89a   :  { %7779 = vmatprep.subr.bf16.mxu0 %v11565_v51  ;;  %7843 = vmatprep.subr.bf16.mxu1 %v11566_v41  ;;  %v11576_v51 = vld [vmem:[#allocation140_spill] sm:$0xff]  ;;  %v11656_v43 = vld [vmem:[#allocation151_spill] sm:$0xff] }
 0x89b   :  { %v11577_v41 = vld [vmem:[#allocation148_spill] sm:$0xff] }
 0x89d   :  { %7781 = vmatpush1.bf16.msra.mxu0 %v11567_v10  ;;  %7845 = vmatpush1.bf16.msra.mxu1 %v11568_v5  ;;  %v11578_v10 = vld [vmem:[#allocation142_spill] sm:$0xff]  ;;  %v11579_v5 = vld [vmem:[#allocation149_spill] sm:$0xff] }
 0x89e   :  { %7783 = vmatprep.subr.bf16.mxu0 %v11569_v21  ;;  %7847 = vmatprep.subr.bf16.mxu1 %v11570_v4  ;;  %v11580_v21 = vld [vmem:[#allocation144_spill] sm:$0xff]  ;;  %v10319_v4 = vld [vmem:[#allocation7 + $0x8] sm:$0xff] }
 0x89f   :  { %11581 = vst [vmem:[#allocation146_spill] sm:$0xff] %v10319_v4 }
 0x8a1   :  { %7785 = vmatpush1.bf16.msra.mxu0 %v11571_v23  ;;  %7849 = vmatpush1.bf16.msra.mxu1 %v11572_v35  ;;  %v10322_v35 = vld [vmem:[#allocation7 + $0x18] sm:$0xff] }
 0x8a2   :  { %7787 = vmatprep.subr.bf16.mxu0 %v11573_v13  ;;  %7851 = vmatprep.subr.bf16.mxu1 %v11574_v2  ;;  %11582 = vst [vmem:[#allocation150_spill] sm:$0xff] %v10322_v35  ;;  %v11596_v2 = vld [vmem:[#allocation31_spill] sm:$0xff]  ;;  %v11601_v13 = vld [vmem:[#allocation26_spill] sm:$0xff] }
 0x8a5   :  { %7789 = vmatpush1.bf16.msra.mxu0 %v11575_v49  ;;  %7853 = vmatpush1.bf16.msra.mxu1 %v11576_v51  ;;  %v10327_v51 = vld [vmem:[#allocation7] sm:$0xff]  ;;  %v11595_v49 = vld [vmem:[#allocation23_spill] sm:$0xff] }
 0x8a6   :  { %7791 = vmatprep.subr.bf16.mxu0 %v11577_v41  ;;  %7855 = vmatprep.subr.bf16.mxu1 %v11578_v10  ;;  %11583 = vst [vmem:[#allocation152_spill] sm:$0xff] %v10327_v51  ;;  %v10330_v10 = vld [vmem:[#allocation7 + $0x10] sm:$0xff] }
 0x8a7   :  { %11584 = vst [vmem:[#allocation155_spill] sm:$0xff] %v10330_v10  ;;  %v11593_v41 = vld [vmem:[#allocation22_spill] sm:$0xff] }
 0x8a9   :  { %7793 = vmatpush1.bf16.msra.mxu0 %v11579_v5  ;;  %7857 = vmatpush1.bf16.msra.mxu1 %v11580_v21  ;;  %v4227_v21 = vld [vmem:[#allocation4 + $0xc] sm:$0x3]  ;;  %v11585_v5 = vmov 0.0  }
 0x8aa   :  { %4515 = vmatprep.subr.mxu0 %v10319_v4  ;;  %4586 = vmatprep.subr.mxu1 %v10322_v35  ;;  %v10335_v4 = vld [vmem:[#allocation7 + $0x28] sm:$0xff]  ;;  %v10338_v35 = vld [vmem:[#allocation7 + $0x38] sm:$0xff] }
 0x8ab   :  { %11586 = vst [vmem:[#allocation97_spill] sm:$0xff] %v10335_v4  ;;  %11587 = vst [vmem:[#allocation90_spill] sm:$0xff] %v10338_v35 }
 0x8ac   :  { %4435 = vmatmul.mubr.f32.vlgmr.msra.gmra.mrb[26].mxu0 %v10253_v40  ;;  %4506 = vmatmul.mubr.f32.vlgmr.msra.gmra.mrb[34].mxu1 %v10253_v40  ;;  %v10343_v40 = vld [vmem:[#allocation7 + $0x20] sm:$0xff] }
 0x8ad   :  { %4516 = vmatpush1.msra.mxu0 %v10327_v51  ;;  %4587 = vmatpush1.msra.mxu1 %v10330_v10  ;;  %11588 = vst [vmem:[#allocation99_spill] sm:$0xff] %v10343_v40  ;;  %v10347_v10 = vld [vmem:[#allocation7 + $0x30] sm:$0xff]  ;;  %v11591_v51 = vld [vmem:[#allocation21_spill] sm:$0xff] }
 0x8ae   :  { %4579 = vmatprep.mubr.f32.mxu0 %v11585_v5  ;;  %4650 = vmatprep.mubr.f32.mxu1 %v11585_v5  ;;  %11589 = vst [vmem:[#allocation92_spill] sm:$0xff] %v10347_v10 }
 0x8af   :  { %4657 = vmatprep.subr.mxu0 %v10335_v4  ;;  %4728 = vmatprep.subr.mxu1 %v10338_v35  ;;  %v11590_v4 = vld [vmem:[#allocation27_spill] sm:$0xff]  ;;  %v11592_v35 = vld [vmem:[#allocation28_spill] sm:$0xff] }
 0x8b0   :  { %5901 = vmatmul.mubr.msk.f32.vlgmr.msra.gmra.mrb[24].mxu0 %vm684_vm0, %v4227_v21  ;;  %5902 = vmatmul.mubr.msk.f32.vlgmr.msra.gmra.mrb[32].mxu1 %vm684_vm0, %v4227_v21 }
 0x8b1   :  { %4658 = vmatpush1.msra.mxu0 %v10343_v40  ;;  %4721 = vmatprep.mubr.f32.mxu0 %v11585_v5  ;;  %v11594_v40 = vld [vmem:[#allocation30_spill] sm:$0xff] }
 0x8b2   :  { %4729 = vmatpush1.msra.mxu1 %v10347_v10  ;;  %4792 = vmatprep.mubr.f32.mxu1 %v11585_v5  ;;  %v11597_v10 = vld [vmem:[#allocation24_spill] sm:$0xff]  ;;  %v11598_v5 = vld [vmem:[#allocation34_spill] sm:$0xff] }
 0x8b3   :  { %7859 = vmatprep.subr.bf16.mxu0 %v11590_v4  ;;  %7923 = vmatprep.subr.bf16.mxu1 %v11591_v51  ;;  %v11599_v4 = vld [vmem:[#allocation25_spill] sm:$0xff]  ;;  %v11600_v51 = vld [vmem:[#allocation35_spill] sm:$0xff] }
 0x8b4   :  { %5903 = vmatmul.mubr.msk.f32.vlgmr.msra.gmra.mrb[26].mxu0 %vm684_vm0, %v4227_v21  ;;  %5904 = vmatmul.mubr.msk.f32.vlgmr.msra.gmra.mrb[34].mxu1 %vm684_vm0, %v4227_v21  ;;  %v11602_v21 = vld [vmem:[#allocation37_spill] sm:$0xff] }
 0x8b5   :  { %7861 = vmatpush1.bf16.msra.mxu0 %v11592_v35  ;;  %7925 = vmatpush1.bf16.msra.mxu1 %v11593_v41  ;;  %v11603_v35 = vld [vmem:[#allocation29_spill] sm:$0xff]  ;;  %v11604_v41 = vld [vmem:[#allocation39_spill] sm:$0xff] }
 0x8b6   :  { %7863 = vmatprep.subr.bf16.mxu0 %v11594_v40  ;;  %7927 = vmatprep.subr.bf16.mxu1 %v11595_v49  ;;  %v11605_v40 = vld [vmem:[#allocation32_spill] sm:$0xff]  ;;  %v11606_v49 = vld [vmem:[#allocation41_spill] sm:$0xff] }
 0x8b9   :  { %7865 = vmatpush1.bf16.msra.mxu0 %v11596_v2  ;;  %7929 = vmatpush1.bf16.msra.mxu1 %v11597_v10  ;;  %v11607_v2 = vld [vmem:[#allocation33_spill] sm:$0xff]  ;;  %v11608_v10 = vld [vmem:[#allocation43_spill] sm:$0xff] }
 0x8ba   :  { %7867 = vmatprep.subr.bf16.mxu0 %v11598_v5  ;;  %7931 = vmatprep.subr.bf16.mxu1 %v11599_v4  ;;  %v11609_v5 = vld [vmem:[#allocation36_spill] sm:$0xff]  ;;  %v11610_v4 = vld [vmem:[#allocation45_spill] sm:$0xff] }
 0x8bd   :  { %7869 = vmatpush1.bf16.msra.mxu0 %v11600_v51  ;;  %7933 = vmatpush1.bf16.msra.mxu1 %v11601_v13  ;;  %v11611_v51 = vld [vmem:[#allocation38_spill] sm:$0xff]  ;;  %v11612_v13 = vld [vmem:[#allocation47_spill] sm:$0xff] }
 0x8be   :  { %7871 = vmatprep.subr.bf16.mxu0 %v11602_v21  ;;  %7935 = vmatprep.subr.bf16.mxu1 %v11603_v35  ;;  %v11613_v21 = vld [vmem:[#allocation40_spill] sm:$0xff]  ;;  %v11614_v35 = vld [vmem:[#allocation49_spill] sm:$0xff] }
 0x8c1   :  { %7873 = vmatpush1.bf16.msra.mxu0 %v11604_v41  ;;  %7937 = vmatpush1.bf16.msra.mxu1 %v11605_v40  ;;  %v11615_v41 = vld [vmem:[#allocation42_spill] sm:$0xff]  ;;  %v11616_v40 = vld [vmem:[#allocation51_spill] sm:$0xff] }
 0x8c2   :  { %7875 = vmatprep.subr.bf16.mxu0 %v11606_v49  ;;  %7939 = vmatprep.subr.bf16.mxu1 %v11607_v2  ;;  %v11617_v49 = vld [vmem:[#allocation44_spill] sm:$0xff]  ;;  %v11618_v2 = vld [vmem:[#allocation53_spill] sm:$0xff] }
 0x8c5   :  { %7877 = vmatpush1.bf16.msra.mxu0 %v11608_v10  ;;  %7941 = vmatpush1.bf16.msra.mxu1 %v11609_v5  ;;  %v11619_v10 = vld [vmem:[#allocation46_spill] sm:$0xff]  ;;  %v11620_v5 = vld [vmem:[#allocation55_spill] sm:$0xff] }
 0x8c6   :  { %7879 = vmatprep.subr.bf16.mxu0 %v11610_v4  ;;  %7943 = vmatprep.subr.bf16.mxu1 %v11611_v51  ;;  %v11621_v4 = vld [vmem:[#allocation48_spill] sm:$0xff]  ;;  %v11622_v51 = vld [vmem:[#allocation57_spill] sm:$0xff] }
 0x8c9   :  { %7881 = vmatpush1.bf16.msra.mxu0 %v11612_v13  ;;  %7945 = vmatpush1.bf16.msra.mxu1 %v11613_v21  ;;  %v11623_v13 = vld [vmem:[#allocation50_spill] sm:$0xff]  ;;  %v11624_v21 = vld [vmem:[#allocation59_spill] sm:$0xff] }
 0x8ca   :  { %7883 = vmatprep.subr.bf16.mxu0 %v11614_v35  ;;  %7947 = vmatprep.subr.bf16.mxu1 %v11615_v41  ;;  %v11625_v35 = vld [vmem:[#allocation52_spill] sm:$0xff]  ;;  %v11626_v41 = vld [vmem:[#allocation61_spill] sm:$0xff] }
 0x8cd   :  { %7885 = vmatpush1.bf16.msra.mxu0 %v11616_v40  ;;  %7949 = vmatpush1.bf16.msra.mxu1 %v11617_v49  ;;  %v11627_v40 = vld [vmem:[#allocation54_spill] sm:$0xff]  ;;  %v11628_v49 = vld [vmem:[#allocation63_spill] sm:$0xff] }
 0x8ce   :  { %7887 = vmatprep.subr.bf16.mxu0 %v11618_v2  ;;  %7951 = vmatprep.subr.bf16.mxu1 %v11619_v10  ;;  %v11629_v2 = vld [vmem:[#allocation56_spill] sm:$0xff]  ;;  %v11630_v10 = vld [vmem:[#allocation65_spill] sm:$0xff] }
 0x8d1   :  { %7889 = vmatpush1.bf16.msra.mxu0 %v11620_v5  ;;  %7953 = vmatpush1.bf16.msra.mxu1 %v11621_v4  ;;  %v11631_v5 = vld [vmem:[#allocation58_spill] sm:$0xff]  ;;  %v11632_v4 = vld [vmem:[#allocation67_spill] sm:$0xff] }
 0x8d2   :  { %7891 = vmatprep.subr.bf16.mxu0 %v11622_v51  ;;  %7955 = vmatprep.subr.bf16.mxu1 %v11623_v13  ;;  %v11633_v51 = vld [vmem:[#allocation60_spill] sm:$0xff]  ;;  %v11634_v13 = vld [vmem:[#allocation69_spill] sm:$0xff] }
 0x8d5   :  { %7893 = vmatpush1.bf16.msra.mxu0 %v11624_v21  ;;  %7957 = vmatpush1.bf16.msra.mxu1 %v11625_v35  ;;  %v11635_v21 = vld [vmem:[#allocation62_spill] sm:$0xff]  ;;  %v11636_v35 = vld [vmem:[#allocation71_spill] sm:$0xff] }
 0x8d6   :  { %7895 = vmatprep.subr.bf16.mxu0 %v11626_v41  ;;  %7959 = vmatprep.subr.bf16.mxu1 %v11627_v40  ;;  %v11637_v41 = vld [vmem:[#allocation64_spill] sm:$0xff]  ;;  %v11638_v40 = vld [vmem:[#allocation73_spill] sm:$0xff] }
 0x8d9   :  { %7897 = vmatpush1.bf16.msra.mxu0 %v11628_v49  ;;  %7961 = vmatpush1.bf16.msra.mxu1 %v11629_v2  ;;  %v11639_v49 = vld [vmem:[#allocation66_spill] sm:$0xff]  ;;  %v11640_v2 = vld [vmem:[#allocation75_spill] sm:$0xff] }
 0x8da   :  { %7899 = vmatprep.subr.bf16.mxu0 %v11630_v10  ;;  %7963 = vmatprep.subr.bf16.mxu1 %v11631_v5  ;;  %v11641_v10 = vld [vmem:[#allocation68_spill] sm:$0xff]  ;;  %v11642_v5 = vld [vmem:[#allocation77_spill] sm:$0xff] }
 0x8dd   :  { %7901 = vmatpush1.bf16.msra.mxu0 %v11632_v4  ;;  %7965 = vmatpush1.bf16.msra.mxu1 %v11633_v51  ;;  %v11643_v4 = vld [vmem:[#allocation70_spill] sm:$0xff]  ;;  %v11644_v51 = vld [vmem:[#allocation79_spill] sm:$0xff] }
 0x8de   :  { %7903 = vmatprep.subr.bf16.mxu0 %v11634_v13  ;;  %7967 = vmatprep.subr.bf16.mxu1 %v11635_v21  ;;  %v11645_v13 = vld [vmem:[#allocation72_spill] sm:$0xff]  ;;  %v11646_v21 = vld [vmem:[#allocation81_spill] sm:$0xff] }
 0x8e1   :  { %7905 = vmatpush1.bf16.msra.mxu0 %v11636_v35  ;;  %7969 = vmatpush1.bf16.msra.mxu1 %v11637_v41  ;;  %v11647_v35 = vld [vmem:[#allocation74_spill] sm:$0xff]  ;;  %v11648_v41 = vld [vmem:[#allocation83_spill] sm:$0xff] }
 0x8e2   :  { %7907 = vmatprep.subr.bf16.mxu0 %v11638_v40  ;;  %7971 = vmatprep.subr.bf16.mxu1 %v11639_v49  ;;  %v11649_v40 = vld [vmem:[#allocation76_spill] sm:$0xff]  ;;  %v11650_v49 = vld [vmem:[#allocation85_spill] sm:$0xff] }
 0x8e5   :  { %7909 = vmatpush1.bf16.msra.mxu0 %v11640_v2  ;;  %7973 = vmatpush1.bf16.msra.mxu1 %v11641_v10  ;;  %v11651_v2 = vld [vmem:[#allocation78_spill] sm:$0xff]  ;;  %v11652_v10 = vld [vmem:[#allocation87_spill] sm:$0xff] }
 0x8e6   :  { %7911 = vmatprep.subr.bf16.mxu0 %v11642_v5  ;;  %7975 = vmatprep.subr.bf16.mxu1 %v11643_v4  ;;  %v11653_v5 = vld [vmem:[#allocation80_spill] sm:$0xff]  ;;  %v11654_v4 = vld [vmem:[#allocation89_spill] sm:$0xff] }
 0x8e9   :  { %7913 = vmatpush1.bf16.msra.mxu0 %v11644_v51  ;;  %7977 = vmatpush1.bf16.msra.mxu1 %v11645_v13  ;;  %v11655_v51 = vld [vmem:[#allocation82_spill] sm:$0xff] }
 0x8ea   :  { %7915 = vmatprep.subr.bf16.mxu0 %v11646_v21  ;;  %7979 = vmatprep.subr.bf16.mxu1 %v11647_v35 }
 0x8ed   :  { %7917 = vmatpush1.bf16.msra.mxu0 %v11648_v41  ;;  %7981 = vmatpush1.bf16.msra.mxu1 %v11649_v40 }
 0x8ee   :  { %7919 = vmatprep.subr.bf16.mxu0 %v11650_v49  ;;  %7983 = vmatprep.subr.bf16.mxu1 %v11651_v2 }
 0x8f1   :  { %7921 = vmatpush1.bf16.msra.mxu0 %v11652_v10  ;;  %7985 = vmatpush1.bf16.msra.mxu1 %v11653_v5 }
 0x8f2   :  { %7987 = vmatprep.subr.bf16.mxu0 %v11654_v4  ;;  %8051 = vmatprep.subr.bf16.mxu1 %v11655_v51 }
 0x983   :  { %v4581_v13 = vpop.f32.mrb[24].mxu0  ;;  %v4652_v21 = vpop.f32.mrb[32].mxu1 }
 0x984   :  { %v4799_v35 = vadd.f32 %v4581_v13, %v11149_v14  ;;  %v4801_v41 = vadd.f32 %v4652_v21, %v11151_v34  ;;  %v4583_v23 = vpop.f32.mrb[25].mxu0  ;;  %v4654_v40 = vpop.f32.mrb[33].mxu1 }
 0x985   :  { %v4800_v49 = vadd.f32 %v4583_v23, %v11656_v43  ;;  %v4802_v2 = vadd.f32 %v4654_v40, %v11657_v6  ;;  %v11658_v40 = vld [vmem:[#allocation154_spill] sm:$0xff] }
 0x986   :  { %v5905_v62 = vmul.f32 -1.442695, %v4799_v35  ;;  %v5907_v10 = vmul.f32 -1.442695, %v4801_v41 }
 0x987   :  { %v5906_v25 = vmul.f32 -1.442695, %v4800_v49  ;;  %v5908_v5 = vmul.f32 -1.442695, %v4802_v2  ;;  %v4723_v57 = vpop.f32.mrb[26].mxu0  ;;  %v4794_v4 = vpop.f32.mrb[34].mxu1 }
 0x988   :  { %8466 = vpow2.f32 %v5905_v62  ;;  %v4725_v51 = vpop.f32.mrb[27].mxu0  ;;  %v4796_v27 = vpop.f32.mrb[35].mxu1  ;;  %v4805_v13 = vadd.f32 %v4794_v4, %v9391_v30  ;;  %v4803_v23 = vadd.f32 %v4723_v57, %v9389_v1 }
 0x989   :  { %8468 = vpow2.f32 %v5907_v10  ;;  %v4806_v21 = vadd.f32 %v4796_v27, %v11152_v39  ;;  %v4804_v35 = vadd.f32 %v4725_v51, %v11658_v40 }
 0x98a   :  { %8470 = vpow2.f32 %v5906_v25  ;;  %v5909_v43 = vmul.f32 -1.442695, %v4805_v13 }
 0x98b   :  { %8472 = vpow2.f32 %v5908_v5  ;;  %v5910_v41 = vmul.f32 -1.442695, %v4806_v21 }
 0x98c   :  { %8474 = vtanh.f32 %v4803_v23 }
 0x98d   :  { %8476 = vpow2.f32 %v5909_v43 }
 0x98e   :  { %8478 = vtanh.f32 %v4804_v35 }
 0x98f   :  { %8480 = vpow2.f32 %v5910_v41 }
 0x992   :  { %v8467_v49 = vpop.eup %8466 }
 0x993   :  { %v8469_v2 = vpop.eup %8468  ;;  %v4813_v62 = vadd.f32 1.0, %v8467_v49 }
 0x994   :  { %v8471_v6 = vpop.eup %8470  ;;  %v4825_v10 = vadd.f32 1.0, %v8469_v2 }
 0x995   :  { %v8473_v25 = vpop.eup %8472  ;;  %8482 = vrcp.f32 %v4813_v62  ;;  %v4814_v5 = vadd.f32 1.0, %v8471_v6 }
 0x996   :  { %8484 = vrcp.f32 %v4825_v10  ;;  %v4826_v27 = vadd.f32 1.0, %v8473_v25  ;;  %v8475_v57 = vpop.eup %8474 }
 0x997   :  { %8486 = vrcp.f32 %v4814_v5  ;;  %v8477_v4 = vpop.eup %8476 }
 0x998   :  { %8488 = vrcp.f32 %v4826_v27  ;;  %v8479_v51 = vpop.eup %8478  ;;  %v4839_v10 = vadd.f32 1.0, %v8477_v4 }
 0x999   :  { %v8481_v13 = vpop.eup %8480 }
 0x99a   :  { %v4840_v49 = vadd.f32 1.0, %v8481_v13 }
 0x99c   :  { %8490 = vrcp.f32 %v4840_v49  ;;  %v5533_v49 = vld [vmem:[#allocation10 + $0xa8] sm:$0xff] }
 0x99f   :  { %v8483_v21 = vpop.eup %8482 }
 0x9a0   :  { %v8485_v23 = vpop.eup %8484  ;;  %v4847_v43 = vmul.f32 %v8483_v21, %v8475_v57 }
 0x9a1   :  { %v8487_v40 = vpop.eup %8486  ;;  %v4845_v35 = vmul.f32 %v8485_v23, %v10247_v0  ;;  %v5515_v23 = vld [vmem:[#allocation10 + $0x18] sm:$0xff] }
 0x9a2   :  { %v8489_v2 = vpop.eup %8488  ;;  %v4848_v41 = vmul.f32 %v8487_v40, %v8479_v51  ;;  %v5531_v40 = vld [vmem:[#allocation10 + $0x98] sm:$0xff]  ;;  %v5514_v51 = vld [vmem:[#allocation10 + $0x10] sm:$0xff] }
 0x9a3   :  { %v4846_v62 = vmul.f32 %v8489_v2, %v10249_v44  ;;  %v10429_v6 = vadd.f32 %v4847_v43, %v4845_v35  ;;  %v5530_v44 = vld [vmem:[#allocation10 + $0x90] sm:$0xff]  ;;  %v8120_v43 = vpack.c.bf16 %v5515_v23, %v5514_v51  ;;  %v5532_v35 = vld [vmem:[#allocation10 + $0xa0] sm:$0xff]  ;;  %v5644_v51 = vld [vmem:[#allocation12 + $0x58] sm:$0xff] }
 0x9a4   :  { %v8118_v4 = vpack.c.bf16 %v5531_v40, %v5530_v44  ;;  %v8122_v2 = vpack.c.bf16 %v5533_v49, %v5532_v35  ;;  %v5642_v44 = vld [vmem:[#allocation12 + $0x48] sm:$0xff] }
 0x9a5   :  { %v10431_v25 = vadd.f32 %v4848_v41, %v4846_v62  ;;  %8492 = vtanh.f32 %v10429_v6  ;;  %v5516_v41 = vld [vmem:[#allocation10 + $0x20] sm:$0xff]  ;;  %v5517_v62 = vld [vmem:[#allocation10 + $0x28] sm:$0xff] }
 0x9a6   :  { %v8491_v5 = vpop.eup %8490 }
 0x9a7   :  { %8494 = vtanh.f32 %v10431_v25 }
 0x9a8   :  { %8496 = vrcp.f32 %v4839_v10  ;;  %v8124_v10 = vpack.c.bf16 %v5517_v62, %v5516_v41 }
 0x9af   :  { %v8493_v27 = vpop.eup %8492 }
 0x9b1   :  { %v8495_v57 = vpop.eup %8494 }
 0x9b2   :  { %v8497_v0 = vpop.eup %8496  ;;  %v4854_v13 = vmul.f32 %v8495_v57, %v8491_v5  ;;  %v5534_v5 = vld [vmem:[#allocation10 + $0xb0] sm:$0xff] }
 0x9b3   :  { %v10435_v21 = vmul.f32 %v8497_v0, %v8493_v27  ;;  %v5535_v27 = vld [vmem:[#allocation10 + $0xb8] sm:$0xff]  ;;  %v5518_v0 = vld [vmem:[#allocation10 + $0x30] sm:$0xff] }
 0x9b4   :  { %4921 = vmatprep.mubr.f32.mxu0 %v4854_v13  ;;  %4992 = vmatprep.mubr.f32.mxu1 %v4854_v13  ;;  %v8126_v57 = vpack.c.bf16 %v5535_v27, %v5534_v5  ;;  %v11692_v27 = vld [vmem:[#allocation153_spill] sm:$0xff] }
 0x9b5   :  { %4922 = vmatmul.mubr.f32.vlgmr.msra.gmra.mrb[28].mxu0 %v10435_v21  ;;  %4993 = vmatmul.mubr.f32.vlgmr.msra.gmra.mrb[36].mxu1 %v10435_v21 }
 0x9b6   :  { %7989 = vmatpush1.bf16.msra.mxu0 %v11052_v18  ;;  %8053 = vmatpush1.bf16.msra.mxu1 %v11053_v16  ;;  %v11659_v18 = vld [vmem:[#allocation122_spill] sm:$0xff]  ;;  %v11660_v16 = vld [vmem:[#allocation131_spill] sm:$0xff] }
 0x9b7   :  { %5063 = vmatprep.mubr.f32.mxu0 %v4854_v13  ;;  %5134 = vmatprep.mubr.f32.mxu1 %v4854_v13  ;;  %v5519_v13 = vld [vmem:[#allocation10 + $0x38] sm:$0xff] }
 0x9b8   :  { %7991 = vmatprep.subr.bf16.mxu0 %v11054_v12  ;;  %8055 = vmatprep.subr.bf16.mxu1 %v11055_v7  ;;  %v11661_v12 = vld [vmem:[#allocation124_spill] sm:$0xff]  ;;  %v11662_v7 = vld [vmem:[#allocation133_spill] sm:$0xff] }
 0x9ba   :  { %7993 = vmatpush1.bf16.msra.mxu0 %v11056_v42  ;;  %8057 = vmatpush1.bf16.msra.mxu1 %v11057_v58  ;;  %v11663_v42 = vld [vmem:[#allocation126_spill] sm:$0xff]  ;;  %v11664_v58 = vld [vmem:[#allocation135_spill] sm:$0xff] }
 0x9bb   :  { %7995 = vmatprep.subr.bf16.mxu0 %v11153_v11  ;;  %8059 = vmatprep.subr.bf16.mxu1 %v11154_v38  ;;  %v11665_v11 = vld [vmem:[#allocation128_spill] sm:$0xff]  ;;  %v11667_v38 = vld [vmem:[#allocation130_spill] sm:$0xff] }
 0x9be   :  { %7997 = vmatpush1.bf16.msra.mxu0 %v11155_v46  ;;  %8061 = vmatpush1.bf16.msra.mxu1 %v11156_v3  ;;  %v11669_v46 = vld [vmem:[#allocation132_spill] sm:$0xff]  ;;  %v11670_v3 = vld [vmem:[#allocation141_spill] sm:$0xff] }
 0x9bf   :  { %7999 = vmatprep.subr.bf16.mxu0 %v11157_v9  ;;  %8063 = vmatprep.subr.bf16.mxu1 %v11158_v33  ;;  %v11671_v9 = vld [vmem:[#allocation134_spill] sm:$0xff]  ;;  %v11672_v33 = vld [vmem:[#allocation143_spill] sm:$0xff] }
 0x9c2   :  { %8001 = vmatpush1.bf16.msra.mxu0 %v11159_v17  ;;  %8065 = vmatpush1.bf16.msra.mxu1 %v11255_v50  ;;  %v11673_v17 = vld [vmem:[#allocation136_spill] sm:$0xff] }
 0x9c3   :  { %8003 = vmatprep.subr.bf16.mxu0 %v11256_v26  ;;  %8067 = vmatprep.subr.bf16.mxu1 %v11257_v54  ;;  %v11684_v50 = vld [vmem:[#allocation152_spill] sm:$0xff]  ;;  %v11685_v26 = vld [vmem:[#allocation155_spill] sm:$0xff] }
 0x9c4   :  { %v4856_v54 = vld [vmem:[#allocation4 + $0xe] sm:$0x3] }
 0x9c6   :  { %8005 = vmatpush1.bf16.msra.mxu0 %v11258_v48  ;;  %8069 = vmatpush1.bf16.msra.mxu1 %v11259_v59  ;;  %v11686_v48 = vmov 0.0   ;;  %v11687_v59 = vld [vmem:[#allocation97_spill] sm:$0xff] }
 0x9c7   :  { %8007 = vmatprep.subr.bf16.mxu0 %v11260_v37  ;;  %8071 = vmatprep.subr.bf16.mxu1 %v11261_v36  ;;  %v11688_v37 = vld [vmem:[#allocation90_spill] sm:$0xff]  ;;  %v11689_v36 = vld [vmem:[#allocation99_spill] sm:$0xff] }
 0x9ca   :  { %8009 = vmatpush1.bf16.msra.mxu0 %v11262_v47  ;;  %8073 = vmatpush1.bf16.msra.mxu1 %v11263_v52  ;;  %v11690_v47 = vld [vmem:[#allocation92_spill] sm:$0xff] }
 0x9cb   :  { %8011 = vmatprep.subr.bf16.mxu0 %v11264_v32  ;;  %8075 = vmatprep.subr.bf16.mxu1 %v11265_v60  ;;  %v5528_v52 = vld [vmem:[#allocation10 + $0x80] sm:$0xff]  ;;  %v5529_v32 = vld [vmem:[#allocation10 + $0x88] sm:$0xff] }
 0x9cc   :  { %v8114_v60 = vpack.c.bf16 %v5529_v32, %v5528_v52  ;;  %v5638_v52 = vld [vmem:[#allocation12 + $0x28] sm:$0xff] }
 0x9ce   :  { %8013 = vmatpush1.bf16.msra.mxu0 %v11171_v8  ;;  %8077 = vmatpush1.bf16.msra.mxu1 %v11266_v22  ;;  %v11674_v8 = vld [vmem:[#allocation145_spill] sm:$0xff] }
 0x9cf   :  { %8015 = vmatprep.subr.bf16.mxu0 %v11173_v24  ;;  %8079 = vmatprep.subr.bf16.mxu1 %v11267_v19  ;;  %v11676_v24 = vld [vmem:[#allocation147_spill] sm:$0xff]  ;;  %v5512_v22 = vld [vmem:[#allocation10] sm:$0xff]  ;;  %v5513_v19 = vld [vmem:[#allocation10 + $0x8] sm:$0xff] }
 0x9d2   :  { %8017 = vmatpush1.bf16.msra.mxu0 %v11175_v28  ;;  %8081 = vmatpush1.bf16.msra.mxu1 %v11268_v55  ;;  %v11678_v28 = vld [vmem:[#allocation148_spill] sm:$0xff]  ;;  %v8116_v55 = vpack.c.bf16 %v5513_v19, %v5512_v22 }
 0x9d3   :  { %8019 = vmatprep.subr.bf16.mxu0 %v11177_v20  ;;  %8083 = vmatprep.subr.bf16.mxu1 %v11178_v53  ;;  %v11679_v20 = vld [vmem:[#allocation142_spill] sm:$0xff]  ;;  %v11680_v53 = vld [vmem:[#allocation149_spill] sm:$0xff]  ;;  %v5640_v22 = vld [vmem:[#allocation12 + $0x38] sm:$0xff] }
 0x9d6   :  { %8021 = vmatpush1.bf16.msra.mxu0 %v11179_v15  ;;  %8085 = vmatpush1.bf16.msra.mxu1 %v11180_v45  ;;  %v11681_v15 = vld [vmem:[#allocation144_spill] sm:$0xff]  ;;  %v11682_v45 = vld [vmem:[#allocation146_spill] sm:$0xff] }
 0x9d7   :  { %8023 = vmatprep.subr.bf16.mxu0 %v11181_v63  ;;  %8087 = vmatprep.subr.bf16.mxu1 %v11087_v61  ;;  %v11666_v61 = vld [vmem:[#allocation137_spill] sm:$0xff]  ;;  %v11683_v63 = vld [vmem:[#allocation150_spill] sm:$0xff] }
 0x9da   :  { %8025 = vmatpush1.bf16.msra.mxu0 %v11182_v31  ;;  %8089 = vmatpush1.bf16.msra.mxu1 %v11089_v56  ;;  %v11668_v56 = vld [vmem:[#allocation139_spill] sm:$0xff]  ;;  %v11675_v31 = vld [vmem:[#allocation138_spill] sm:$0xff] }
 0x9db   :  { %8027 = vmatprep.subr.bf16.mxu0 %v11183_v29  ;;  %8091 = vmatprep.subr.bf16.mxu1 %v11659_v18  ;;  %v11677_v29 = vld [vmem:[#allocation140_spill] sm:$0xff] }
 0x9dc   :  { %v5536_v18 = vld [vmem:[#allocation10 + $0xc0] sm:$0xff] }
 0x9de   :  { %8029 = vmatpush1.bf16.msra.mxu0 %v11660_v16  ;;  %8093 = vmatpush1.bf16.msra.mxu1 %v11661_v12  ;;  %v5537_v16 = vld [vmem:[#allocation10 + $0xc8] sm:$0xff] }
 0x9df   :  { %8031 = vmatprep.subr.bf16.mxu0 %v11662_v7  ;;  %8095 = vmatprep.subr.bf16.mxu1 %v11663_v42  ;;  %v8130_v12 = vpack.c.bf16 %v5537_v16, %v5536_v18  ;;  %v5520_v7 = vld [vmem:[#allocation10 + $0x40] sm:$0xff]  ;;  %v5521_v42 = vld [vmem:[#allocation10 + $0x48] sm:$0xff] }
 0x9e2   :  { %8033 = vmatpush1.bf16.msra.mxu0 %v11664_v58  ;;  %8097 = vmatpush1.bf16.msra.mxu1 %v11665_v11  ;;  %v8132_v58 = vpack.c.bf16 %v5521_v42, %v5520_v7  ;;  %v5538_v11 = vld [vmem:[#allocation10 + $0xd0] sm:$0xff] }
 0x9e3   :  { %8035 = vmatprep.subr.bf16.mxu0 %v11666_v61  ;;  %8099 = vmatprep.subr.bf16.mxu1 %v11667_v38  ;;  %v5539_v61 = vld [vmem:[#allocation10 + $0xd8] sm:$0xff] }
 0x9e4   :  { %v8134_v38 = vpack.c.bf16 %v5539_v61, %v5538_v11  ;;  %v11693_v61 = vld [vmem:[#allocation154_spill] sm:$0xff] }
 0x9e6   :  { %8037 = vmatpush1.bf16.msra.mxu0 %v11668_v56  ;;  %8101 = vmatpush1.bf16.msra.mxu1 %v11669_v46  ;;  %v5522_v56 = vld [vmem:[#allocation10 + $0x50] sm:$0xff]  ;;  %v5523_v46 = vld [vmem:[#allocation10 + $0x58] sm:$0xff] }
 0x9e7   :  { %8039 = vmatprep.subr.bf16.mxu0 %v11670_v3  ;;  %8103 = vmatprep.subr.bf16.mxu1 %v11671_v9  ;;  %v8136_v3 = vpack.c.bf16 %v5523_v46, %v5522_v56  ;;  %v5540_v9 = vld [vmem:[#allocation10 + $0xe0] sm:$0xff] }
 0x9ea   :  { %8041 = vmatpush1.bf16.msra.mxu0 %v11672_v33  ;;  %8105 = vmatpush1.bf16.msra.mxu1 %v11673_v17  ;;  %v5541_v33 = vld [vmem:[#allocation10 + $0xe8] sm:$0xff]  ;;  %v5524_v17 = vld [vmem:[#allocation10 + $0x60] sm:$0xff] }
 0x9eb   :  { %8043 = vmatprep.subr.bf16.mxu0 %v11674_v8  ;;  %8107 = vmatprep.subr.bf16.mxu1 %v11675_v31  ;;  %v8138_v8 = vpack.c.bf16 %v5541_v33, %v5540_v9  ;;  %v5525_v31 = vld [vmem:[#allocation10 + $0x68] sm:$0xff] }
 0x9ee   :  { %8045 = vmatpush1.bf16.msra.mxu0 %v11676_v24  ;;  %8109 = vmatpush1.bf16.msra.mxu1 %v11677_v29  ;;  %v5542_v24 = vld [vmem:[#allocation10 + $0xf0] sm:$0xff]  ;;  %v5543_v29 = vld [vmem:[#allocation10 + $0xf8] sm:$0xff] }
 0x9ef   :  { %8047 = vmatprep.subr.bf16.mxu0 %v11678_v28  ;;  %8111 = vmatprep.subr.bf16.mxu1 %v11679_v20  ;;  %v8140_v28 = vpack.c.bf16 %v5525_v31, %v5524_v17  ;;  %v8142_v20 = vpack.c.bf16 %v5543_v29, %v5542_v24 }
 0x9f2   :  { %8049 = vmatpush1.bf16.msra.mxu0 %v11680_v53  ;;  %8113 = vmatpush1.bf16.msra.mxu1 %v11681_v15  ;;  %v5526_v53 = vld [vmem:[#allocation10 + $0x70] sm:$0xff]  ;;  %v5527_v15 = vld [vmem:[#allocation10 + $0x78] sm:$0xff] }
 0x9f3   :  { %5144 = vmatprep.subr.mxu0 %v11682_v45  ;;  %5215 = vmatprep.subr.mxu1 %v11683_v63  ;;  %v8144_v45 = vpack.c.bf16 %v5527_v15, %v5526_v53  ;;  %v5633_v63 = vld [vmem:[#allocation12] sm:$0xff] }
 0x9f5   :  { %5064 = vmatmul.mubr.f32.vlgmr.msra.gmra.mrb[30].mxu0 %v10435_v21  ;;  %5135 = vmatmul.mubr.f32.vlgmr.msra.gmra.mrb[38].mxu1 %v10435_v21  ;;  %v8128_v21 = vpack.c.bf16 %v5519_v13, %v5518_v0 }
 0x9f6   :  { %5145 = vmatpush1.msra.mxu0 %v11684_v50  ;;  %5216 = vmatpush1.msra.mxu1 %v11685_v26  ;;  %v5634_v50 = vld [vmem:[#allocation12 + $0x8] sm:$0xff]  ;;  %v5635_v26 = vld [vmem:[#allocation12 + $0x10] sm:$0xff] }
 0x9f7   :  { %5208 = vmatprep.mubr.f32.mxu0 %v11686_v48  ;;  %5279 = vmatprep.mubr.f32.mxu1 %v11686_v48 }
 0x9f8   :  { %5286 = vmatprep.subr.mxu0 %v11687_v59  ;;  %5357 = vmatprep.subr.mxu1 %v11688_v37  ;;  %v8147_v59 = vpack.c.bf16 %v5634_v50, %v5633_v63  ;;  %v5636_v37 = vld [vmem:[#allocation12 + $0x18] sm:$0xff] }
 0x9f9   :  { %5911 = vmatmul.mubr.msk.f32.vlgmr.msra.gmra.mrb[28].mxu0 %vm684_vm0, %v4856_v54  ;;  %5912 = vmatmul.mubr.msk.f32.vlgmr.msra.gmra.mrb[36].mxu1 %vm684_vm0, %v4856_v54 }
 0x9fa   :  { %5287 = vmatpush1.msra.mxu0 %v11689_v36  ;;  %5350 = vmatprep.mubr.f32.mxu0 %v11686_v48  ;;  %v8150_v36 = vpack.c.bf16 %v5636_v37, %v5635_v26 }
 0x9fb   :  { %5358 = vmatpush1.msra.mxu1 %v11690_v47  ;;  %5421 = vmatprep.mubr.f32.mxu1 %v11686_v48  ;;  %v5637_v47 = vld [vmem:[#allocation12 + $0x20] sm:$0xff] }
 0x9fc   :  { %8115 = vmatprep.subr.bf16.mxu0 %v8114_v60  ;;  %v8153_v32 = vpack.c.bf16 %v5638_v52, %v5637_v47  ;;  %v5639_v60 = vld [vmem:[#allocation12 + $0x30] sm:$0xff] }
 0x9fd   :  { %5913 = vmatmul.mubr.msk.f32.vlgmr.msra.gmra.mrb[30].mxu0 %vm684_vm0, %v4856_v54  ;;  %5914 = vmatmul.mubr.msk.f32.vlgmr.msra.gmra.mrb[38].mxu1 %vm684_vm0, %v4856_v54  ;;  %v8723_v54 = vmov 0.0|0.0   ;;  %v8156_v19 = vpack.c.bf16 %v5640_v22, %v5639_v60 }
 0x9fe   :  { %8117 = vmatpush3.bf16.msra.mxu0 %v8116_v55  ;;  %8146 = vmatprep.subr.bf16.mxu1 %v8723_v54  ;;  %v5641_v55 = vld [vmem:[#allocation12 + $0x40] sm:$0xff] }
 0x9ff   :  { %8119 = vmatprep.subr.bf16.mxu0 %v8118_v4  ;;  %8148 = vmatpush3.bf16.msra.mxu1 %v8147_v59  ;;  %v8159_v40 = vpack.c.bf16 %v5642_v44, %v5641_v55  ;;  %v5643_v4 = vld [vmem:[#allocation12 + $0x50] sm:$0xff] }
 0xa00   :  { %8149 = vmatprep.subr.bf16.mxu1 %v8723_v54  ;;  %v8162_v23 = vpack.c.bf16 %v5644_v51, %v5643_v4  ;;  %v5646_v51 = vld [vmem:[#allocation12 + $0x68] sm:$0xff]  ;;  %6028 = vmatprep.mubr.msk.f32.mxu1 %vm8724_vm1, %v11686_v48 }
 0xa02   :  { %8121 = vmatpush3.bf16.msra.mxu0 %v8120_v43 }
 0xa03   :  { %8123 = vmatprep.subr.bf16.mxu0 %v8122_v2  ;;  %8151 = vmatpush3.bf16.msra.mxu1 %v8150_v36 }
 0xa04   :  { %8152 = vmatprep.subr.bf16.mxu1 %v8723_v54 }
 0xa06   :  { %8125 = vmatpush3.bf16.msra.mxu0 %v8124_v10  ;;  %v11691_v10 = vld [vmem:[#allocation151_spill] sm:$0xff] }
 0xa07   :  { %8127 = vmatprep.subr.bf16.mxu0 %v8126_v57  ;;  %8154 = vmatpush3.bf16.msra.mxu1 %v8153_v32 }
 0xa08   :  { %8155 = vmatprep.subr.bf16.mxu1 %v8723_v54 }
 0xa0a   :  { %8129 = vmatpush3.bf16.msra.mxu0 %v8128_v21 }
 0xa0b   :  { %8131 = vmatprep.subr.bf16.mxu0 %v8130_v12  ;;  %8157 = vmatpush3.bf16.msra.mxu1 %v8156_v19 }
 0xa0c   :  { %8158 = vmatprep.subr.bf16.mxu1 %v8723_v54 }
 0xa0e   :  { %8133 = vmatpush3.bf16.msra.mxu0 %v8132_v58 }
 0xa0f   :  { %8135 = vmatprep.subr.bf16.mxu0 %v8134_v38  ;;  %8160 = vmatpush3.bf16.msra.mxu1 %v8159_v40 }
 0xa10   :  { %8161 = vmatprep.subr.bf16.mxu1 %v8723_v54 }
 0xa12   :  { %8137 = vmatpush3.bf16.msra.mxu0 %v8136_v3 }
 0xa13   :  { %8139 = vmatprep.subr.bf16.mxu0 %v8138_v8  ;;  %8163 = vmatpush3.bf16.msra.mxu1 %v8162_v23 }
 0xa14   :  { %8164 = vmatprep.subr.bf16.mxu1 %v8723_v54 }
 0xa16   :  { %8141 = vmatpush3.bf16.msra.mxu0 %v8140_v28 }
 0xa17   :  { %8143 = vmatprep.subr.bf16.mxu0 %v8142_v20 }
 0xa1a   :  { %8145 = vmatpush3.bf16.msra.mxu0 %v8144_v45 }
 0xa1b   :  { %8170 = vmatprep.subr.bf16.mxu0 %v8723_v54 }
 0xacc   :  { %v5210_v43 = vpop.f32.mrb[28].mxu0  ;;  %v5281_v35 = vpop.f32.mrb[36].mxu1 }
 0xacd   :  { %v5428_v49 = vadd.f32 %v5210_v43, %v11149_v14  ;;  %v5430_v2 = vadd.f32 %v5281_v35, %v11151_v34  ;;  %v5212_v41 = vpop.f32.mrb[29].mxu0  ;;  %v5283_v62 = vpop.f32.mrb[37].mxu1  ;;  %v5647_v43 = vld [vmem:[#allocation12 + $0x70] sm:$0xff]  ;;  %v5648_v35 = vld [vmem:[#allocation12 + $0x78] sm:$0xff] }
 0xace   :  { %v5429_v5 = vadd.f32 %v5212_v41, %v11691_v10  ;;  %v5431_v57 = vadd.f32 %v5283_v62, %v11692_v27  ;;  %v5727_v41 = vld [vmem:[#allocation13 + $0x8] sm:$0xff]  ;;  %v5728_v62 = vld [vmem:[#allocation13 + $0x10] sm:$0xff] }
 0xacf   :  { %v5915_v0 = vmul.f32 -1.442695, %v5428_v49  ;;  %v5917_v13 = vmul.f32 -1.442695, %v5430_v2  ;;  %v8168_v49 = vpack.c.bf16 %v5648_v35, %v5647_v43  ;;  %v5726_v2 = vld [vmem:[#allocation13] sm:$0xff] }
 0xad0   :  { %v5916_v21 = vmul.f32 -1.442695, %v5429_v5  ;;  %v5918_v18 = vmul.f32 -1.442695, %v5431_v57  ;;  %v5352_v16 = vpop.f32.mrb[30].mxu0  ;;  %v5423_v12 = vpop.f32.mrb[38].mxu1  ;;  %v8171_v10 = vpack.c.bf16 %v5727_v41, %v5726_v2 }
 0xad1   :  { %8498 = vpow2.f32 %v5915_v0  ;;  %v5354_v7 = vpop.f32.mrb[31].mxu0  ;;  %v5425_v42 = vpop.f32.mrb[39].mxu1  ;;  %v5434_v14 = vadd.f32 %v5423_v12, %v9391_v30  ;;  %v5432_v58 = vadd.f32 %v5352_v16, %v9389_v1  ;;  %v5729_v5 = vld [vmem:[#allocation13 + $0x18] sm:$0xff]  ;;  %v5730_v57 = vld [vmem:[#allocation13 + $0x20] sm:$0xff]  ;;  %v5731_v0 = vld [vmem:[#allocation13 + $0x28] sm:$0xff] }
 0xad2   :  { %8500 = vpow2.f32 %v5917_v13  ;;  %v5435_v34 = vadd.f32 %v5425_v42, %v11152_v39  ;;  %v5433_v38 = vadd.f32 %v5354_v7, %v11693_v61  ;;  %v8174_v27 = vpack.c.bf16 %v5729_v5, %v5728_v62  ;;  %v5735_v12 = vld [vmem:[#allocation13 + $0x48] sm:$0xff]  ;;  %v5736_v42 = vld [vmem:[#allocation13 + $0x50] sm:$0xff] }
 0xad3   :  { %8502 = vpow2.f32 %v5916_v21  ;;  %v5919_v11 = vmul.f32 -1.442695, %v5434_v14  ;;  %v8177_v13 = vpack.c.bf16 %v5731_v0, %v5730_v57  ;;  %v5732_v21 = vld [vmem:[#allocation13 + $0x30] sm:$0xff]  ;;  %v5737_v14 = vld [vmem:[#allocation13 + $0x58] sm:$0xff] }
 0xad4   :  { %8504 = vpow2.f32 %v5918_v18  ;;  %v5920_v56 = vmul.f32 -1.442695, %v5435_v34  ;;  %v5733_v18 = vld [vmem:[#allocation13 + $0x38] sm:$0xff]  ;;  %v8186_v34 = vpack.c.bf16 %v5737_v14, %v5736_v42 }
 0xad5   :  { %8506 = vtanh.f32 %v5432_v58  ;;  %v8180_v16 = vpack.c.bf16 %v5733_v18, %v5732_v21  ;;  %v5738_v58 = vld [vmem:[#allocation13 + $0x60] sm:$0xff] }
 0xad6   :  { %8508 = vpow2.f32 %v5919_v11  ;;  %v5739_v11 = vld [vmem:[#allocation13 + $0x68] sm:$0xff] }
 0xad7   :  { %8510 = vtanh.f32 %v5433_v38  ;;  %v8189_v61 = vpack.c.bf16 %v5739_v11, %v5738_v58 }
 0xad8   :  { %8512 = vpow2.f32 %v5920_v56  ;;  %v5923_v56 = vld [vmem:[%s10573_s5] ss:$0 sm:$0xff]  ;;  %s8725_s5 = smov [#allocation15]  }
 0xad9   :  { %s5827_s29 = sshll.u32 %s8725_s5, 4  ;;  %s5828_s29 = int_to_ptr.vmem [resolvable:$true] %s5827_s29 }
 0xada   :  { %s8678_s30 = scalar_lea.vmem %s5828_s29, 32  ;;  %p8683_p7 = scmp.lt.s32.totalorder %s5828_s29, %s5828_s29 }
 0xadb   :  { %v8499_v46 = vpop.eup %8498  ;;  %p8679_p6 = scmp.ne.s32.totalorder %s5828_s29, %s8678_s30  ;;  %p8684_p8 = scmp.lt.s32.totalorder %s8678_s30, %s8678_s30 }
 0xadc   :  { %v8501_v3 = vpop.eup %8500  ;;  %v5442_v9 = vadd.f32 1.0, %v8499_v46 }
 0xadd   :  { %v8503_v33 = vpop.eup %8502  ;;  %v5454_v17 = vadd.f32 1.0, %v8501_v3  ;;  %p8685_p9 = por %p8684_p8, %p8683_p7 }
 0xade   :  { %v8505_v8 = vpop.eup %8504  ;;  %8514 = vrcp.f32 %v5442_v9  ;;  %v5443_v30 = vadd.f32 1.0, %v8503_v33 }
 0xadf   :  { %8516 = vrcp.f32 %v5454_v17  ;;  %v5455_v39 = vadd.f32 1.0, %v8505_v8  ;;  %v8507_v1 = vpop.eup %8506  ;;  %v5740_v17 = vld [vmem:[#allocation13 + $0x70] sm:$0xff]  ;;  %v5741_v8 = vld [vmem:[#allocation13 + $0x78] sm:$0xff]  ;;  %p8686_p10 = pnand %p8685_p9, %p8679_p6 }
 0xae0   :  { %8518 = vrcp.f32 %v5443_v30  ;;  %v8509_v31 = vpop.eup %8508  ;;  %v8192_v30 = vpack.c.bf16 %v5741_v8, %v5740_v17 }
 0xae1   :  { %8520 = vrcp.f32 %v5455_v39  ;;  %v8511_v24 = vpop.eup %8510  ;;  %v5468_v15 = vadd.f32 1.0, %v8509_v31  ;;  %v5925_v39 = vld [vmem:[%s10575_s7] ss:$0 sm:$0xff] }
 0xae2   :  { %v8513_v29 = vpop.eup %8512 }
 0xae3   :  { %v5469_v59 = vadd.f32 1.0, %v8513_v29  ;;  %8522 = vrcp.f32 %v5468_v15 }
 0xae8   :  { %v8515_v28 = vpop.eup %8514 }
 0xae9   :  { %v8517_v20 = vpop.eup %8516  ;;  %v5476_v53 = vmul.f32 %v8515_v28, %v8507_v1 }
 0xaea   :  { %v8519_v45 = vpop.eup %8518  ;;  %v5474_v63 = vmul.f32 %v8517_v20, %v10429_v6 }
 0xaeb   :  { %v8521_v50 = vpop.eup %8520  ;;  %v5477_v26 = vmul.f32 %v8519_v45, %v8511_v24  ;;  %v5926_v24 = vld [vmem:[%s10577_s9] ss:$0 sm:$0xff] }
 0xaec   :  { %v5475_v37 = vmul.f32 %v8521_v50, %v10431_v25  ;;  %v5478_v36 = vadd.f32 %v5476_v53, %v5474_v63  ;;  %v5645_v25 = vld [vmem:[#allocation12 + $0x60] sm:$0xff] }
 0xaed   :  { %v8523_v32 = vpop.eup %8522  ;;  %v8165_v23 = vpack.c.bf16 %v5646_v51, %v5645_v25 }
 0xaee   :  { %8524 = vtanh.f32 %v5478_v36  ;;  %v5479_v47 = vadd.f32 %v5477_v26, %v5475_v37 }
 0xaef   :  { %8526 = vrcp.f32 %v5469_v59  ;;  %8166 = vmatpush3.bf16.msra.mxu1 %v8165_v23 }
 0xaf0   :  { %8528 = vtanh.f32 %v5479_v47  ;;  %v5498_v52 = vcombine.low %v5478_v36, %v5479_v47  ;;  %8167 = vmatprep.subr.bf16.mxu1 %v8723_v54 }
 0xaf2   :  { %5922 = vst.sshfl [vmem:[#allocation3] sm:$0x33 pattern:$0x76325410] %v5498_v52 }
 0xaf3   :  { %8169 = vmatpush3.bf16.msra.mxu1 %v8168_v49 }
 0xaf8   :  { %v8525_v60 = vpop.eup %8524 }
 0xaf9   :  { %v8527_v22 = vpop.eup %8526  ;;  %v5482_v19 = vmul.f32 %v8525_v60, %v8523_v32 }
 0xafa   :  { %v8529_v55 = vpop.eup %8528 }
 0xafb   :  { %v5483_v44 = vmul.f32 %v8529_v55, %v8527_v22 }
 0xafd   :  { %v5486_v6 = vcombine.low %v5482_v19, %v5483_v44 }
 0xaff   :  { %5921 = vst.sshfl [vmem:[#allocation2] sm:$0x33 pattern:$0x76325410] %v5486_v6 }
 0xb06   :  { %v5924_v40 = vld.sshfl [vmem:[#allocation2] sm:$0x33 pattern:$0x76325410] }
 0xb07   :  { %v5559_v4 = vcombine.high %v5924_v40, %v5924_v40 }
 0xb09   :  { %5626 = vmatprep.mubr.f32.mxu0 %v5559_v4 }
 0xb0a   :  { %5627 = vmatmul.mubr.f32.vlgmr.msra.gmra.mrb[32].mxu0 %v5924_v40 }
 0xb0b   :  { %6063 = vmatprep.mubr.msk.f32.mxu0 %vm8724_vm1, %v11686_v48  ;;  %8172 = vmatpush3.bf16.msra.mxu0 %v8171_v10  ;;  %v5734_v48 = vld [vmem:[#allocation13 + $0x40] sm:$0xff] }
 0xb0c   :  { %8173 = vmatprep.subr.bf16.mxu0 %v8723_v54  ;;  %v8183_v7 = vpack.c.bf16 %v5735_v12, %v5734_v48 }
 0xb0f   :  { %8175 = vmatpush3.bf16.msra.mxu0 %v8174_v27 }
 0xb10   :  { %8176 = vmatprep.subr.bf16.mxu0 %v8723_v54 }
 0xb13   :  { %8178 = vmatpush3.bf16.msra.mxu0 %v8177_v13 }
 0xb14   :  { %8179 = vmatprep.subr.bf16.mxu0 %v8723_v54 }
 0xb17   :  { %8181 = vmatpush3.bf16.msra.mxu0 %v8180_v16 }
 0xb18   :  { %8182 = vmatprep.subr.bf16.mxu0 %v8723_v54 }
 0xb1b   :  { %8184 = vmatpush3.bf16.msra.mxu0 %v8183_v7 }
 0xb1c   :  { %8185 = vmatprep.subr.bf16.mxu0 %v8723_v54 }
 0xb1f   :  { %8187 = vmatpush3.bf16.msra.mxu0 %v8186_v34 }
 0xb20   :  { %8188 = vmatprep.subr.bf16.mxu0 %v8723_v54 }
 0xb23   :  { %8190 = vmatpush3.bf16.msra.mxu0 %v8189_v61 }
 0xb24   :  { %8191 = vmatprep.subr.bf16.mxu0 %v8723_v54 }
 0xb27   :  { %8193 = vmatpush3.bf16.msra.mxu0 %v8192_v30 }
 0xbdd   :  { %v5959_v38 = vpop.f32.mrb[32].mxu0 }
 0xbde   :  { %v5960_v46 = vpop.f32.mrb[33].mxu0 }
 0xbdf   :  { %v5961_v3 = vadd.f32 %v5960_v46, %v5959_v38 }
 0xbe1   :  { %v5629_v9 = vadd.f32 %v5961_v3, %v5923_v56 }
 0xbe3   :  { %v5632_v33 = vmax.f32 %v5629_v9, 0.0 }
 0xbe5   :  { %6029 = vmatmul.mubr.f32.vlgmr.msra.gmra.mrb[40].mxu1 %v5632_v33 }
 0xcb8   :  { %v5722_v1 = vpop.f32.mrb[40].mxu1 }
 0xcb9   :  { %v5723_v54 = vadd.f32 %v5925_v39, %v5722_v1  ;;  %v6030_v31 = vpop.f32.mrb[41].mxu1 }
 0xcbb   :  { %6064 = vmatmul.mubr.f32.vlgmr.msra.gmra.mrb[34].mxu0 %v5723_v54 }
 0xd8e   :  { %v5815_v29 = vpop.f32.mrb[34].mxu0 }
 0xd8f   :  { %v5816_v28 = vadd.f32 %v5926_v24, %v5815_v29  ;;  %v6065_v20 = vpop.f32.mrb[35].mxu0 }
 0xd91   :  { %5820 = vst.msk [vmem:[#allocation15] sm:$0x3] %vm5819_vm2, %v5816_v28 }
 0xd92   :  { %8689 = shalt.err (!%p8686_p10)
}
 0xd93   :  { %s8690_s13 = scalar_lea.hbm %s10578_s10, 32 }
 0xd94   :  { %p8691_p11 = scmp.ne.s32.totalorder %s10578_s10, %s8690_s13  ;;  %p8694_p12 = scmp.lt.u32.totalorder %s8690_s13, %s10578_s10 }
 0xd96   :  { %p8696_p13 = pnand %p8694_p12, %p8691_p11 }
 0xd98   :  { %8699 = shalt.err (!%p8696_p13)
}
 0xd99   :  { %5830 = dma.vmem_to_hbm [thread:$0]  %s5828_s29, 32, %s10578_s10, [#allocation6]  }
 0xd9a   :  { %8708 = dma.done.wait [#allocation6], 32  }
 0xd9b   :  { %8709 = vsyncadd [#allocation6], 4294967264 }
 0xd9c   :  { %5834 = vsyncpa [#allocation5], 1 }
 0xd9d   :  { %5835 = vsyncpa [#allocation8], 1 }
 0xd9e   :  { %5836 = vsyncpa [#allocation11], 1 }
 0xd9f   :  { %5837 = vsyncpa [#allocation14], 1 }
 0xda0   :  { %5838 = vsyncpa [#allocation6], 1 }

</bundles_post_ra>
